<compile_context>
chip_gen: v5e
topology: v5e:2x2
jax: 0.10.0
libtpu: 0.0.40
codegen_flags: <defaults>
</compile_context>

<pallas_src>
import functools

import jax
import jax.numpy as jnp
from jax.experimental import pallas as pl
from jax.experimental.pallas import tpu as pltpu

F32 = jnp.float32
VOCAB = 26 ** 3 + 26 ** 2 + 26 + 9  # 18287, as in nn.Embedding of the module


def _sigmoid(x):
    # numerically-stable sigmoid that lowers to the EUP tanh unit
    return 0.5 * (jnp.tanh(0.5 * x) + 1.0)


def _branch_spec(arr):
    """BlockSpec selecting one branch (leading axis) per grid step."""
    nrest = arr.ndim - 1
    return pl.BlockSpec((1,) + arr.shape[1:],
                        lambda g, _n=nrest: (g,) + (0,) * _n)


# ----------------------------------------------------------------------------
# Fused per-branch kernel: 2-layer (optionally bidirectional) LSTM + MHA + mean
# Grid: (3,) over the n-gram branches, "parallel".
# ----------------------------------------------------------------------------
def _branch_kernel(*refs, S, B, H, ndir, layers, num_heads):
    n_lstm = 3 * layers
    x_ref = refs[0]                                       # (1, S, B, E_emb)
    lstm_refs = [tuple(refs[1 + 3 * l: 4 + 3 * l]) for l in range(layers)]
    a0 = 1 + n_lstm
    (wq_ref, bq_ref, wk_ref, bk_ref, wv_ref, bv_ref,
     wout_ref, bout_ref) = refs[a0:a0 + 8]
    o_ref = refs[a0 + 8]                                  # (1, B, E)
    xp_scr, ya_scr, yb_scr, h_scr, c_scr = refs[a0 + 9:a0 + 14]

    E = H * ndir
    y_scr = (ya_scr, yb_scr)

    def run_layer(l, src2d, dst):
        wih_ref, whh_ref, b_ref = lstm_refs[l]
        for d in range(ndir):                             # static (1 or 2)
            # Hoisted input projection: all S timesteps in one MXU matmul,
            # bias folded in.  Only h @ W_hh remains on the serial path.
            xp = jnp.dot(src2d, wih_ref[0, d],
                         preferred_element_type=F32) + b_ref[0, d]
            xp_scr[...] = xp.reshape(S, B, 4 * H)
            whh = whh_ref[0, d]                           # loop-invariant read
            h_scr[...] = jnp.zeros_like(h_scr)
            c_scr[...] = jnp.zeros_like(c_scr)

            def step(t, carry, d=d, whh=whh, dst=dst):
                tt = t if d == 0 else (S - 1) - t         # bwd dir runs reversed
                gates = xp_scr[tt] + jnp.dot(h_scr[...], whh,
                                             preferred_element_type=F32)
                i_g = _sigmoid(gates[:, 0 * H:1 * H])
                f_g = _sigmoid(gates[:, 1 * H:2 * H])
                g_g = jnp.tanh(gates[:, 2 * H:3 * H])
                o_g = _sigmoid(gates[:, 3 * H:4 * H])
                c_new = f_g * c_scr[...] + i_g * g_g
                h_new = o_g * jnp.tanh(c_new)
                c_scr[...] = c_new
                h_scr[...] = h_new
                if ndir == 1:
                    dst[tt] = h_new
                else:
                    dst[tt, :, pl.ds(d * H, H)] = h_new
                return carry

            jax.lax.fori_loop(0, S, step, 0, unroll=True)

    # ---- stacked LSTM layers (intermediates stay in VMEM scratch) ----------
    x0 = x_ref[0]                                         # (S, B, E_emb)
    run_layer(0, x0.reshape(S * B, x0.shape[-1]), y_scr[0])
    for l in range(1, layers):
        src2d = y_scr[(l - 1) % 2][...].reshape(S * B, E)
        run_layer(l, src2d, y_scr[l % 2])
    yfin = y_scr[(layers - 1) % 2]                        # (S, B, E)

    # ---- MultiheadAttention (eval, no dropout) fused with .mean over S -----
    y2d = yfin[...].reshape(S * B, E)
    q = jnp.dot(y2d, wq_ref[0], preferred_element_type=F32) + bq_ref[0]
    k = jnp.dot(y2d, wk_ref[0], preferred_element_type=F32) + bk_ref[0]
    v = jnp.dot(y2d, wv_ref[0], preferred_element_type=F32) + bv_ref[0]
    dh = E // num_heads
    scale = 1.0 / float(dh) ** 0.5
    wout = wout_ref[0]                                    # (E, E)

    acc = jnp.zeros((B, E), F32)
    for hh in range(num_heads):                           # static (2 heads)
        lo = hh * dh
        qh = q[:, lo:lo + dh].reshape(S, B, dh) * scale
        kh = k[:, lo:lo + dh].reshape(S, B, dh)
        vh = v[:, lo:lo + dh].reshape(S, B, dh)
        # batched over sequence positions s; attention mixes the batch axis
        s = jnp.einsum('sqd,skd->sqk', qh, kh, preferred_element_type=F32)
        m = jnp.max(s, axis=-1, keepdims=True)
        e = jnp.exp(s - m)
        p = e * pl.reciprocal(jnp.sum(e, axis=-1, keepdims=True), approx=True)
        oh = jnp.einsum('sqk,skd->sqd', p, vh, preferred_element_type=F32)
        # out-projection is linear -> sum over positions first, project once
        acc = acc + jnp.dot(jnp.sum(oh, axis=0), wout[lo:lo + dh, :],
                            preferred_element_type=F32)
    o_ref[0] = acc * (1.0 / float(S)) + bout_ref[0]       # bias added once


def fused_branches(x_emb, lstm_stacked, attn_stacked, *, num_heads):
    NB, S, B, _ = x_emb.shape                             # NB == 3
    layers = len(lstm_stacked)
    ndir = lstm_stacked[0][1].shape[1]
    H = lstm_stacked[0][1].shape[2]
    E = H * ndir
    assert E % num_heads == 0

    inputs = [x_emb]
    in_specs = [_branch_spec(x_emb)]
    for wih, whh, b in lstm_stacked:
        for arr in (wih, whh, b):
            inputs.append(arr)
            in_specs.append(_branch_spec(arr))
    for arr in attn_stacked:
        inputs.append(arr)
        in_specs.append(_branch_spec(arr))

    kernel = functools.partial(_branch_kernel, S=S, B=B, H=H, ndir=ndir,
                               layers=layers, num_heads=num_heads)
    return pl.pallas_call(
        kernel,
        out_shape=jax.ShapeDtypeStruct((NB, B, E), F32),
        grid=(NB,),
        in_specs=in_specs,
        out_specs=pl.BlockSpec((1, B, E), lambda g: (g, 0, 0)),
        scratch_shapes=[
            pltpu.VMEM((S, B, 4 * H), F32),   # hoisted input projection
            pltpu.VMEM((S, B, E), F32),       # layer output ping
            pltpu.VMEM((S, B, E), F32),       # layer output pong
            pltpu.VMEM((B, H), F32),          # h state
            pltpu.VMEM((B, H), F32),          # c state
        ],
        compiler_params=pltpu.CompilerParams(
            dimension_semantics=("parallel",)),
    )(*inputs)


# ----------------------------------------------------------------------------
# Classifier head: Linear -> ReLU -> Linear -> LogSoftmax(dim=1)
# Consumes the (3, B, E) branch outputs directly: the first Linear is computed
# as the sum of three per-branch matmuls (no concat / transpose needed).
# ----------------------------------------------------------------------------
def _head_kernel(x_ref, w1_ref, b1_ref, w2_ref, b2_ref, o_ref):
    h = (jnp.dot(x_ref[0], w1_ref[0], preferred_element_type=F32)
         + jnp.dot(x_ref[1], w1_ref[1], preferred_element_type=F32)
         + jnp.dot(x_ref[2], w1_ref[2], preferred_element_type=F32)
         + b1_ref[...])
    h = jnp.maximum(h, 0.0)
    logits = jnp.dot(h, w2_ref[...], preferred_element_type=F32) + b2_ref[...]
    m = jnp.max(logits, axis=-1, keepdims=True)
    lse = m + jnp.log(jnp.sum(jnp.exp(logits - m), axis=-1, keepdims=True))
    o_ref[...] = logits - lse


def head(branch_out, w1s, b1, w2, b2):
    B = branch_out.shape[1]
    C = w2.shape[-1]
    vspec = pl.BlockSpec(memory_space=pltpu.MemorySpace.VMEM)
    return pl.pallas_call(
        _head_kernel,
        out_shape=jax.ShapeDtypeStruct((B, C), F32),
        in_specs=[vspec] * 5,
        out_specs=pl.BlockSpec(memory_space=pltpu.MemorySpace.VMEM),
    )(branch_out, w1s, b1, w2, b2)


# ----------------------------------------------------------------------------
# Parameter init (PyTorch-layout) + one-time kernel-layout preparation.
# ----------------------------------------------------------------------------
def _uniform(key, shape, bound):
    return jax.random.uniform(key, shape, F32, -bound, bound)


def init_params(key, *, hidden_size, layers, bidirectional, embedding_size,
                class_amount):
    D = 2 if bidirectional else 1
    e_attn = hidden_size * D
    keys = iter(jax.random.split(key, 256))
    params = {"embedding":
              jax.random.normal(next(keys), (VOCAB, embedding_size), F32)}
    k_lstm = 1.0 / (hidden_size ** 0.5)
    dirs = ["fwd", "bwd"][:D]
    for n in (1, 2, 3):
        lp = {}
        for l in range(layers):
            in_dim = embedding_size if l == 0 else hidden_size * D
            for d in dirs:
                lp[f"l{l}_{d}"] = (
                    _uniform(next(keys), (4 * hidden_size, in_dim), k_lstm),
                    _uniform(next(keys), (4 * hidden_size, hidden_size), k_lstm),
                    _uniform(next(keys), (4 * hidden_size,), k_lstm),
                    _uniform(next(keys), (4 * hidden_size,), k_lstm),
                )
        params[f"lstm{n}"] = lp
        k_attn = 1.0 / (e_attn ** 0.5)
        params[f"attn{n}"] = (
            _uniform(next(keys), (3 * e_attn, e_attn), k_attn),   # in_proj_weight
            jnp.zeros((3 * e_attn,), F32),                        # in_proj_bias
            _uniform(next(keys), (e_attn, e_attn), k_attn),       # out_proj.weight
            jnp.zeros((e_attn,), F32),                            # out_proj.bias
        )
    k1 = 1.0 / ((hidden_size * 3 * D) ** 0.5)
    params["linear1"] = (_uniform(next(keys), (200 * D, hidden_size * 3 * D), k1),
                         _uniform(next(keys), (200 * D,), k1))
    k2 = 1.0 / ((200 * D) ** 0.5)
    params["linear2"] = (_uniform(next(keys), (class_amount, 200 * D), k2),
                         _uniform(next(keys), (class_amount,), k2))
    return params


def prepare_params(params, *, layers, bidirectional):
    """One-time (outside jit): transpose / fold biases / stack the 3 branches."""
    D = 2 if bidirectional else 1
    dirs = ["fwd", "bwd"][:D]

    lstm_stacked = []
    for l in range(layers):
        wih_b, whh_b, b_b = [], [], []
        for n in (1, 2, 3):
            lp = params[f"lstm{n}"]
            wih_b.append(jnp.stack([lp[f"l{l}_{d}"][0].T for d in dirs], 0))
            whh_b.append(jnp.stack([lp[f"l{l}_{d}"][1].T for d in dirs], 0))
            b_b.append(jnp.stack(
                [(lp[f"l{l}_{d}"][2] + lp[f"l{l}_{d}"][3]).reshape(1, -1)
                 for d in dirs], 0))
        lstm_stacked.append((jnp.stack(wih_b, 0),     # (3, D, in, 4H)
                             jnp.stack(whh_b, 0),     # (3, D, H, 4H)
                             jnp.stack(b_b, 0)))      # (3, D, 1, 4H)

    wq, bq, wk, bk, wv, bv, wo, bo = ([] for _ in range(8))
    for n in (1, 2, 3):
        in_w, in_b, out_w, out_b = params[f"attn{n}"]
        E = out_w.shape[0]
        wq.append(in_w[0:E].T);        bq.append(in_b[0:E].reshape(1, E))
        wk.append(in_w[E:2 * E].T);    bk.append(in_b[E:2 * E].reshape(1, E))
        wv.append(in_w[2 * E:].T);     bv.append(in_b[2 * E:].reshape(1, E))
        wo.append(out_w.T);            bo.append(out_b.reshape(1, E))
    attn_stacked = tuple(jnp.stack(a, 0) for a in (wq, bq, wk, bk, wv, bv, wo, bo))

    hidden = params["lstm1"]["l0_fwd"][1].shape[1]
    E = hidden * D
    w1, b1 = params["linear1"]
    w2, b2 = params["linear2"]
    head_p = (w1.T.reshape(3, E, w1.shape[0]),        # per-branch (E, 200D) blocks
              b1.reshape(1, -1), w2.T, b2.reshape(1, -1))

    return {"embedding": params["embedding"], "lstm": lstm_stacked,
            "attn": attn_stacked, "head": head_p}


# ----------------------------------------------------------------------------
# Forward
# ----------------------------------------------------------------------------
def triple_ngram_lstm_forward(prepared, x_n1, x_n2, x_n3, *, num_heads=2):
    emb = prepared["embedding"]

    def embed(ids):
        # Embedding gather stays in plain JAX glue (data-dependent gather).
        x = jnp.take(emb, ids.astype(jnp.int32), axis=0)      # (B, S, E_emb)
        return jnp.transpose(x, (1, 0, 2)).astype(F32)        # (S, B, E_emb)

    x = jnp.stack([embed(x_n1), embed(x_n2), embed(x_n3)], axis=0)  # (3,S,B,E)
    branch_out = fused_branches(x, prepared["lstm"], prepared["attn"],
                                num_heads=num_heads)           # (3, B, H*D)
    return head(branch_out, *prepared["head"])                 # (B, classes)


if __name__ == "__main__":
    # Small shapes; batch kept sublane-full (8) to avoid masked (sub-8-row)
    # stores in the recurrence.  (Zero-padding the batch is not semantically
    # free here because the module's attention mixes the batch axis.)
    B, S = 8, 8
    hidden_size, layers, embedding_size, class_amount = 32, 2, 64, 10
    bidirectional = False   # module default
    num_heads = 2

    key = jax.random.PRNGKey(0)
    pkey, k1, k2, k3 = jax.random.split(key, 4)
    params = init_params(pkey, hidden_size=hidden_size, layers=layers,
                         bidirectional=bidirectional,
                         embedding_size=embedding_size,
                         class_amount=class_amount)
    prepared = prepare_params(params, layers=layers, bidirectional=bidirectional)

    x_n1 = jax.random.randint(k1, (B, S), 0, VOCAB, dtype=jnp.int32)
    x_n2 = jax.random.randint(k2, (B, S), 0, VOCAB, dtype=jnp.int32)
    x_n3 = jax.random.randint(k3, (B, S), 0, VOCAB, dtype=jnp.int32)

    fwd = jax.jit(functools.partial(triple_ngram_lstm_forward,
                                    num_heads=num_heads))
    out = jax.block_until_ready(fwd(prepared, x_n1, x_n2, x_n3))

    assert out.shape == (B, class_amount), out.shape
    # log-softmax rows must exponentiate to 1
    assert bool(jnp.all(jnp.abs(jnp.sum(jnp.exp(out), axis=1) - 1.0) < 1e-3))
    print("KERNEL_OK")
</pallas_src>

<mosaic_0001>
module attributes {stable_mosaic.version = 11 : i64} {
  func.func @_head_kernel(%arg0: memref<3x8x32xf32, #tpu.memory_space<vmem>>, %arg1: memref<3x32x200xf32, #tpu.memory_space<vmem>>, %arg2: memref<1x200xf32, #tpu.memory_space<vmem>>, %arg3: memref<200x10xf32, #tpu.memory_space<vmem>>, %arg4: memref<1x10xf32, #tpu.memory_space<vmem>>, %arg5: memref<8x10xf32, #tpu.memory_space<vmem>>) attributes {dimension_semantics = [], scalar_prefetch = 0 : i64, scratch_operands = 0 : i64, tpu.core_type = #tpu.core_type<tc>} {
    %c0 = arith.constant 0 : index
    %c0_0 = arith.constant 0 : index
    %c0_1 = arith.constant 0 : index
    %0 = vector.load %arg0[%c0, %c0_0, %c0_1] : memref<3x8x32xf32, #tpu.memory_space<vmem>>, vector<1x8x32xf32>
    %1 = vector.shape_cast %0 : vector<1x8x32xf32> to vector<8x32xf32>
    %c0_2 = arith.constant 0 : index
    %c0_3 = arith.constant 0 : index
    %c0_4 = arith.constant 0 : index
    %2 = vector.load %arg1[%c0_2, %c0_3, %c0_4] : memref<3x32x200xf32, #tpu.memory_space<vmem>>, vector<1x32x200xf32>
    %3 = vector.shape_cast %2 : vector<1x32x200xf32> to vector<32x200xf32>
    %cst = arith.constant dense<0.000000e+00> : vector<8x200xf32>
    %4 = tpu.matmul %1, %3, %cst {dimension_numbers = #tpu.dot_dimension_numbers<[1], [0], [0], [1], [0, 0, 1, 1], [], []>} : vector<8x32xf32>, vector<32x200xf32>, vector<8x200xf32> -> vector<8x200xf32>
    %c1 = arith.constant 1 : index
    %c0_5 = arith.constant 0 : index
    %c0_6 = arith.constant 0 : index
    %5 = vector.load %arg0[%c1, %c0_5, %c0_6] : memref<3x8x32xf32, #tpu.memory_space<vmem>>, vector<1x8x32xf32>
    %6 = vector.shape_cast %5 : vector<1x8x32xf32> to vector<8x32xf32>
    %c1_7 = arith.constant 1 : index
    %c0_8 = arith.constant 0 : index
    %c0_9 = arith.constant 0 : index
    %7 = vector.load %arg1[%c1_7, %c0_8, %c0_9] : memref<3x32x200xf32, #tpu.memory_space<vmem>>, vector<1x32x200xf32>
    %8 = vector.shape_cast %7 : vector<1x32x200xf32> to vector<32x200xf32>
    %cst_10 = arith.constant dense<0.000000e+00> : vector<8x200xf32>
    %9 = tpu.matmul %6, %8, %cst_10 {dimension_numbers = #tpu.dot_dimension_numbers<[1], [0], [0], [1], [0, 0, 1, 1], [], []>} : vector<8x32xf32>, vector<32x200xf32>, vector<8x200xf32> -> vector<8x200xf32>
    %10 = arith.addf %4, %9 : vector<8x200xf32>
    %c2 = arith.constant 2 : index
    %c0_11 = arith.constant 0 : index
    %c0_12 = arith.constant 0 : index
    %11 = vector.load %arg0[%c2, %c0_11, %c0_12] : memref<3x8x32xf32, #tpu.memory_space<vmem>>, vector<1x8x32xf32>
    %12 = vector.shape_cast %11 : vector<1x8x32xf32> to vector<8x32xf32>
    %c2_13 = arith.constant 2 : index
    %c0_14 = arith.constant 0 : index
    %c0_15 = arith.constant 0 : index
    %13 = vector.load %arg1[%c2_13, %c0_14, %c0_15] : memref<3x32x200xf32, #tpu.memory_space<vmem>>, vector<1x32x200xf32>
    %14 = vector.shape_cast %13 : vector<1x32x200xf32> to vector<32x200xf32>
    %cst_16 = arith.constant dense<0.000000e+00> : vector<8x200xf32>
    %15 = tpu.matmul %12, %14, %cst_16 {dimension_numbers = #tpu.dot_dimension_numbers<[1], [0], [0], [1], [0, 0, 1, 1], [], []>} : vector<8x32xf32>, vector<32x200xf32>, vector<8x200xf32> -> vector<8x200xf32>
    %16 = arith.addf %10, %15 : vector<8x200xf32>
    %c0_17 = arith.constant 0 : index
    %c0_18 = arith.constant 0 : index
    %17 = vector.load %arg2[%c0_17, %c0_18] : memref<1x200xf32, #tpu.memory_space<vmem>>, vector<1x200xf32>
    %18 = vector.broadcast %17 : vector<1x200xf32> to vector<8x200xf32>
    %19 = arith.addf %16, %18 : vector<8x200xf32>
    %cst_19 = arith.constant 0.000000e+00 : f32
    %20 = vector.broadcast %cst_19 : f32 to vector<8x200xf32>
    %21 = arith.maximumf %19, %20 : vector<8x200xf32>
    %c0_20 = arith.constant 0 : index
    %c0_21 = arith.constant 0 : index
    %22 = vector.load %arg3[%c0_20, %c0_21] : memref<200x10xf32, #tpu.memory_space<vmem>>, vector<200x10xf32>
    %cst_22 = arith.constant dense<0.000000e+00> : vector<8x10xf32>
    %23 = tpu.matmul %21, %22, %cst_22 {dimension_numbers = #tpu.dot_dimension_numbers<[1], [0], [0], [1], [0, 0, 1, 1], [], []>} : vector<8x200xf32>, vector<200x10xf32>, vector<8x10xf32> -> vector<8x10xf32>
    %c0_23 = arith.constant 0 : index
    %c0_24 = arith.constant 0 : index
    %24 = vector.load %arg4[%c0_23, %c0_24] : memref<1x10xf32, #tpu.memory_space<vmem>>, vector<1x10xf32>
    %25 = vector.broadcast %24 : vector<1x10xf32> to vector<8x10xf32>
    %26 = arith.addf %23, %25 : vector<8x10xf32>
    %cst_25 = arith.constant dense<0xFF800000> : vector<8xf32>
    %27 = vector.multi_reduction <maximumf>, %26, %cst_25 [1] : vector<8x10xf32> to vector<8xf32>
    %28 = vector.shape_cast %27 : vector<8xf32> to vector<8x1xf32>
    %29 = vector.broadcast %28 : vector<8x1xf32> to vector<8x10xf32>
    %30 = arith.subf %26, %29 : vector<8x10xf32>
    %31 = math.exp %30 : vector<8x10xf32>
    %cst_26 = arith.constant dense<0.000000e+00> : vector<8xf32>
    %32 = vector.multi_reduction <add>, %31, %cst_26 [1] : vector<8x10xf32> to vector<8xf32>
    %33 = vector.shape_cast %32 : vector<8xf32> to vector<8x1xf32>
    %34 = math.log %33 : vector<8x1xf32>
    %35 = arith.addf %28, %34 : vector<8x1xf32>
    %36 = vector.broadcast %35 : vector<8x1xf32> to vector<8x10xf32>
    %37 = arith.subf %26, %36 : vector<8x10xf32>
    %c0_27 = arith.constant 0 : index
    %c0_28 = arith.constant 0 : index
    %38 = vector.load %arg5[%c0_27, %c0_28] : memref<8x10xf32, #tpu.memory_space<vmem>>, vector<8x10xf32>
    tpu.vector_store %arg5[%c0_27, %c0_28], %37 {strides = array<i32>} : memref<8x10xf32, #tpu.memory_space<vmem>>, vector<8x10xf32>,
    return
  }
}

module attributes {stable_mosaic.version = 11 : i64} {
  func.func @_branch_kernel(%arg0: i32, %arg1: memref<1x8x8x64xf32, #tpu.memory_space<vmem>>, %arg2: memref<1x1x64x128xf32, #tpu.memory_space<vmem>>, %arg3: memref<1x1x32x128xf32, #tpu.memory_space<vmem>>, %arg4: memref<1x1x1x128xf32, #tpu.memory_space<vmem>>, %arg5: memref<1x1x32x128xf32, #tpu.memory_space<vmem>>, %arg6: memref<1x1x32x128xf32, #tpu.memory_space<vmem>>, %arg7: memref<1x1x1x128xf32, #tpu.memory_space<vmem>>, %arg8: memref<1x32x32xf32, #tpu.memory_space<vmem>>, %arg9: memref<1x1x32xf32, #tpu.memory_space<vmem>>, %arg10: memref<1x32x32xf32, #tpu.memory_space<vmem>>, %arg11: memref<1x1x32xf32, #tpu.memory_space<vmem>>, %arg12: memref<1x32x32xf32, #tpu.memory_space<vmem>>, %arg13: memref<1x1x32xf32, #tpu.memory_space<vmem>>, %arg14: memref<1x32x32xf32, #tpu.memory_space<vmem>>, %arg15: memref<1x1x32xf32, #tpu.memory_space<vmem>>, %arg16: memref<1x8x32xf32, #tpu.memory_space<vmem>>, %arg17: memref<8x8x128xf32, #tpu.memory_space<vmem>>, %arg18: memref<8x8x32xf32, #tpu.memory_space<vmem>>, %arg19: memref<8x8x32xf32, #tpu.memory_space<vmem>>, %arg20: memref<8x32xf32, #tpu.memory_space<vmem>>, %arg21: memref<8x32xf32, #tpu.memory_space<vmem>>) attributes {dimension_semantics = [#tpu.dimension_semantics<parallel>], iteration_bounds = array<i64: 3>, scalar_prefetch = 0 : i64, scratch_operands = 5 : i64, tpu.core_type = #tpu.core_type<tc>, window_params = [{transform_indices = @transform_0, window_bounds = array<i64: 1, 8, 8, 64>}, {transform_indices = @transform_1, window_bounds = array<i64: 1, 1, 64, 128>}, {transform_indices = @transform_2, window_bounds = array<i64: 1, 1, 32, 128>}, {transform_indices = @transform_3, window_bounds = array<i64: 1, 1, 1, 128>}, {transform_indices = @transform_4, window_bounds = array<i64: 1, 1, 32, 128>}, {transform_indices = @transform_5, window_bounds = array<i64: 1, 1, 32, 128>}, {transform_indices = @transform_6, window_bounds = array<i64: 1, 1, 1, 128>}, {transform_indices = @transform_7, window_bounds = array<i64: 1, 32, 32>}, {transform_indices = @transform_8, window_bounds = array<i64: 1, 1, 32>}, {transform_indices = @transform_9, window_bounds = array<i64: 1, 32, 32>}, {transform_indices = @transform_10, window_bounds = array<i64: 1, 1, 32>}, {transform_indices = @transform_11, window_bounds = array<i64: 1, 32, 32>}, {transform_indices = @transform_12, window_bounds = array<i64: 1, 1, 32>}, {transform_indices = @transform_13, window_bounds = array<i64: 1, 32, 32>}, {transform_indices = @transform_14, window_bounds = array<i64: 1, 1, 32>}, {transform_indices = @transform_15, window_bounds = array<i64: 1, 8, 32>}]} {
    %c0 = arith.constant 0 : index
    %c0_0 = arith.constant 0 : index
    %c0_1 = arith.constant 0 : index
    %c0_2 = arith.constant 0 : index
    %0 = vector.load %arg1[%c0, %c0_0, %c0_1, %c0_2] : memref<1x8x8x64xf32, #tpu.memory_space<vmem>>, vector<1x8x8x64xf32>
    %1 = vector.shape_cast %0 : vector<1x8x8x64xf32> to vector<8x8x64xf32>
    %2 = vector.shape_cast %1 : vector<8x8x64xf32> to vector<64x64xf32>
    %c0_3 = arith.constant 0 : index
    %c0_4 = arith.constant 0 : index
    %c0_5 = arith.constant 0 : index
    %c0_6 = arith.constant 0 : index
    %3 = vector.load %arg2[%c0_3, %c0_4, %c0_5, %c0_6] : memref<1x1x64x128xf32, #tpu.memory_space<vmem>>, vector<1x1x64x128xf32>
    %4 = vector.shape_cast %3 : vector<1x1x64x128xf32> to vector<64x128xf32>
    %cst = arith.constant dense<0.000000e+00> : vector<64x128xf32>
    %5 = tpu.matmul %2, %4, %cst {dimension_numbers = #tpu.dot_dimension_numbers<[1], [0], [0], [1], [0, 0, 1, 1], [], []>} : vector<64x64xf32>, vector<64x128xf32>, vector<64x128xf32> -> vector<64x128xf32>
    %c0_7 = arith.constant 0 : index
    %c0_8 = arith.constant 0 : index
    %c0_9 = arith.constant 0 : index
    %c0_10 = arith.constant 0 : index
    %6 = vector.load %arg4[%c0_7, %c0_8, %c0_9, %c0_10] : memref<1x1x1x128xf32, #tpu.memory_space<vmem>>, vector<1x1x1x128xf32>
    %7 = vector.shape_cast %6 : vector<1x1x1x128xf32> to vector<1x128xf32>
    %8 = vector.broadcast %7 : vector<1x128xf32> to vector<64x128xf32>
    %9 = arith.addf %5, %8 : vector<64x128xf32>
    %10 = vector.shape_cast %9 : vector<64x128xf32> to vector<8x8x128xf32>
    %c0_11 = arith.constant 0 : index
    %c0_12 = arith.constant 0 : index
    %c0_13 = arith.constant 0 : index
    %11 = vector.load %arg17[%c0_11, %c0_12, %c0_13] : memref<8x8x128xf32, #tpu.memory_space<vmem>>, vector<8x8x128xf32>
    tpu.vector_store %arg17[%c0_11, %c0_12, %c0_13], %10 {strides = array<i32>} : memref<8x8x128xf32, #tpu.memory_space<vmem>>, vector<8x8x128xf32>,
    %c0_14 = arith.constant 0 : index
    %c0_15 = arith.constant 0 : index
    %c0_16 = arith.constant 0 : index
    %c0_17 = arith.constant 0 : index
    %12 = vector.load %arg3[%c0_14, %c0_15, %c0_16, %c0_17] : memref<1x1x32x128xf32, #tpu.memory_space<vmem>>, vector<1x1x32x128xf32>
    %13 = vector.shape_cast %12 : vector<1x1x32x128xf32> to vector<32x128xf32>
    %cst_18 = arith.constant 0.000000e+00 : f32
    %14 = vector.broadcast %cst_18 : f32 to vector<8x32xf32>
    %c0_19 = arith.constant 0 : index
    %c0_20 = arith.constant 0 : index
    %15 = vector.load %arg20[%c0_19, %c0_20] : memref<8x32xf32, #tpu.memory_space<vmem>>, vector<8x32xf32>
    tpu.vector_store %arg20[%c0_19, %c0_20], %14 {strides = array<i32>} : memref<8x32xf32, #tpu.memory_space<vmem>>, vector<8x32xf32>,
    %cst_21 = arith.constant 0.000000e+00 : f32
    %16 = vector.broadcast %cst_21 : f32 to vector<8x32xf32>
    %c0_22 = arith.constant 0 : index
    %c0_23 = arith.constant 0 : index
    %17 = vector.load %arg21[%c0_22, %c0_23] : memref<8x32xf32, #tpu.memory_space<vmem>>, vector<8x32xf32>
    tpu.vector_store %arg21[%c0_22, %c0_23], %16 {strides = array<i32>} : memref<8x32xf32, #tpu.memory_space<vmem>>, vector<8x32xf32>,
    %c0_i32 = arith.constant 0 : i32
    %18 = arith.index_cast %c0_i32 : i32 to index
    %c0_24 = arith.constant 0 : index
    %c0_25 = arith.constant 0 : index
    %19 = vector.load %arg17[%18, %c0_24, %c0_25] : memref<8x8x128xf32, #tpu.memory_space<vmem>>, vector<1x8x128xf32>
    %20 = vector.shape_cast %19 : vector<1x8x128xf32> to vector<8x128xf32>
    %c0_26 = arith.constant 0 : index
    %c0_27 = arith.constant 0 : index
    %21 = vector.load %arg20[%c0_26, %c0_27] : memref<8x32xf32, #tpu.memory_space<vmem>>, vector<8x32xf32>
    %cst_28 = arith.constant dense<0.000000e+00> : vector<8x128xf32>
    %22 = tpu.matmul %21, %13, %cst_28 {dimension_numbers = #tpu.dot_dimension_numbers<[1], [0], [0], [1], [0, 0, 1, 1], [], []>} : vector<8x32xf32>, vector<32x128xf32>, vector<8x128xf32> -> vector<8x128xf32>
    %23 = arith.addf %20, %22 : vector<8x128xf32>
    %24 = vector.extract_strided_slice %23 {offsets = [0, 0], sizes = [8, 32], strides = [1, 1]} : vector<8x128xf32> to vector<8x32xf32>
    %cst_29 = arith.constant 5.000000e-01 : f32
    %25 = vector.broadcast %cst_29 : f32 to vector<8x32xf32>
    %26 = arith.mulf %25, %24 : vector<8x32xf32>
    %27 = math.tanh %26 : vector<8x32xf32>
    %cst_30 = arith.constant 1.000000e+00 : f32
    %28 = vector.broadcast %cst_30 : f32 to vector<8x32xf32>
    %29 = arith.addf %27, %28 : vector<8x32xf32>
    %cst_31 = arith.constant 5.000000e-01 : f32
    %30 = vector.broadcast %cst_31 : f32 to vector<8x32xf32>
    %31 = arith.mulf %30, %29 : vector<8x32xf32>
    %32 = vector.extract_strided_slice %23 {offsets = [0, 32], sizes = [8, 32], strides = [1, 1]} : vector<8x128xf32> to vector<8x32xf32>
    %cst_32 = arith.constant 5.000000e-01 : f32
    %33 = vector.broadcast %cst_32 : f32 to vector<8x32xf32>
    %34 = arith.mulf %33, %32 : vector<8x32xf32>
    %35 = math.tanh %34 : vector<8x32xf32>
    %cst_33 = arith.constant 1.000000e+00 : f32
    %36 = vector.broadcast %cst_33 : f32 to vector<8x32xf32>
    %37 = arith.addf %35, %36 : vector<8x32xf32>
    %cst_34 = arith.constant 5.000000e-01 : f32
    %38 = vector.broadcast %cst_34 : f32 to vector<8x32xf32>
    %39 = arith.mulf %38, %37 : vector<8x32xf32>
    %40 = vector.extract_strided_slice %23 {offsets = [0, 64], sizes = [8, 32], strides = [1, 1]} : vector<8x128xf32> to vector<8x32xf32>
    %41 = math.tanh %40 : vector<8x32xf32>
    %42 = vector.extract_strided_slice %23 {offsets = [0, 96], sizes = [8, 32], strides = [1, 1]} : vector<8x128xf32> to vector<8x32xf32>
    %cst_35 = arith.constant 5.000000e-01 : f32
    %43 = vector.broadcast %cst_35 : f32 to vector<8x32xf32>
    %44 = arith.mulf %43, %42 : vector<8x32xf32>
    %45 = math.tanh %44 : vector<8x32xf32>
    %cst_36 = arith.constant 1.000000e+00 : f32
    %46 = vector.broadcast %cst_36 : f32 to vector<8x32xf32>
    %47 = arith.addf %45, %46 : vector<8x32xf32>
    %cst_37 = arith.constant 5.000000e-01 : f32
    %48 = vector.broadcast %cst_37 : f32 to vector<8x32xf32>
    %49 = arith.mulf %48, %47 : vector<8x32xf32>
    %c0_38 = arith.constant 0 : index
    %c0_39 = arith.constant 0 : index
    %50 = vector.load %arg21[%c0_38, %c0_39] : memref<8x32xf32, #tpu.memory_space<vmem>>, vector<8x32xf32>
    %51 = arith.mulf %39, %50 : vector<8x32xf32>
    %52 = arith.mulf %31, %41 : vector<8x32xf32>
    %53 = arith.addf %51, %52 : vector<8x32xf32>
    %54 = math.tanh %53 : vector<8x32xf32>
    %55 = arith.mulf %49, %54 : vector<8x32xf32>
    %c0_40 = arith.constant 0 : index
    %c0_41 = arith.constant 0 : index
    %56 = vector.load %arg21[%c0_40, %c0_41] : memref<8x32xf32, #tpu.memory_space<vmem>>, vector<8x32xf32>
    tpu.vector_store %arg21[%c0_40, %c0_41], %53 {strides = array<i32>} : memref<8x32xf32, #tpu.memory_space<vmem>>, vector<8x32xf32>,
    %c0_42 = arith.constant 0 : index
    %c0_43 = arith.constant 0 : index
    %57 = vector.load %arg20[%c0_42, %c0_43] : memref<8x32xf32, #tpu.memory_space<vmem>>, vector<8x32xf32>
    tpu.vector_store %arg20[%c0_42, %c0_43], %55 {strides = array<i32>} : memref<8x32xf32, #tpu.memory_space<vmem>>, vector<8x32xf32>,
    %58 = arith.index_cast %c0_i32 : i32 to index
    %c0_44 = arith.constant 0 : index
    %c0_45 = arith.constant 0 : index
    %59 = vector.load %arg18[%58, %c0_44, %c0_45] : memref<8x8x32xf32, #tpu.memory_space<vmem>>, vector<1x8x32xf32>
    %60 = vector.shape_cast %59 : vector<1x8x32xf32> to vector<8x32xf32>
    %61 = vector.shape_cast %55 : vector<8x32xf32> to vector<1x8x32xf32>
    tpu.vector_store %arg18[%58, %c0_44, %c0_45], %61 {strides = array<i32>} : memref<8x8x32xf32, #tpu.memory_space<vmem>>, vector<1x8x32xf32>,
    %c1_i32 = arith.constant 1 : i32
    %62 = arith.index_cast %c1_i32 : i32 to index
    %c0_46 = arith.constant 0 : index
    %c0_47 = arith.constant 0 : index
    %63 = vector.load %arg17[%62, %c0_46, %c0_47] : memref<8x8x128xf32, #tpu.memory_space<vmem>>, vector<1x8x128xf32>
    %64 = vector.shape_cast %63 : vector<1x8x128xf32> to vector<8x128xf32>
    %c0_48 = arith.constant 0 : index
    %c0_49 = arith.constant 0 : index
    %65 = vector.load %arg20[%c0_48, %c0_49] : memref<8x32xf32, #tpu.memory_space<vmem>>, vector<8x32xf32>
    %cst_50 = arith.constant dense<0.000000e+00> : vector<8x128xf32>
    %66 = tpu.matmul %65, %13, %cst_50 {dimension_numbers = #tpu.dot_dimension_numbers<[1], [0], [0], [1], [0, 0, 1, 1], [], []>} : vector<8x32xf32>, vector<32x128xf32>, vector<8x128xf32> -> vector<8x128xf32>
    %67 = arith.addf %64, %66 : vector<8x128xf32>
    %68 = vector.extract_strided_slice %67 {offsets = [0, 0], sizes = [8, 32], strides = [1, 1]} : vector<8x128xf32> to vector<8x32xf32>
    %cst_51 = arith.constant 5.000000e-01 : f32
    %69 = vector.broadcast %cst_51 : f32 to vector<8x32xf32>
    %70 = arith.mulf %69, %68 : vector<8x32xf32>
    %71 = math.tanh %70 : vector<8x32xf32>
    %cst_52 = arith.constant 1.000000e+00 : f32
    %72 = vector.broadcast %cst_52 : f32 to vector<8x32xf32>
    %73 = arith.addf %71, %72 : vector<8x32xf32>
    %cst_53 = arith.constant 5.000000e-01 : f32
    %74 = vector.broadcast %cst_53 : f32 to vector<8x32xf32>
    %75 = arith.mulf %74, %73 : vector<8x32xf32>
    %76 = vector.extract_strided_slice %67 {offsets = [0, 32], sizes = [8, 32], strides = [1, 1]} : vector<8x128xf32> to vector<8x32xf32>
    %cst_54 = arith.constant 5.000000e-01 : f32
    %77 = vector.broadcast %cst_54 : f32 to vector<8x32xf32>
    %78 = arith.mulf %77, %76 : vector<8x32xf32>
    %79 = math.tanh %78 : vector<8x32xf32>
    %cst_55 = arith.constant 1.000000e+00 : f32
    %80 = vector.broadcast %cst_55 : f32 to vector<8x32xf32>
    %81 = arith.addf %79, %80 : vector<8x32xf32>
    %cst_56 = arith.constant 5.000000e-01 : f32
    %82 = vector.broadcast %cst_56 : f32 to vector<8x32xf32>
    %83 = arith.mulf %82, %81 : vector<8x32xf32>
    %84 = vector.extract_strided_slice %67 {offsets = [0, 64], sizes = [8, 32], strides = [1, 1]} : vector<8x128xf32> to vector<8x32xf32>
    %85 = math.tanh %84 : vector<8x32xf32>
    %86 = vector.extract_strided_slice %67 {offsets = [0, 96], sizes = [8, 32], strides = [1, 1]} : vector<8x128xf32> to vector<8x32xf32>
    %cst_57 = arith.constant 5.000000e-01 : f32
    %87 = vector.broadcast %cst_57 : f32 to vector<8x32xf32>
    %88 = arith.mulf %87, %86 : vector<8x32xf32>
    %89 = math.tanh %88 : vector<8x32xf32>
    %cst_58 = arith.constant 1.000000e+00 : f32
    %90 = vector.broadcast %cst_58 : f32 to vector<8x32xf32>
    %91 = arith.addf %89, %90 : vector<8x32xf32>
    %cst_59 = arith.constant 5.000000e-01 : f32
    %92 = vector.broadcast %cst_59 : f32 to vector<8x32xf32>
    %93 = arith.mulf %92, %91 : vector<8x32xf32>
    %c0_60 = arith.constant 0 : index
    %c0_61 = arith.constant 0 : index
    %94 = vector.load %arg21[%c0_60, %c0_61] : memref<8x32xf32, #tpu.memory_space<vmem>>, vector<8x32xf32>
    %95 = arith.mulf %83, %94 : vector<8x32xf32>
    %96 = arith.mulf %75, %85 : vector<8x32xf32>
    %97 = arith.addf %95, %96 : vector<8x32xf32>
    %98 = math.tanh %97 : vector<8x32xf32>
    %99 = arith.mulf %93, %98 : vector<8x32xf32>
    %c0_62 = arith.constant 0 : index
    %c0_63 = arith.constant 0 : index
    %100 = vector.load %arg21[%c0_62, %c0_63] : memref<8x32xf32, #tpu.memory_space<vmem>>, vector<8x32xf32>
    tpu.vector_store %arg21[%c0_62, %c0_63], %97 {strides = array<i32>} : memref<8x32xf32, #tpu.memory_space<vmem>>, vector<8x32xf32>,
    %c0_64 = arith.constant 0 : index
    %c0_65 = arith.constant 0 : index
    %101 = vector.load %arg20[%c0_64, %c0_65] : memref<8x32xf32, #tpu.memory_space<vmem>>, vector<8x32xf32>
    tpu.vector_store %arg20[%c0_64, %c0_65], %99 {strides = array<i32>} : memref<8x32xf32, #tpu.memory_space<vmem>>, vector<8x32xf32>,
    %102 = arith.index_cast %c1_i32 : i32 to index
    %c0_66 = arith.constant 0 : index
    %c0_67 = arith.constant 0 : index
    %103 = vector.load %arg18[%102, %c0_66, %c0_67] : memref<8x8x32xf32, #tpu.memory_space<vmem>>, vector<1x8x32xf32>
    %104 = vector.shape_cast %103 : vector<1x8x32xf32> to vector<8x32xf32>
    %105 = vector.shape_cast %99 : vector<8x32xf32> to vector<1x8x32xf32>
    tpu.vector_store %arg18[%102, %c0_66, %c0_67], %105 {strides = array<i32>} : memref<8x8x32xf32, #tpu.memory_space<vmem>>, vector<1x8x32xf32>,
    %c2_i32 = arith.constant 2 : i32
    %106 = arith.index_cast %c2_i32 : i32 to index
    %c0_68 = arith.constant 0 : index
    %c0_69 = arith.constant 0 : index
    %107 = vector.load %arg17[%106, %c0_68, %c0_69] : memref<8x8x128xf32, #tpu.memory_space<vmem>>, vector<1x8x128xf32>
    %108 = vector.shape_cast %107 : vector<1x8x128xf32> to vector<8x128xf32>
    %c0_70 = arith.constant 0 : index
    %c0_71 = arith.constant 0 : index
    %109 = vector.load %arg20[%c0_70, %c0_71] : memref<8x32xf32, #tpu.memory_space<vmem>>, vector<8x32xf32>
    %cst_72 = arith.constant dense<0.000000e+00> : vector<8x128xf32>
    %110 = tpu.matmul %109, %13, %cst_72 {dimension_numbers = #tpu.dot_dimension_numbers<[1], [0], [0], [1], [0, 0, 1, 1], [], []>} : vector<8x32xf32>, vector<32x128xf32>, vector<8x128xf32> -> vector<8x128xf32>
    %111 = arith.addf %108, %110 : vector<8x128xf32>
    %112 = vector.extract_strided_slice %111 {offsets = [0, 0], sizes = [8, 32], strides = [1, 1]} : vector<8x128xf32> to vector<8x32xf32>
    %cst_73 = arith.constant 5.000000e-01 : f32
    %113 = vector.broadcast %cst_73 : f32 to vector<8x32xf32>
    %114 = arith.mulf %113, %112 : vector<8x32xf32>
    %115 = math.tanh %114 : vector<8x32xf32>
    %cst_74 = arith.constant 1.000000e+00 : f32
    %116 = vector.broadcast %cst_74 : f32 to vector<8x32xf32>
    %117 = arith.addf %115, %116 : vector<8x32xf32>
    %cst_75 = arith.constant 5.000000e-01 : f32
    %118 = vector.broadcast %cst_75 : f32 to vector<8x32xf32>
    %119 = arith.mulf %118, %117 : vector<8x32xf32>
    %120 = vector.extract_strided_slice %111 {offsets = [0, 32], sizes = [8, 32], strides = [1, 1]} : vector<8x128xf32> to vector<8x32xf32>
    %cst_76 = arith.constant 5.000000e-01 : f32
    %121 = vector.broadcast %cst_76 : f32 to vector<8x32xf32>
    %122 = arith.mulf %121, %120 : vector<8x32xf32>
    %123 = math.tanh %122 : vector<8x32xf32>
    %cst_77 = arith.constant 1.000000e+00 : f32
    %124 = vector.broadcast %cst_77 : f32 to vector<8x32xf32>
    %125 = arith.addf %123, %124 : vector<8x32xf32>
    %cst_78 = arith.constant 5.000000e-01 : f32
    %126 = vector.broadcast %cst_78 : f32 to vector<8x32xf32>
    %127 = arith.mulf %126, %125 : vector<8x32xf32>
    %128 = vector.extract_strided_slice %111 {offsets = [0, 64], sizes = [8, 32], strides = [1, 1]} : vector<8x128xf32> to vector<8x32xf32>
    %129 = math.tanh %128 : vector<8x32xf32>
    %130 = vector.extract_strided_slice %111 {offsets = [0, 96], sizes = [8, 32], strides = [1, 1]} : vector<8x128xf32> to vector<8x32xf32>
    %cst_79 = arith.constant 5.000000e-01 : f32
    %131 = vector.broadcast %cst_79 : f32 to vector<8x32xf32>
    %132 = arith.mulf %131, %130 : vector<8x32xf32>
    %133 = math.tanh %132 : vector<8x32xf32>
    %cst_80 = arith.constant 1.000000e+00 : f32
    %134 = vector.broadcast %cst_80 : f32 to vector<8x32xf32>
    %135 = arith.addf %133, %134 : vector<8x32xf32>
    %cst_81 = arith.constant 5.000000e-01 : f32
    %136 = vector.broadcast %cst_81 : f32 to vector<8x32xf32>
    %137 = arith.mulf %136, %135 : vector<8x32xf32>
    %c0_82 = arith.constant 0 : index
    %c0_83 = arith.constant 0 : index
    %138 = vector.load %arg21[%c0_82, %c0_83] : memref<8x32xf32, #tpu.memory_space<vmem>>, vector<8x32xf32>
    %139 = arith.mulf %127, %138 : vector<8x32xf32>
    %140 = arith.mulf %119, %129 : vector<8x32xf32>
    %141 = arith.addf %139, %140 : vector<8x32xf32>
    %142 = math.tanh %141 : vector<8x32xf32>
    %143 = arith.mulf %137, %142 : vector<8x32xf32>
    %c0_84 = arith.constant 0 : index
    %c0_85 = arith.constant 0 : index
    %144 = vector.load %arg21[%c0_84, %c0_85] : memref<8x32xf32, #tpu.memory_space<vmem>>, vector<8x32xf32>
    tpu.vector_store %arg21[%c0_84, %c0_85], %141 {strides = array<i32>} : memref<8x32xf32, #tpu.memory_space<vmem>>, vector<8x32xf32>,
    %c0_86 = arith.constant 0 : index
    %c0_87 = arith.constant 0 : index
    %145 = vector.load %arg20[%c0_86, %c0_87] : memref<8x32xf32, #tpu.memory_space<vmem>>, vector<8x32xf32>
    tpu.vector_store %arg20[%c0_86, %c0_87], %143 {strides = array<i32>} : memref<8x32xf32, #tpu.memory_space<vmem>>, vector<8x32xf32>,
    %146 = arith.index_cast %c2_i32 : i32 to index
    %c0_88 = arith.constant 0 : index
    %c0_89 = arith.constant 0 : index
    %147 = vector.load %arg18[%146, %c0_88, %c0_89] : memref<8x8x32xf32, #tpu.memory_space<vmem>>, vector<1x8x32xf32>
    %148 = vector.shape_cast %147 : vector<1x8x32xf32> to vector<8x32xf32>
    %149 = vector.shape_cast %143 : vector<8x32xf32> to vector<1x8x32xf32>
    tpu.vector_store %arg18[%146, %c0_88, %c0_89], %149 {strides = array<i32>} : memref<8x8x32xf32, #tpu.memory_space<vmem>>, vector<1x8x32xf32>,
    %c3_i32 = arith.constant 3 : i32
    %150 = arith.index_cast %c3_i32 : i32 to index
    %c0_90 = arith.constant 0 : index
    %c0_91 = arith.constant 0 : index
    %151 = vector.load %arg17[%150, %c0_90, %c0_91] : memref<8x8x128xf32, #tpu.memory_space<vmem>>, vector<1x8x128xf32>
    %152 = vector.shape_cast %151 : vector<1x8x128xf32> to vector<8x128xf32>
    %c0_92 = arith.constant 0 : index
    %c0_93 = arith.constant 0 : index
    %153 = vector.load %arg20[%c0_92, %c0_93] : memref<8x32xf32, #tpu.memory_space<vmem>>, vector<8x32xf32>
    %cst_94 = arith.constant dense<0.000000e+00> : vector<8x128xf32>
    %154 = tpu.matmul %153, %13, %cst_94 {dimension_numbers = #tpu.dot_dimension_numbers<[1], [0], [0], [1], [0, 0, 1, 1], [], []>} : vector<8x32xf32>, vector<32x128xf32>, vector<8x128xf32> -> vector<8x128xf32>
    %155 = arith.addf %152, %154 : vector<8x128xf32>
    %156 = vector.extract_strided_slice %155 {offsets = [0, 0], sizes = [8, 32], strides = [1, 1]} : vector<8x128xf32> to vector<8x32xf32>
    %cst_95 = arith.constant 5.000000e-01 : f32
    %157 = vector.broadcast %cst_95 : f32 to vector<8x32xf32>
    %158 = arith.mulf %157, %156 : vector<8x32xf32>
    %159 = math.tanh %158 : vector<8x32xf32>
    %cst_96 = arith.constant 1.000000e+00 : f32
    %160 = vector.broadcast %cst_96 : f32 to vector<8x32xf32>
    %161 = arith.addf %159, %160 : vector<8x32xf32>
    %cst_97 = arith.constant 5.000000e-01 : f32
    %162 = vector.broadcast %cst_97 : f32 to vector<8x32xf32>
    %163 = arith.mulf %162, %161 : vector<8x32xf32>
    %164 = vector.extract_strided_slice %155 {offsets = [0, 32], sizes = [8, 32], strides = [1, 1]} : vector<8x128xf32> to vector<8x32xf32>
    %cst_98 = arith.constant 5.000000e-01 : f32
    %165 = vector.broadcast %cst_98 : f32 to vector<8x32xf32>
    %166 = arith.mulf %165, %164 : vector<8x32xf32>
    %167 = math.tanh %166 : vector<8x32xf32>
    %cst_99 = arith.constant 1.000000e+00 : f32
    %168 = vector.broadcast %cst_99 : f32 to vector<8x32xf32>
    %169 = arith.addf %167, %168 : vector<8x32xf32>
    %cst_100 = arith.constant 5.000000e-01 : f32
    %170 = vector.broadcast %cst_100 : f32 to vector<8x32xf32>
    %171 = arith.mulf %170, %169 : vector<8x32xf32>
    %172 = vector.extract_strided_slice %155 {offsets = [0, 64], sizes = [8, 32], strides = [1, 1]} : vector<8x128xf32> to vector<8x32xf32>
    %173 = math.tanh %172 : vector<8x32xf32>
    %174 = vector.extract_strided_slice %155 {offsets = [0, 96], sizes = [8, 32], strides = [1, 1]} : vector<8x128xf32> to vector<8x32xf32>
    %cst_101 = arith.constant 5.000000e-01 : f32
    %175 = vector.broadcast %cst_101 : f32 to vector<8x32xf32>
    %176 = arith.mulf %175, %174 : vector<8x32xf32>
    %177 = math.tanh %176 : vector<8x32xf32>
    %cst_102 = arith.constant 1.000000e+00 : f32
    %178 = vector.broadcast %cst_102 : f32 to vector<8x32xf32>
    %179 = arith.addf %177, %178 : vector<8x32xf32>
    %cst_103 = arith.constant 5.000000e-01 : f32
    %180 = vector.broadcast %cst_103 : f32 to vector<8x32xf32>
    %181 = arith.mulf %180, %179 : vector<8x32xf32>
    %c0_104 = arith.constant 0 : index
    %c0_105 = arith.constant 0 : index
    %182 = vector.load %arg21[%c0_104, %c0_105] : memref<8x32xf32, #tpu.memory_space<vmem>>, vector<8x32xf32>
    %183 = arith.mulf %171, %182 : vector<8x32xf32>
    %184 = arith.mulf %163, %173 : vector<8x32xf32>
    %185 = arith.addf %183, %184 : vector<8x32xf32>
    %186 = math.tanh %185 : vector<8x32xf32>
    %187 = arith.mulf %181, %186 : vector<8x32xf32>
    %c0_106 = arith.constant 0 : index
    %c0_107 = arith.constant 0 : index
    %188 = vector.load %arg21[%c0_106, %c0_107] : memref<8x32xf32, #tpu.memory_space<vmem>>, vector<8x32xf32>
    tpu.vector_store %arg21[%c0_106, %c0_107], %185 {strides = array<i32>} : memref<8x32xf32, #tpu.memory_space<vmem>>, vector<8x32xf32>,
    %c0_108 = arith.constant 0 : index
    %c0_109 = arith.constant 0 : index
    %189 = vector.load %arg20[%c0_108, %c0_109] : memref<8x32xf32, #tpu.memory_space<vmem>>, vector<8x32xf32>
    tpu.vector_store %arg20[%c0_108, %c0_109], %187 {strides = array<i32>} : memref<8x32xf32, #tpu.memory_space<vmem>>, vector<8x32xf32>,
    %190 = arith.index_cast %c3_i32 : i32 to index
    %c0_110 = arith.constant 0 : index
    %c0_111 = arith.constant 0 : index
    %191 = vector.load %arg18[%190, %c0_110, %c0_111] : memref<8x8x32xf32, #tpu.memory_space<vmem>>, vector<1x8x32xf32>
    %192 = vector.shape_cast %191 : vector<1x8x32xf32> to vector<8x32xf32>
    %193 = vector.shape_cast %187 : vector<8x32xf32> to vector<1x8x32xf32>
    tpu.vector_store %arg18[%190, %c0_110, %c0_111], %193 {strides = array<i32>} : memref<8x8x32xf32, #tpu.memory_space<vmem>>, vector<1x8x32xf32>,
    %c4_i32 = arith.constant 4 : i32
    %194 = arith.index_cast %c4_i32 : i32 to index
    %c0_112 = arith.constant 0 : index
    %c0_113 = arith.constant 0 : index
    %195 = vector.load %arg17[%194, %c0_112, %c0_113] : memref<8x8x128xf32, #tpu.memory_space<vmem>>, vector<1x8x128xf32>
    %196 = vector.shape_cast %195 : vector<1x8x128xf32> to vector<8x128xf32>
    %c0_114 = arith.constant 0 : index
    %c0_115 = arith.constant 0 : index
    %197 = vector.load %arg20[%c0_114, %c0_115] : memref<8x32xf32, #tpu.memory_space<vmem>>, vector<8x32xf32>
    %cst_116 = arith.constant dense<0.000000e+00> : vector<8x128xf32>
    %198 = tpu.matmul %197, %13, %cst_116 {dimension_numbers = #tpu.dot_dimension_numbers<[1], [0], [0], [1], [0, 0, 1, 1], [], []>} : vector<8x32xf32>, vector<32x128xf32>, vector<8x128xf32> -> vector<8x128xf32>
    %199 = arith.addf %196, %198 : vector<8x128xf32>
    %200 = vector.extract_strided_slice %199 {offsets = [0, 0], sizes = [8, 32], strides = [1, 1]} : vector<8x128xf32> to vector<8x32xf32>
    %cst_117 = arith.constant 5.000000e-01 : f32
    %201 = vector.broadcast %cst_117 : f32 to vector<8x32xf32>
    %202 = arith.mulf %201, %200 : vector<8x32xf32>
    %203 = math.tanh %202 : vector<8x32xf32>
    %cst_118 = arith.constant 1.000000e+00 : f32
    %204 = vector.broadcast %cst_118 : f32 to vector<8x32xf32>
    %205 = arith.addf %203, %204 : vector<8x32xf32>
    %cst_119 = arith.constant 5.000000e-01 : f32
    %206 = vector.broadcast %cst_119 : f32 to vector<8x32xf32>
    %207 = arith.mulf %206, %205 : vector<8x32xf32>
    %208 = vector.extract_strided_slice %199 {offsets = [0, 32], sizes = [8, 32], strides = [1, 1]} : vector<8x128xf32> to vector<8x32xf32>
    %cst_120 = arith.constant 5.000000e-01 : f32
    %209 = vector.broadcast %cst_120 : f32 to vector<8x32xf32>
    %210 = arith.mulf %209, %208 : vector<8x32xf32>
    %211 = math.tanh %210 : vector<8x32xf32>
    %cst_121 = arith.constant 1.000000e+00 : f32
    %212 = vector.broadcast %cst_121 : f32 to vector<8x32xf32>
    %213 = arith.addf %211, %212 : vector<8x32xf32>
    %cst_122 = arith.constant 5.000000e-01 : f32
    %214 = vector.broadcast %cst_122 : f32 to vector<8x32xf32>
    %215 = arith.mulf %214, %213 : vector<8x32xf32>
    %216 = vector.extract_strided_slice %199 {offsets = [0, 64], sizes = [8, 32], strides = [1, 1]} : vector<8x128xf32> to vector<8x32xf32>
    %217 = math.tanh %216 : vector<8x32xf32>
    %218 = vector.extract_strided_slice %199 {offsets = [0, 96], sizes = [8, 32], strides = [1, 1]} : vector<8x128xf32> to vector<8x32xf32>
    %cst_123 = arith.constant 5.000000e-01 : f32
    %219 = vector.broadcast %cst_123 : f32 to vector<8x32xf32>
    %220 = arith.mulf %219, %218 : vector<8x32xf32>
    %221 = math.tanh %220 : vector<8x32xf32>
    %cst_124 = arith.constant 1.000000e+00 : f32
    %222 = vector.broadcast %cst_124 : f32 to vector<8x32xf32>
    %223 = arith.addf %221, %222 : vector<8x32xf32>
    %cst_125 = arith.constant 5.000000e-01 : f32
    %224 = vector.broadcast %cst_125 : f32 to vector<8x32xf32>
    %225 = arith.mulf %224, %223 : vector<8x32xf32>
    %c0_126 = arith.constant 0 : index
    %c0_127 = arith.constant 0 : index
    %226 = vector.load %arg21[%c0_126, %c0_127] : memref<8x32xf32, #tpu.memory_space<vmem>>, vector<8x32xf32>
    %227 = arith.mulf %215, %226 : vector<8x32xf32>
    %228 = arith.mulf %207, %217 : vector<8x32xf32>
    %229 = arith.addf %227, %228 : vector<8x32xf32>
    %230 = math.tanh %229 : vector<8x32xf32>
    %231 = arith.mulf %225, %230 : vector<8x32xf32>
    %c0_128 = arith.constant 0 : index
    %c0_129 = arith.constant 0 : index
    %232 = vector.load %arg21[%c0_128, %c0_129] : memref<8x32xf32, #tpu.memory_space<vmem>>, vector<8x32xf32>
    tpu.vector_store %arg21[%c0_128, %c0_129], %229 {strides = array<i32>} : memref<8x32xf32, #tpu.memory_space<vmem>>, vector<8x32xf32>,
    %c0_130 = arith.constant 0 : index
    %c0_131 = arith.constant 0 : index
    %233 = vector.load %arg20[%c0_130, %c0_131] : memref<8x32xf32, #tpu.memory_space<vmem>>, vector<8x32xf32>
    tpu.vector_store %arg20[%c0_130, %c0_131], %231 {strides = array<i32>} : memref<8x32xf32, #tpu.memory_space<vmem>>, vector<8x32xf32>,
    %234 = arith.index_cast %c4_i32 : i32 to index
    %c0_132 = arith.constant 0 : index
    %c0_133 = arith.constant 0 : index
    %235 = vector.load %arg18[%234, %c0_132, %c0_133] : memref<8x8x32xf32, #tpu.memory_space<vmem>>, vector<1x8x32xf32>
    %236 = vector.shape_cast %235 : vector<1x8x32xf32> to vector<8x32xf32>
    %237 = vector.shape_cast %231 : vector<8x32xf32> to vector<1x8x32xf32>
    tpu.vector_store %arg18[%234, %c0_132, %c0_133], %237 {strides = array<i32>} : memref<8x8x32xf32, #tpu.memory_space<vmem>>, vector<1x8x32xf32>,
    %c5_i32 = arith.constant 5 : i32
    %238 = arith.index_cast %c5_i32 : i32 to index
    %c0_134 = arith.constant 0 : index
    %c0_135 = arith.constant 0 : index
    %239 = vector.load %arg17[%238, %c0_134, %c0_135] : memref<8x8x128xf32, #tpu.memory_space<vmem>>, vector<1x8x128xf32>
    %240 = vector.shape_cast %239 : vector<1x8x128xf32> to vector<8x128xf32>
    %c0_136 = arith.constant 0 : index
    %c0_137 = arith.constant 0 : index
    %241 = vector.load %arg20[%c0_136, %c0_137] : memref<8x32xf32, #tpu.memory_space<vmem>>, vector<8x32xf32>
    %cst_138 = arith.constant dense<0.000000e+00> : vector<8x128xf32>
    %242 = tpu.matmul %241, %13, %cst_138 {dimension_numbers = #tpu.dot_dimension_numbers<[1], [0], [0], [1], [0, 0, 1, 1], [], []>} : vector<8x32xf32>, vector<32x128xf32>, vector<8x128xf32> -> vector<8x128xf32>
    %243 = arith.addf %240, %242 : vector<8x128xf32>
    %244 = vector.extract_strided_slice %243 {offsets = [0, 0], sizes = [8, 32], strides = [1, 1]} : vector<8x128xf32> to vector<8x32xf32>
    %cst_139 = arith.constant 5.000000e-01 : f32
    %245 = vector.broadcast %cst_139 : f32 to vector<8x32xf32>
    %246 = arith.mulf %245, %244 : vector<8x32xf32>
    %247 = math.tanh %246 : vector<8x32xf32>
    %cst_140 = arith.constant 1.000000e+00 : f32
    %248 = vector.broadcast %cst_140 : f32 to vector<8x32xf32>
    %249 = arith.addf %247, %248 : vector<8x32xf32>
    %cst_141 = arith.constant 5.000000e-01 : f32
    %250 = vector.broadcast %cst_141 : f32 to vector<8x32xf32>
    %251 = arith.mulf %250, %249 : vector<8x32xf32>
    %252 = vector.extract_strided_slice %243 {offsets = [0, 32], sizes = [8, 32], strides = [1, 1]} : vector<8x128xf32> to vector<8x32xf32>
    %cst_142 = arith.constant 5.000000e-01 : f32
    %253 = vector.broadcast %cst_142 : f32 to vector<8x32xf32>
    %254 = arith.mulf %253, %252 : vector<8x32xf32>
    %255 = math.tanh %254 : vector<8x32xf32>
    %cst_143 = arith.constant 1.000000e+00 : f32
    %256 = vector.broadcast %cst_143 : f32 to vector<8x32xf32>
    %257 = arith.addf %255, %256 : vector<8x32xf32>
    %cst_144 = arith.constant 5.000000e-01 : f32
    %258 = vector.broadcast %cst_144 : f32 to vector<8x32xf32>
    %259 = arith.mulf %258, %257 : vector<8x32xf32>
    %260 = vector.extract_strided_slice %243 {offsets = [0, 64], sizes = [8, 32], strides = [1, 1]} : vector<8x128xf32> to vector<8x32xf32>
    %261 = math.tanh %260 : vector<8x32xf32>
    %262 = vector.extract_strided_slice %243 {offsets = [0, 96], sizes = [8, 32], strides = [1, 1]} : vector<8x128xf32> to vector<8x32xf32>
    %cst_145 = arith.constant 5.000000e-01 : f32
    %263 = vector.broadcast %cst_145 : f32 to vector<8x32xf32>
    %264 = arith.mulf %263, %262 : vector<8x32xf32>
    %265 = math.tanh %264 : vector<8x32xf32>
    %cst_146 = arith.constant 1.000000e+00 : f32
    %266 = vector.broadcast %cst_146 : f32 to vector<8x32xf32>
    %267 = arith.addf %265, %266 : vector<8x32xf32>
    %cst_147 = arith.constant 5.000000e-01 : f32
    %268 = vector.broadcast %cst_147 : f32 to vector<8x32xf32>
    %269 = arith.mulf %268, %267 : vector<8x32xf32>
    %c0_148 = arith.constant 0 : index
    %c0_149 = arith.constant 0 : index
    %270 = vector.load %arg21[%c0_148, %c0_149] : memref<8x32xf32, #tpu.memory_space<vmem>>, vector<8x32xf32>
    %271 = arith.mulf %259, %270 : vector<8x32xf32>
    %272 = arith.mulf %251, %261 : vector<8x32xf32>
    %273 = arith.addf %271, %272 : vector<8x32xf32>
    %274 = math.tanh %273 : vector<8x32xf32>
    %275 = arith.mulf %269, %274 : vector<8x32xf32>
    %c0_150 = arith.constant 0 : index
    %c0_151 = arith.constant 0 : index
    %276 = vector.load %arg21[%c0_150, %c0_151] : memref<8x32xf32, #tpu.memory_space<vmem>>, vector<8x32xf32>
    tpu.vector_store %arg21[%c0_150, %c0_151], %273 {strides = array<i32>} : memref<8x32xf32, #tpu.memory_space<vmem>>, vector<8x32xf32>,
    %c0_152 = arith.constant 0 : index
    %c0_153 = arith.constant 0 : index
    %277 = vector.load %arg20[%c0_152, %c0_153] : memref<8x32xf32, #tpu.memory_space<vmem>>, vector<8x32xf32>
    tpu.vector_store %arg20[%c0_152, %c0_153], %275 {strides = array<i32>} : memref<8x32xf32, #tpu.memory_space<vmem>>, vector<8x32xf32>,
    %278 = arith.index_cast %c5_i32 : i32 to index
    %c0_154 = arith.constant 0 : index
    %c0_155 = arith.constant 0 : index
    %279 = vector.load %arg18[%278, %c0_154, %c0_155] : memref<8x8x32xf32, #tpu.memory_space<vmem>>, vector<1x8x32xf32>
    %280 = vector.shape_cast %279 : vector<1x8x32xf32> to vector<8x32xf32>
    %281 = vector.shape_cast %275 : vector<8x32xf32> to vector<1x8x32xf32>
    tpu.vector_store %arg18[%278, %c0_154, %c0_155], %281 {strides = array<i32>} : memref<8x8x32xf32, #tpu.memory_space<vmem>>, vector<1x8x32xf32>,
    %c6_i32 = arith.constant 6 : i32
    %282 = arith.index_cast %c6_i32 : i32 to index
    %c0_156 = arith.constant 0 : index
    %c0_157 = arith.constant 0 : index
    %283 = vector.load %arg17[%282, %c0_156, %c0_157] : memref<8x8x128xf32, #tpu.memory_space<vmem>>, vector<1x8x128xf32>
    %284 = vector.shape_cast %283 : vector<1x8x128xf32> to vector<8x128xf32>
    %c0_158 = arith.constant 0 : index
    %c0_159 = arith.constant 0 : index
    %285 = vector.load %arg20[%c0_158, %c0_159] : memref<8x32xf32, #tpu.memory_space<vmem>>, vector<8x32xf32>
    %cst_160 = arith.constant dense<0.000000e+00> : vector<8x128xf32>
    %286 = tpu.matmul %285, %13, %cst_160 {dimension_numbers = #tpu.dot_dimension_numbers<[1], [0], [0], [1], [0, 0, 1, 1], [], []>} : vector<8x32xf32>, vector<32x128xf32>, vector<8x128xf32> -> vector<8x128xf32>
    %287 = arith.addf %284, %286 : vector<8x128xf32>
    %288 = vector.extract_strided_slice %287 {offsets = [0, 0], sizes = [8, 32], strides = [1, 1]} : vector<8x128xf32> to vector<8x32xf32>
    %cst_161 = arith.constant 5.000000e-01 : f32
    %289 = vector.broadcast %cst_161 : f32 to vector<8x32xf32>
    %290 = arith.mulf %289, %288 : vector<8x32xf32>
    %291 = math.tanh %290 : vector<8x32xf32>
    %cst_162 = arith.constant 1.000000e+00 : f32
    %292 = vector.broadcast %cst_162 : f32 to vector<8x32xf32>
    %293 = arith.addf %291, %292 : vector<8x32xf32>
    %cst_163 = arith.constant 5.000000e-01 : f32
    %294 = vector.broadcast %cst_163 : f32 to vector<8x32xf32>
    %295 = arith.mulf %294, %293 : vector<8x32xf32>
    %296 = vector.extract_strided_slice %287 {offsets = [0, 32], sizes = [8, 32], strides = [1, 1]} : vector<8x128xf32> to vector<8x32xf32>
    %cst_164 = arith.constant 5.000000e-01 : f32
    %297 = vector.broadcast %cst_164 : f32 to vector<8x32xf32>
    %298 = arith.mulf %297, %296 : vector<8x32xf32>
    %299 = math.tanh %298 : vector<8x32xf32>
    %cst_165 = arith.constant 1.000000e+00 : f32
    %300 = vector.broadcast %cst_165 : f32 to vector<8x32xf32>
    %301 = arith.addf %299, %300 : vector<8x32xf32>
    %cst_166 = arith.constant 5.000000e-01 : f32
    %302 = vector.broadcast %cst_166 : f32 to vector<8x32xf32>
    %303 = arith.mulf %302, %301 : vector<8x32xf32>
    %304 = vector.extract_strided_slice %287 {offsets = [0, 64], sizes = [8, 32], strides = [1, 1]} : vector<8x128xf32> to vector<8x32xf32>
    %305 = math.tanh %304 : vector<8x32xf32>
    %306 = vector.extract_strided_slice %287 {offsets = [0, 96], sizes = [8, 32], strides = [1, 1]} : vector<8x128xf32> to vector<8x32xf32>
    %cst_167 = arith.constant 5.000000e-01 : f32
    %307 = vector.broadcast %cst_167 : f32 to vector<8x32xf32>
    %308 = arith.mulf %307, %306 : vector<8x32xf32>
    %309 = math.tanh %308 : vector<8x32xf32>
    %cst_168 = arith.constant 1.000000e+00 : f32
    %310 = vector.broadcast %cst_168 : f32 to vector<8x32xf32>
    %311 = arith.addf %309, %310 : vector<8x32xf32>
    %cst_169 = arith.constant 5.000000e-01 : f32
    %312 = vector.broadcast %cst_169 : f32 to vector<8x32xf32>
    %313 = arith.mulf %312, %311 : vector<8x32xf32>
    %c0_170 = arith.constant 0 : index
    %c0_171 = arith.constant 0 : index
    %314 = vector.load %arg21[%c0_170, %c0_171] : memref<8x32xf32, #tpu.memory_space<vmem>>, vector<8x32xf32>
    %315 = arith.mulf %303, %314 : vector<8x32xf32>
    %316 = arith.mulf %295, %305 : vector<8x32xf32>
    %317 = arith.addf %315, %316 : vector<8x32xf32>
    %318 = math.tanh %317 : vector<8x32xf32>
    %319 = arith.mulf %313, %318 : vector<8x32xf32>
    %c0_172 = arith.constant 0 : index
    %c0_173 = arith.constant 0 : index
    %320 = vector.load %arg21[%c0_172, %c0_173] : memref<8x32xf32, #tpu.memory_space<vmem>>, vector<8x32xf32>
    tpu.vector_store %arg21[%c0_172, %c0_173], %317 {strides = array<i32>} : memref<8x32xf32, #tpu.memory_space<vmem>>, vector<8x32xf32>,
    %c0_174 = arith.constant 0 : index
    %c0_175 = arith.constant 0 : index
    %321 = vector.load %arg20[%c0_174, %c0_175] : memref<8x32xf32, #tpu.memory_space<vmem>>, vector<8x32xf32>
    tpu.vector_store %arg20[%c0_174, %c0_175], %319 {strides = array<i32>} : memref<8x32xf32, #tpu.memory_space<vmem>>, vector<8x32xf32>,
    %322 = arith.index_cast %c6_i32 : i32 to index
    %c0_176 = arith.constant 0 : index
    %c0_177 = arith.constant 0 : index
    %323 = vector.load %arg18[%322, %c0_176, %c0_177] : memref<8x8x32xf32, #tpu.memory_space<vmem>>, vector<1x8x32xf32>
    %324 = vector.shape_cast %323 : vector<1x8x32xf32> to vector<8x32xf32>
    %325 = vector.shape_cast %319 : vector<8x32xf32> to vector<1x8x32xf32>
    tpu.vector_store %arg18[%322, %c0_176, %c0_177], %325 {strides = array<i32>} : memref<8x8x32xf32, #tpu.memory_space<vmem>>, vector<1x8x32xf32>,
    %c7_i32 = arith.constant 7 : i32
    %326 = arith.index_cast %c7_i32 : i32 to index
    %c0_178 = arith.constant 0 : index
    %c0_179 = arith.constant 0 : index
    %327 = vector.load %arg17[%326, %c0_178, %c0_179] : memref<8x8x128xf32, #tpu.memory_space<vmem>>, vector<1x8x128xf32>
    %328 = vector.shape_cast %327 : vector<1x8x128xf32> to vector<8x128xf32>
    %c0_180 = arith.constant 0 : index
    %c0_181 = arith.constant 0 : index
    %329 = vector.load %arg20[%c0_180, %c0_181] : memref<8x32xf32, #tpu.memory_space<vmem>>, vector<8x32xf32>
    %cst_182 = arith.constant dense<0.000000e+00> : vector<8x128xf32>
    %330 = tpu.matmul %329, %13, %cst_182 {dimension_numbers = #tpu.dot_dimension_numbers<[1], [0], [0], [1], [0, 0, 1, 1], [], []>} : vector<8x32xf32>, vector<32x128xf32>, vector<8x128xf32> -> vector<8x128xf32>
    %331 = arith.addf %328, %330 : vector<8x128xf32>
    %332 = vector.extract_strided_slice %331 {offsets = [0, 0], sizes = [8, 32], strides = [1, 1]} : vector<8x128xf32> to vector<8x32xf32>
    %cst_183 = arith.constant 5.000000e-01 : f32
    %333 = vector.broadcast %cst_183 : f32 to vector<8x32xf32>
    %334 = arith.mulf %333, %332 : vector<8x32xf32>
    %335 = math.tanh %334 : vector<8x32xf32>
    %cst_184 = arith.constant 1.000000e+00 : f32
    %336 = vector.broadcast %cst_184 : f32 to vector<8x32xf32>
    %337 = arith.addf %335, %336 : vector<8x32xf32>
    %cst_185 = arith.constant 5.000000e-01 : f32
    %338 = vector.broadcast %cst_185 : f32 to vector<8x32xf32>
    %339 = arith.mulf %338, %337 : vector<8x32xf32>
    %340 = vector.extract_strided_slice %331 {offsets = [0, 32], sizes = [8, 32], strides = [1, 1]} : vector<8x128xf32> to vector<8x32xf32>
    %cst_186 = arith.constant 5.000000e-01 : f32
    %341 = vector.broadcast %cst_186 : f32 to vector<8x32xf32>
    %342 = arith.mulf %341, %340 : vector<8x32xf32>
    %343 = math.tanh %342 : vector<8x32xf32>
    %cst_187 = arith.constant 1.000000e+00 : f32
    %344 = vector.broadcast %cst_187 : f32 to vector<8x32xf32>
    %345 = arith.addf %343, %344 : vector<8x32xf32>
    %cst_188 = arith.constant 5.000000e-01 : f32
    %346 = vector.broadcast %cst_188 : f32 to vector<8x32xf32>
    %347 = arith.mulf %346, %345 : vector<8x32xf32>
    %348 = vector.extract_strided_slice %331 {offsets = [0, 64], sizes = [8, 32], strides = [1, 1]} : vector<8x128xf32> to vector<8x32xf32>
    %349 = math.tanh %348 : vector<8x32xf32>
    %350 = vector.extract_strided_slice %331 {offsets = [0, 96], sizes = [8, 32], strides = [1, 1]} : vector<8x128xf32> to vector<8x32xf32>
    %cst_189 = arith.constant 5.000000e-01 : f32
    %351 = vector.broadcast %cst_189 : f32 to vector<8x32xf32>
    %352 = arith.mulf %351, %350 : vector<8x32xf32>
    %353 = math.tanh %352 : vector<8x32xf32>
    %cst_190 = arith.constant 1.000000e+00 : f32
    %354 = vector.broadcast %cst_190 : f32 to vector<8x32xf32>
    %355 = arith.addf %353, %354 : vector<8x32xf32>
    %cst_191 = arith.constant 5.000000e-01 : f32
    %356 = vector.broadcast %cst_191 : f32 to vector<8x32xf32>
    %357 = arith.mulf %356, %355 : vector<8x32xf32>
    %c0_192 = arith.constant 0 : index
    %c0_193 = arith.constant 0 : index
    %358 = vector.load %arg21[%c0_192, %c0_193] : memref<8x32xf32, #tpu.memory_space<vmem>>, vector<8x32xf32>
    %359 = arith.mulf %347, %358 : vector<8x32xf32>
    %360 = arith.mulf %339, %349 : vector<8x32xf32>
    %361 = arith.addf %359, %360 : vector<8x32xf32>
    %362 = math.tanh %361 : vector<8x32xf32>
    %363 = arith.mulf %357, %362 : vector<8x32xf32>
    %c0_194 = arith.constant 0 : index
    %c0_195 = arith.constant 0 : index
    %364 = vector.load %arg21[%c0_194, %c0_195] : memref<8x32xf32, #tpu.memory_space<vmem>>, vector<8x32xf32>
    tpu.vector_store %arg21[%c0_194, %c0_195], %361 {strides = array<i32>} : memref<8x32xf32, #tpu.memory_space<vmem>>, vector<8x32xf32>,
    %c0_196 = arith.constant 0 : index
    %c0_197 = arith.constant 0 : index
    %365 = vector.load %arg20[%c0_196, %c0_197] : memref<8x32xf32, #tpu.memory_space<vmem>>, vector<8x32xf32>
    tpu.vector_store %arg20[%c0_196, %c0_197], %363 {strides = array<i32>} : memref<8x32xf32, #tpu.memory_space<vmem>>, vector<8x32xf32>,
    %366 = arith.index_cast %c7_i32 : i32 to index
    %c0_198 = arith.constant 0 : index
    %c0_199 = arith.constant 0 : index
    %367 = vector.load %arg18[%366, %c0_198, %c0_199] : memref<8x8x32xf32, #tpu.memory_space<vmem>>, vector<1x8x32xf32>
    %368 = vector.shape_cast %367 : vector<1x8x32xf32> to vector<8x32xf32>
    %369 = vector.shape_cast %363 : vector<8x32xf32> to vector<1x8x32xf32>
    tpu.vector_store %arg18[%366, %c0_198, %c0_199], %369 {strides = array<i32>} : memref<8x8x32xf32, #tpu.memory_space<vmem>>, vector<1x8x32xf32>,
    %c8_i32 = arith.constant 8 : i32
    %c0_200 = arith.constant 0 : index
    %c0_201 = arith.constant 0 : index
    %c0_202 = arith.constant 0 : index
    %370 = vector.load %arg18[%c0_200, %c0_201, %c0_202] : memref<8x8x32xf32, #tpu.memory_space<vmem>>, vector<8x8x32xf32>
    %371 = vector.shape_cast %370 : vector<8x8x32xf32> to vector<64x32xf32>
    %c0_203 = arith.constant 0 : index
    %c0_204 = arith.constant 0 : index
    %c0_205 = arith.constant 0 : index
    %c0_206 = arith.constant 0 : index
    %372 = vector.load %arg5[%c0_203, %c0_204, %c0_205, %c0_206] : memref<1x1x32x128xf32, #tpu.memory_space<vmem>>, vector<1x1x32x128xf32>
    %373 = vector.shape_cast %372 : vector<1x1x32x128xf32> to vector<32x128xf32>
    %cst_207 = arith.constant dense<0.000000e+00> : vector<64x128xf32>
    %374 = tpu.matmul %371, %373, %cst_207 {dimension_numbers = #tpu.dot_dimension_numbers<[1], [0], [0], [1], [0, 0, 1, 1], [], []>} : vector<64x32xf32>, vector<32x128xf32>, vector<64x128xf32> -> vector<64x128xf32>
    %c0_208 = arith.constant 0 : index
    %c0_209 = arith.constant 0 : index
    %c0_210 = arith.constant 0 : index
    %c0_211 = arith.constant 0 : index
    %375 = vector.load %arg7[%c0_208, %c0_209, %c0_210, %c0_211] : memref<1x1x1x128xf32, #tpu.memory_space<vmem>>, vector<1x1x1x128xf32>
    %376 = vector.shape_cast %375 : vector<1x1x1x128xf32> to vector<1x128xf32>
    %377 = vector.broadcast %376 : vector<1x128xf32> to vector<64x128xf32>
    %378 = arith.addf %374, %377 : vector<64x128xf32>
    %379 = vector.shape_cast %378 : vector<64x128xf32> to vector<8x8x128xf32>
    %c0_212 = arith.constant 0 : index
    %c0_213 = arith.constant 0 : index
    %c0_214 = arith.constant 0 : index
    %380 = vector.load %arg17[%c0_212, %c0_213, %c0_214] : memref<8x8x128xf32, #tpu.memory_space<vmem>>, vector<8x8x128xf32>
    tpu.vector_store %arg17[%c0_212, %c0_213, %c0_214], %379 {strides = array<i32>} : memref<8x8x128xf32, #tpu.memory_space<vmem>>, vector<8x8x128xf32>,
    %c0_215 = arith.constant 0 : index
    %c0_216 = arith.constant 0 : index
    %c0_217 = arith.constant 0 : index
    %c0_218 = arith.constant 0 : index
    %381 = vector.load %arg6[%c0_215, %c0_216, %c0_217, %c0_218] : memref<1x1x32x128xf32, #tpu.memory_space<vmem>>, vector<1x1x32x128xf32>
    %382 = vector.shape_cast %381 : vector<1x1x32x128xf32> to vector<32x128xf32>
    %cst_219 = arith.constant 0.000000e+00 : f32
    %383 = vector.broadcast %cst_219 : f32 to vector<8x32xf32>
    %c0_220 = arith.constant 0 : index
    %c0_221 = arith.constant 0 : index
    %384 = vector.load %arg20[%c0_220, %c0_221] : memref<8x32xf32, #tpu.memory_space<vmem>>, vector<8x32xf32>
    tpu.vector_store %arg20[%c0_220, %c0_221], %383 {strides = array<i32>} : memref<8x32xf32, #tpu.memory_space<vmem>>, vector<8x32xf32>,
    %cst_222 = arith.constant 0.000000e+00 : f32
    %385 = vector.broadcast %cst_222 : f32 to vector<8x32xf32>
    %c0_223 = arith.constant 0 : index
    %c0_224 = arith.constant 0 : index
    %386 = vector.load %arg21[%c0_223, %c0_224] : memref<8x32xf32, #tpu.memory_space<vmem>>, vector<8x32xf32>
    tpu.vector_store %arg21[%c0_223, %c0_224], %385 {strides = array<i32>} : memref<8x32xf32, #tpu.memory_space<vmem>>, vector<8x32xf32>,
    %c0_i32_225 = arith.constant 0 : i32
    %387 = arith.index_cast %c0_i32_225 : i32 to index
    %c0_226 = arith.constant 0 : index
    %c0_227 = arith.constant 0 : index
    %388 = vector.load %arg17[%387, %c0_226, %c0_227] : memref<8x8x128xf32, #tpu.memory_space<vmem>>, vector<1x8x128xf32>
    %389 = vector.shape_cast %388 : vector<1x8x128xf32> to vector<8x128xf32>
    %c0_228 = arith.constant 0 : index
    %c0_229 = arith.constant 0 : index
    %390 = vector.load %arg20[%c0_228, %c0_229] : memref<8x32xf32, #tpu.memory_space<vmem>>, vector<8x32xf32>
    %cst_230 = arith.constant dense<0.000000e+00> : vector<8x128xf32>
    %391 = tpu.matmul %390, %382, %cst_230 {dimension_numbers = #tpu.dot_dimension_numbers<[1], [0], [0], [1], [0, 0, 1, 1], [], []>} : vector<8x32xf32>, vector<32x128xf32>, vector<8x128xf32> -> vector<8x128xf32>
    %392 = arith.addf %389, %391 : vector<8x128xf32>
    %393 = vector.extract_strided_slice %392 {offsets = [0, 0], sizes = [8, 32], strides = [1, 1]} : vector<8x128xf32> to vector<8x32xf32>
    %cst_231 = arith.constant 5.000000e-01 : f32
    %394 = vector.broadcast %cst_231 : f32 to vector<8x32xf32>
    %395 = arith.mulf %394, %393 : vector<8x32xf32>
    %396 = math.tanh %395 : vector<8x32xf32>
    %cst_232 = arith.constant 1.000000e+00 : f32
    %397 = vector.broadcast %cst_232 : f32 to vector<8x32xf32>
    %398 = arith.addf %396, %397 : vector<8x32xf32>
    %cst_233 = arith.constant 5.000000e-01 : f32
    %399 = vector.broadcast %cst_233 : f32 to vector<8x32xf32>
    %400 = arith.mulf %399, %398 : vector<8x32xf32>
    %401 = vector.extract_strided_slice %392 {offsets = [0, 32], sizes = [8, 32], strides = [1, 1]} : vector<8x128xf32> to vector<8x32xf32>
    %cst_234 = arith.constant 5.000000e-01 : f32
    %402 = vector.broadcast %cst_234 : f32 to vector<8x32xf32>
    %403 = arith.mulf %402, %401 : vector<8x32xf32>
    %404 = math.tanh %403 : vector<8x32xf32>
    %cst_235 = arith.constant 1.000000e+00 : f32
    %405 = vector.broadcast %cst_235 : f32 to vector<8x32xf32>
    %406 = arith.addf %404, %405 : vector<8x32xf32>
    %cst_236 = arith.constant 5.000000e-01 : f32
    %407 = vector.broadcast %cst_236 : f32 to vector<8x32xf32>
    %408 = arith.mulf %407, %406 : vector<8x32xf32>
    %409 = vector.extract_strided_slice %392 {offsets = [0, 64], sizes = [8, 32], strides = [1, 1]} : vector<8x128xf32> to vector<8x32xf32>
    %410 = math.tanh %409 : vector<8x32xf32>
    %411 = vector.extract_strided_slice %392 {offsets = [0, 96], sizes = [8, 32], strides = [1, 1]} : vector<8x128xf32> to vector<8x32xf32>
    %cst_237 = arith.constant 5.000000e-01 : f32
    %412 = vector.broadcast %cst_237 : f32 to vector<8x32xf32>
    %413 = arith.mulf %412, %411 : vector<8x32xf32>
    %414 = math.tanh %413 : vector<8x32xf32>
    %cst_238 = arith.constant 1.000000e+00 : f32
    %415 = vector.broadcast %cst_238 : f32 to vector<8x32xf32>
    %416 = arith.addf %414, %415 : vector<8x32xf32>
    %cst_239 = arith.constant 5.000000e-01 : f32
    %417 = vector.broadcast %cst_239 : f32 to vector<8x32xf32>
    %418 = arith.mulf %417, %416 : vector<8x32xf32>
    %c0_240 = arith.constant 0 : index
    %c0_241 = arith.constant 0 : index
    %419 = vector.load %arg21[%c0_240, %c0_241] : memref<8x32xf32, #tpu.memory_space<vmem>>, vector<8x32xf32>
    %420 = arith.mulf %408, %419 : vector<8x32xf32>
    %421 = arith.mulf %400, %410 : vector<8x32xf32>
    %422 = arith.addf %420, %421 : vector<8x32xf32>
    %423 = math.tanh %422 : vector<8x32xf32>
    %424 = arith.mulf %418, %423 : vector<8x32xf32>
    %c0_242 = arith.constant 0 : index
    %c0_243 = arith.constant 0 : index
    %425 = vector.load %arg21[%c0_242, %c0_243] : memref<8x32xf32, #tpu.memory_space<vmem>>, vector<8x32xf32>
    tpu.vector_store %arg21[%c0_242, %c0_243], %422 {strides = array<i32>} : memref<8x32xf32, #tpu.memory_space<vmem>>, vector<8x32xf32>,
    %c0_244 = arith.constant 0 : index
    %c0_245 = arith.constant 0 : index
    %426 = vector.load %arg20[%c0_244, %c0_245] : memref<8x32xf32, #tpu.memory_space<vmem>>, vector<8x32xf32>
    tpu.vector_store %arg20[%c0_244, %c0_245], %424 {strides = array<i32>} : memref<8x32xf32, #tpu.memory_space<vmem>>, vector<8x32xf32>,
    %427 = arith.index_cast %c0_i32_225 : i32 to index
    %c0_246 = arith.constant 0 : index
    %c0_247 = arith.constant 0 : index
    %428 = vector.load %arg19[%427, %c0_246, %c0_247] : memref<8x8x32xf32, #tpu.memory_space<vmem>>, vector<1x8x32xf32>
    %429 = vector.shape_cast %428 : vector<1x8x32xf32> to vector<8x32xf32>
    %430 = vector.shape_cast %424 : vector<8x32xf32> to vector<1x8x32xf32>
    tpu.vector_store %arg19[%427, %c0_246, %c0_247], %430 {strides = array<i32>} : memref<8x8x32xf32, #tpu.memory_space<vmem>>, vector<1x8x32xf32>,
    %c1_i32_248 = arith.constant 1 : i32
    %431 = arith.index_cast %c1_i32_248 : i32 to index
    %c0_249 = arith.constant 0 : index
    %c0_250 = arith.constant 0 : index
    %432 = vector.load %arg17[%431, %c0_249, %c0_250] : memref<8x8x128xf32, #tpu.memory_space<vmem>>, vector<1x8x128xf32>
    %433 = vector.shape_cast %432 : vector<1x8x128xf32> to vector<8x128xf32>
    %c0_251 = arith.constant 0 : index
    %c0_252 = arith.constant 0 : index
    %434 = vector.load %arg20[%c0_251, %c0_252] : memref<8x32xf32, #tpu.memory_space<vmem>>, vector<8x32xf32>
    %cst_253 = arith.constant dense<0.000000e+00> : vector<8x128xf32>
    %435 = tpu.matmul %434, %382, %cst_253 {dimension_numbers = #tpu.dot_dimension_numbers<[1], [0], [0], [1], [0, 0, 1, 1], [], []>} : vector<8x32xf32>, vector<32x128xf32>, vector<8x128xf32> -> vector<8x128xf32>
    %436 = arith.addf %433, %435 : vector<8x128xf32>
    %437 = vector.extract_strided_slice %436 {offsets = [0, 0], sizes = [8, 32], strides = [1, 1]} : vector<8x128xf32> to vector<8x32xf32>
    %cst_254 = arith.constant 5.000000e-01 : f32
    %438 = vector.broadcast %cst_254 : f32 to vector<8x32xf32>
    %439 = arith.mulf %438, %437 : vector<8x32xf32>
    %440 = math.tanh %439 : vector<8x32xf32>
    %cst_255 = arith.constant 1.000000e+00 : f32
    %441 = vector.broadcast %cst_255 : f32 to vector<8x32xf32>
    %442 = arith.addf %440, %441 : vector<8x32xf32>
    %cst_256 = arith.constant 5.000000e-01 : f32
    %443 = vector.broadcast %cst_256 : f32 to vector<8x32xf32>
    %444 = arith.mulf %443, %442 : vector<8x32xf32>
    %445 = vector.extract_strided_slice %436 {offsets = [0, 32], sizes = [8, 32], strides = [1, 1]} : vector<8x128xf32> to vector<8x32xf32>
    %cst_257 = arith.constant 5.000000e-01 : f32
    %446 = vector.broadcast %cst_257 : f32 to vector<8x32xf32>
    %447 = arith.mulf %446, %445 : vector<8x32xf32>
    %448 = math.tanh %447 : vector<8x32xf32>
    %cst_258 = arith.constant 1.000000e+00 : f32
    %449 = vector.broadcast %cst_258 : f32 to vector<8x32xf32>
    %450 = arith.addf %448, %449 : vector<8x32xf32>
    %cst_259 = arith.constant 5.000000e-01 : f32
    %451 = vector.broadcast %cst_259 : f32 to vector<8x32xf32>
    %452 = arith.mulf %451, %450 : vector<8x32xf32>
    %453 = vector.extract_strided_slice %436 {offsets = [0, 64], sizes = [8, 32], strides = [1, 1]} : vector<8x128xf32> to vector<8x32xf32>
    %454 = math.tanh %453 : vector<8x32xf32>
    %455 = vector.extract_strided_slice %436 {offsets = [0, 96], sizes = [8, 32], strides = [1, 1]} : vector<8x128xf32> to vector<8x32xf32>
    %cst_260 = arith.constant 5.000000e-01 : f32
    %456 = vector.broadcast %cst_260 : f32 to vector<8x32xf32>
    %457 = arith.mulf %456, %455 : vector<8x32xf32>
    %458 = math.tanh %457 : vector<8x32xf32>
    %cst_261 = arith.constant 1.000000e+00 : f32
    %459 = vector.broadcast %cst_261 : f32 to vector<8x32xf32>
    %460 = arith.addf %458, %459 : vector<8x32xf32>
    %cst_262 = arith.constant 5.000000e-01 : f32
    %461 = vector.broadcast %cst_262 : f32 to vector<8x32xf32>
    %462 = arith.mulf %461, %460 : vector<8x32xf32>
    %c0_263 = arith.constant 0 : index
    %c0_264 = arith.constant 0 : index
    %463 = vector.load %arg21[%c0_263, %c0_264] : memref<8x32xf32, #tpu.memory_space<vmem>>, vector<8x32xf32>
    %464 = arith.mulf %452, %463 : vector<8x32xf32>
    %465 = arith.mulf %444, %454 : vector<8x32xf32>
    %466 = arith.addf %464, %465 : vector<8x32xf32>
    %467 = math.tanh %466 : vector<8x32xf32>
    %468 = arith.mulf %462, %467 : vector<8x32xf32>
    %c0_265 = arith.constant 0 : index
    %c0_266 = arith.constant 0 : index
    %469 = vector.load %arg21[%c0_265, %c0_266] : memref<8x32xf32, #tpu.memory_space<vmem>>, vector<8x32xf32>
    tpu.vector_store %arg21[%c0_265, %c0_266], %466 {strides = array<i32>} : memref<8x32xf32, #tpu.memory_space<vmem>>, vector<8x32xf32>,
    %c0_267 = arith.constant 0 : index
    %c0_268 = arith.constant 0 : index
    %470 = vector.load %arg20[%c0_267, %c0_268] : memref<8x32xf32, #tpu.memory_space<vmem>>, vector<8x32xf32>
    tpu.vector_store %arg20[%c0_267, %c0_268], %468 {strides = array<i32>} : memref<8x32xf32, #tpu.memory_space<vmem>>, vector<8x32xf32>,
    %471 = arith.index_cast %c1_i32_248 : i32 to index
    %c0_269 = arith.constant 0 : index
    %c0_270 = arith.constant 0 : index
    %472 = vector.load %arg19[%471, %c0_269, %c0_270] : memref<8x8x32xf32, #tpu.memory_space<vmem>>, vector<1x8x32xf32>
    %473 = vector.shape_cast %472 : vector<1x8x32xf32> to vector<8x32xf32>
    %474 = vector.shape_cast %468 : vector<8x32xf32> to vector<1x8x32xf32>
    tpu.vector_store %arg19[%471, %c0_269, %c0_270], %474 {strides = array<i32>} : memref<8x8x32xf32, #tpu.memory_space<vmem>>, vector<1x8x32xf32>,
    %c2_i32_271 = arith.constant 2 : i32
    %475 = arith.index_cast %c2_i32_271 : i32 to index
    %c0_272 = arith.constant 0 : index
    %c0_273 = arith.constant 0 : index
    %476 = vector.load %arg17[%475, %c0_272, %c0_273] : memref<8x8x128xf32, #tpu.memory_space<vmem>>, vector<1x8x128xf32>
    %477 = vector.shape_cast %476 : vector<1x8x128xf32> to vector<8x128xf32>
    %c0_274 = arith.constant 0 : index
    %c0_275 = arith.constant 0 : index
    %478 = vector.load %arg20[%c0_274, %c0_275] : memref<8x32xf32, #tpu.memory_space<vmem>>, vector<8x32xf32>
    %cst_276 = arith.constant dense<0.000000e+00> : vector<8x128xf32>
    %479 = tpu.matmul %478, %382, %cst_276 {dimension_numbers = #tpu.dot_dimension_numbers<[1], [0], [0], [1], [0, 0, 1, 1], [], []>} : vector<8x32xf32>, vector<32x128xf32>, vector<8x128xf32> -> vector<8x128xf32>
    %480 = arith.addf %477, %479 : vector<8x128xf32>
    %481 = vector.extract_strided_slice %480 {offsets = [0, 0], sizes = [8, 32], strides = [1, 1]} : vector<8x128xf32> to vector<8x32xf32>
    %cst_277 = arith.constant 5.000000e-01 : f32
    %482 = vector.broadcast %cst_277 : f32 to vector<8x32xf32>
    %483 = arith.mulf %482, %481 : vector<8x32xf32>
    %484 = math.tanh %483 : vector<8x32xf32>
    %cst_278 = arith.constant 1.000000e+00 : f32
    %485 = vector.broadcast %cst_278 : f32 to vector<8x32xf32>
    %486 = arith.addf %484, %485 : vector<8x32xf32>
    %cst_279 = arith.constant 5.000000e-01 : f32
    %487 = vector.broadcast %cst_279 : f32 to vector<8x32xf32>
    %488 = arith.mulf %487, %486 : vector<8x32xf32>
    %489 = vector.extract_strided_slice %480 {offsets = [0, 32], sizes = [8, 32], strides = [1, 1]} : vector<8x128xf32> to vector<8x32xf32>
    %cst_280 = arith.constant 5.000000e-01 : f32
    %490 = vector.broadcast %cst_280 : f32 to vector<8x32xf32>
    %491 = arith.mulf %490, %489 : vector<8x32xf32>
    %492 = math.tanh %491 : vector<8x32xf32>
    %cst_281 = arith.constant 1.000000e+00 : f32
    %493 = vector.broadcast %cst_281 : f32 to vector<8x32xf32>
    %494 = arith.addf %492, %493 : vector<8x32xf32>
    %cst_282 = arith.constant 5.000000e-01 : f32
    %495 = vector.broadcast %cst_282 : f32 to vector<8x32xf32>
    %496 = arith.mulf %495, %494 : vector<8x32xf32>
    %497 = vector.extract_strided_slice %480 {offsets = [0, 64], sizes = [8, 32], strides = [1, 1]} : vector<8x128xf32> to vector<8x32xf32>
    %498 = math.tanh %497 : vector<8x32xf32>
    %499 = vector.extract_strided_slice %480 {offsets = [0, 96], sizes = [8, 32], strides = [1, 1]} : vector<8x128xf32> to vector<8x32xf32>
    %cst_283 = arith.constant 5.000000e-01 : f32
    %500 = vector.broadcast %cst_283 : f32 to vector<8x32xf32>
    %501 = arith.mulf %500, %499 : vector<8x32xf32>
    %502 = math.tanh %501 : vector<8x32xf32>
    %cst_284 = arith.constant 1.000000e+00 : f32
    %503 = vector.broadcast %cst_284 : f32 to vector<8x32xf32>
    %504 = arith.addf %502, %503 : vector<8x32xf32>
    %cst_285 = arith.constant 5.000000e-01 : f32
    %505 = vector.broadcast %cst_285 : f32 to vector<8x32xf32>
    %506 = arith.mulf %505, %504 : vector<8x32xf32>
    %c0_286 = arith.constant 0 : index
    %c0_287 = arith.constant 0 : index
    %507 = vector.load %arg21[%c0_286, %c0_287] : memref<8x32xf32, #tpu.memory_space<vmem>>, vector<8x32xf32>
    %508 = arith.mulf %496, %507 : vector<8x32xf32>
    %509 = arith.mulf %488, %498 : vector<8x32xf32>
    %510 = arith.addf %508, %509 : vector<8x32xf32>
    %511 = math.tanh %510 : vector<8x32xf32>
    %512 = arith.mulf %506, %511 : vector<8x32xf32>
    %c0_288 = arith.constant 0 : index
    %c0_289 = arith.constant 0 : index
    %513 = vector.load %arg21[%c0_288, %c0_289] : memref<8x32xf32, #tpu.memory_space<vmem>>, vector<8x32xf32>
    tpu.vector_store %arg21[%c0_288, %c0_289], %510 {strides = array<i32>} : memref<8x32xf32, #tpu.memory_space<vmem>>, vector<8x32xf32>,
    %c0_290 = arith.constant 0 : index
    %c0_291 = arith.constant 0 : index
    %514 = vector.load %arg20[%c0_290, %c0_291] : memref<8x32xf32, #tpu.memory_space<vmem>>, vector<8x32xf32>
    tpu.vector_store %arg20[%c0_290, %c0_291], %512 {strides = array<i32>} : memref<8x32xf32, #tpu.memory_space<vmem>>, vector<8x32xf32>,
    %515 = arith.index_cast %c2_i32_271 : i32 to index
    %c0_292 = arith.constant 0 : index
    %c0_293 = arith.constant 0 : index
    %516 = vector.load %arg19[%515, %c0_292, %c0_293] : memref<8x8x32xf32, #tpu.memory_space<vmem>>, vector<1x8x32xf32>
    %517 = vector.shape_cast %516 : vector<1x8x32xf32> to vector<8x32xf32>
    %518 = vector.shape_cast %512 : vector<8x32xf32> to vector<1x8x32xf32>
    tpu.vector_store %arg19[%515, %c0_292, %c0_293], %518 {strides = array<i32>} : memref<8x8x32xf32, #tpu.memory_space<vmem>>, vector<1x8x32xf32>,
    %c3_i32_294 = arith.constant 3 : i32
    %519 = arith.index_cast %c3_i32_294 : i32 to index
    %c0_295 = arith.constant 0 : index
    %c0_296 = arith.constant 0 : index
    %520 = vector.load %arg17[%519, %c0_295, %c0_296] : memref<8x8x128xf32, #tpu.memory_space<vmem>>, vector<1x8x128xf32>
    %521 = vector.shape_cast %520 : vector<1x8x128xf32> to vector<8x128xf32>
    %c0_297 = arith.constant 0 : index
    %c0_298 = arith.constant 0 : index
    %522 = vector.load %arg20[%c0_297, %c0_298] : memref<8x32xf32, #tpu.memory_space<vmem>>, vector<8x32xf32>
    %cst_299 = arith.constant dense<0.000000e+00> : vector<8x128xf32>
    %523 = tpu.matmul %522, %382, %cst_299 {dimension_numbers = #tpu.dot_dimension_numbers<[1], [0], [0], [1], [0, 0, 1, 1], [], []>} : vector<8x32xf32>, vector<32x128xf32>, vector<8x128xf32> -> vector<8x128xf32>
    %524 = arith.addf %521, %523 : vector<8x128xf32>
    %525 = vector.extract_strided_slice %524 {offsets = [0, 0], sizes = [8, 32], strides = [1, 1]} : vector<8x128xf32> to vector<8x32xf32>
    %cst_300 = arith.constant 5.000000e-01 : f32
    %526 = vector.broadcast %cst_300 : f32 to vector<8x32xf32>
    %527 = arith.mulf %526, %525 : vector<8x32xf32>
    %528 = math.tanh %527 : vector<8x32xf32>
    %cst_301 = arith.constant 1.000000e+00 : f32
    %529 = vector.broadcast %cst_301 : f32 to vector<8x32xf32>
    %530 = arith.addf %528, %529 : vector<8x32xf32>
    %cst_302 = arith.constant 5.000000e-01 : f32
    %531 = vector.broadcast %cst_302 : f32 to vector<8x32xf32>
    %532 = arith.mulf %531, %530 : vector<8x32xf32>
    %533 = vector.extract_strided_slice %524 {offsets = [0, 32], sizes = [8, 32], strides = [1, 1]} : vector<8x128xf32> to vector<8x32xf32>
    %cst_303 = arith.constant 5.000000e-01 : f32
    %534 = vector.broadcast %cst_303 : f32 to vector<8x32xf32>
    %535 = arith.mulf %534, %533 : vector<8x32xf32>
    %536 = math.tanh %535 : vector<8x32xf32>
    %cst_304 = arith.constant 1.000000e+00 : f32
    %537 = vector.broadcast %cst_304 : f32 to vector<8x32xf32>
    %538 = arith.addf %536, %537 : vector<8x32xf32>
    %cst_305 = arith.constant 5.000000e-01 : f32
    %539 = vector.broadcast %cst_305 : f32 to vector<8x32xf32>
    %540 = arith.mulf %539, %538 : vector<8x32xf32>
    %541 = vector.extract_strided_slice %524 {offsets = [0, 64], sizes = [8, 32], strides = [1, 1]} : vector<8x128xf32> to vector<8x32xf32>
    %542 = math.tanh %541 : vector<8x32xf32>
    %543 = vector.extract_strided_slice %524 {offsets = [0, 96], sizes = [8, 32], strides = [1, 1]} : vector<8x128xf32> to vector<8x32xf32>
    %cst_306 = arith.constant 5.000000e-01 : f32
    %544 = vector.broadcast %cst_306 : f32 to vector<8x32xf32>
    %545 = arith.mulf %544, %543 : vector<8x32xf32>
    %546 = math.tanh %545 : vector<8x32xf32>
    %cst_307 = arith.constant 1.000000e+00 : f32
    %547 = vector.broadcast %cst_307 : f32 to vector<8x32xf32>
    %548 = arith.addf %546, %547 : vector<8x32xf32>
    %cst_308 = arith.constant 5.000000e-01 : f32
    %549 = vector.broadcast %cst_308 : f32 to vector<8x32xf32>
    %550 = arith.mulf %549, %548 : vector<8x32xf32>
    %c0_309 = arith.constant 0 : index
    %c0_310 = arith.constant 0 : index
    %551 = vector.load %arg21[%c0_309, %c0_310] : memref<8x32xf32, #tpu.memory_space<vmem>>, vector<8x32xf32>
    %552 = arith.mulf %540, %551 : vector<8x32xf32>
    %553 = arith.mulf %532, %542 : vector<8x32xf32>
    %554 = arith.addf %552, %553 : vector<8x32xf32>
    %555 = math.tanh %554 : vector<8x32xf32>
    %556 = arith.mulf %550, %555 : vector<8x32xf32>
    %c0_311 = arith.constant 0 : index
    %c0_312 = arith.constant 0 : index
    %557 = vector.load %arg21[%c0_311, %c0_312] : memref<8x32xf32, #tpu.memory_space<vmem>>, vector<8x32xf32>
    tpu.vector_store %arg21[%c0_311, %c0_312], %554 {strides = array<i32>} : memref<8x32xf32, #tpu.memory_space<vmem>>, vector<8x32xf32>,
    %c0_313 = arith.constant 0 : index
    %c0_314 = arith.constant 0 : index
    %558 = vector.load %arg20[%c0_313, %c0_314] : memref<8x32xf32, #tpu.memory_space<vmem>>, vector<8x32xf32>
    tpu.vector_store %arg20[%c0_313, %c0_314], %556 {strides = array<i32>} : memref<8x32xf32, #tpu.memory_space<vmem>>, vector<8x32xf32>,
    %559 = arith.index_cast %c3_i32_294 : i32 to index
    %c0_315 = arith.constant 0 : index
    %c0_316 = arith.constant 0 : index
    %560 = vector.load %arg19[%559, %c0_315, %c0_316] : memref<8x8x32xf32, #tpu.memory_space<vmem>>, vector<1x8x32xf32>
    %561 = vector.shape_cast %560 : vector<1x8x32xf32> to vector<8x32xf32>
    %562 = vector.shape_cast %556 : vector<8x32xf32> to vector<1x8x32xf32>
    tpu.vector_store %arg19[%559, %c0_315, %c0_316], %562 {strides = array<i32>} : memref<8x8x32xf32, #tpu.memory_space<vmem>>, vector<1x8x32xf32>,
    %c4_i32_317 = arith.constant 4 : i32
    %563 = arith.index_cast %c4_i32_317 : i32 to index
    %c0_318 = arith.constant 0 : index
    %c0_319 = arith.constant 0 : index
    %564 = vector.load %arg17[%563, %c0_318, %c0_319] : memref<8x8x128xf32, #tpu.memory_space<vmem>>, vector<1x8x128xf32>
    %565 = vector.shape_cast %564 : vector<1x8x128xf32> to vector<8x128xf32>
    %c0_320 = arith.constant 0 : index
    %c0_321 = arith.constant 0 : index
    %566 = vector.load %arg20[%c0_320, %c0_321] : memref<8x32xf32, #tpu.memory_space<vmem>>, vector<8x32xf32>
    %cst_322 = arith.constant dense<0.000000e+00> : vector<8x128xf32>
    %567 = tpu.matmul %566, %382, %cst_322 {dimension_numbers = #tpu.dot_dimension_numbers<[1], [0], [0], [1], [0, 0, 1, 1], [], []>} : vector<8x32xf32>, vector<32x128xf32>, vector<8x128xf32> -> vector<8x128xf32>
    %568 = arith.addf %565, %567 : vector<8x128xf32>
    %569 = vector.extract_strided_slice %568 {offsets = [0, 0], sizes = [8, 32], strides = [1, 1]} : vector<8x128xf32> to vector<8x32xf32>
    %cst_323 = arith.constant 5.000000e-01 : f32
    %570 = vector.broadcast %cst_323 : f32 to vector<8x32xf32>
    %571 = arith.mulf %570, %569 : vector<8x32xf32>
    %572 = math.tanh %571 : vector<8x32xf32>
    %cst_324 = arith.constant 1.000000e+00 : f32
    %573 = vector.broadcast %cst_324 : f32 to vector<8x32xf32>
    %574 = arith.addf %572, %573 : vector<8x32xf32>
    %cst_325 = arith.constant 5.000000e-01 : f32
    %575 = vector.broadcast %cst_325 : f32 to vector<8x32xf32>
    %576 = arith.mulf %575, %574 : vector<8x32xf32>
    %577 = vector.extract_strided_slice %568 {offsets = [0, 32], sizes = [8, 32], strides = [1, 1]} : vector<8x128xf32> to vector<8x32xf32>
    %cst_326 = arith.constant 5.000000e-01 : f32
    %578 = vector.broadcast %cst_326 : f32 to vector<8x32xf32>
    %579 = arith.mulf %578, %577 : vector<8x32xf32>
    %580 = math.tanh %579 : vector<8x32xf32>
    %cst_327 = arith.constant 1.000000e+00 : f32
    %581 = vector.broadcast %cst_327 : f32 to vector<8x32xf32>
    %582 = arith.addf %580, %581 : vector<8x32xf32>
    %cst_328 = arith.constant 5.000000e-01 : f32
    %583 = vector.broadcast %cst_328 : f32 to vector<8x32xf32>
    %584 = arith.mulf %583, %582 : vector<8x32xf32>
    %585 = vector.extract_strided_slice %568 {offsets = [0, 64], sizes = [8, 32], strides = [1, 1]} : vector<8x128xf32> to vector<8x32xf32>
    %586 = math.tanh %585 : vector<8x32xf32>
    %587 = vector.extract_strided_slice %568 {offsets = [0, 96], sizes = [8, 32], strides = [1, 1]} : vector<8x128xf32> to vector<8x32xf32>
    %cst_329 = arith.constant 5.000000e-01 : f32
    %588 = vector.broadcast %cst_329 : f32 to vector<8x32xf32>
    %589 = arith.mulf %588, %587 : vector<8x32xf32>
    %590 = math.tanh %589 : vector<8x32xf32>
    %cst_330 = arith.constant 1.000000e+00 : f32
    %591 = vector.broadcast %cst_330 : f32 to vector<8x32xf32>
    %592 = arith.addf %590, %591 : vector<8x32xf32>
    %cst_331 = arith.constant 5.000000e-01 : f32
    %593 = vector.broadcast %cst_331 : f32 to vector<8x32xf32>
    %594 = arith.mulf %593, %592 : vector<8x32xf32>
    %c0_332 = arith.constant 0 : index
    %c0_333 = arith.constant 0 : index
    %595 = vector.load %arg21[%c0_332, %c0_333] : memref<8x32xf32, #tpu.memory_space<vmem>>, vector<8x32xf32>
    %596 = arith.mulf %584, %595 : vector<8x32xf32>
    %597 = arith.mulf %576, %586 : vector<8x32xf32>
    %598 = arith.addf %596, %597 : vector<8x32xf32>
    %599 = math.tanh %598 : vector<8x32xf32>
    %600 = arith.mulf %594, %599 : vector<8x32xf32>
    %c0_334 = arith.constant 0 : index
    %c0_335 = arith.constant 0 : index
    %601 = vector.load %arg21[%c0_334, %c0_335] : memref<8x32xf32, #tpu.memory_space<vmem>>, vector<8x32xf32>
    tpu.vector_store %arg21[%c0_334, %c0_335], %598 {strides = array<i32>} : memref<8x32xf32, #tpu.memory_space<vmem>>, vector<8x32xf32>,
    %c0_336 = arith.constant 0 : index
    %c0_337 = arith.constant 0 : index
    %602 = vector.load %arg20[%c0_336, %c0_337] : memref<8x32xf32, #tpu.memory_space<vmem>>, vector<8x32xf32>
    tpu.vector_store %arg20[%c0_336, %c0_337], %600 {strides = array<i32>} : memref<8x32xf32, #tpu.memory_space<vmem>>, vector<8x32xf32>,
    %603 = arith.index_cast %c4_i32_317 : i32 to index
    %c0_338 = arith.constant 0 : index
    %c0_339 = arith.constant 0 : index
    %604 = vector.load %arg19[%603, %c0_338, %c0_339] : memref<8x8x32xf32, #tpu.memory_space<vmem>>, vector<1x8x32xf32>
    %605 = vector.shape_cast %604 : vector<1x8x32xf32> to vector<8x32xf32>
    %606 = vector.shape_cast %600 : vector<8x32xf32> to vector<1x8x32xf32>
    tpu.vector_store %arg19[%603, %c0_338, %c0_339], %606 {strides = array<i32>} : memref<8x8x32xf32, #tpu.memory_space<vmem>>, vector<1x8x32xf32>,
    %c5_i32_340 = arith.constant 5 : i32
    %607 = arith.index_cast %c5_i32_340 : i32 to index
    %c0_341 = arith.constant 0 : index
    %c0_342 = arith.constant 0 : index
    %608 = vector.load %arg17[%607, %c0_341, %c0_342] : memref<8x8x128xf32, #tpu.memory_space<vmem>>, vector<1x8x128xf32>
    %609 = vector.shape_cast %608 : vector<1x8x128xf32> to vector<8x128xf32>
    %c0_343 = arith.constant 0 : index
    %c0_344 = arith.constant 0 : index
    %610 = vector.load %arg20[%c0_343, %c0_344] : memref<8x32xf32, #tpu.memory_space<vmem>>, vector<8x32xf32>
    %cst_345 = arith.constant dense<0.000000e+00> : vector<8x128xf32>
    %611 = tpu.matmul %610, %382, %cst_345 {dimension_numbers = #tpu.dot_dimension_numbers<[1], [0], [0], [1], [0, 0, 1, 1], [], []>} : vector<8x32xf32>, vector<32x128xf32>, vector<8x128xf32> -> vector<8x128xf32>
    %612 = arith.addf %609, %611 : vector<8x128xf32>
    %613 = vector.extract_strided_slice %612 {offsets = [0, 0], sizes = [8, 32], strides = [1, 1]} : vector<8x128xf32> to vector<8x32xf32>
    %cst_346 = arith.constant 5.000000e-01 : f32
    %614 = vector.broadcast %cst_346 : f32 to vector<8x32xf32>
    %615 = arith.mulf %614, %613 : vector<8x32xf32>
    %616 = math.tanh %615 : vector<8x32xf32>
    %cst_347 = arith.constant 1.000000e+00 : f32
    %617 = vector.broadcast %cst_347 : f32 to vector<8x32xf32>
    %618 = arith.addf %616, %617 : vector<8x32xf32>
    %cst_348 = arith.constant 5.000000e-01 : f32
    %619 = vector.broadcast %cst_348 : f32 to vector<8x32xf32>
    %620 = arith.mulf %619, %618 : vector<8x32xf32>
    %621 = vector.extract_strided_slice %612 {offsets = [0, 32], sizes = [8, 32], strides = [1, 1]} : vector<8x128xf32> to vector<8x32xf32>
    %cst_349 = arith.constant 5.000000e-01 : f32
    %622 = vector.broadcast %cst_349 : f32 to vector<8x32xf32>
    %623 = arith.mulf %622, %621 : vector<8x32xf32>
    %624 = math.tanh %623 : vector<8x32xf32>
    %cst_350 = arith.constant 1.000000e+00 : f32
    %625 = vector.broadcast %cst_350 : f32 to vector<8x32xf32>
    %626 = arith.addf %624, %625 : vector<8x32xf32>
    %cst_351 = arith.constant 5.000000e-01 : f32
    %627 = vector.broadcast %cst_351 : f32 to vector<8x32xf32>
    %628 = arith.mulf %627, %626 : vector<8x32xf32>
    %629 = vector.extract_strided_slice %612 {offsets = [0, 64], sizes = [8, 32], strides = [1, 1]} : vector<8x128xf32> to vector<8x32xf32>
    %630 = math.tanh %629 : vector<8x32xf32>
    %631 = vector.extract_strided_slice %612 {offsets = [0, 96], sizes = [8, 32], strides = [1, 1]} : vector<8x128xf32> to vector<8x32xf32>
    %cst_352 = arith.constant 5.000000e-01 : f32
    %632 = vector.broadcast %cst_352 : f32 to vector<8x32xf32>
    %633 = arith.mulf %632, %631 : vector<8x32xf32>
    %634 = math.tanh %633 : vector<8x32xf32>
    %cst_353 = arith.constant 1.000000e+00 : f32
    %635 = vector.broadcast %cst_353 : f32 to vector<8x32xf32>
    %636 = arith.addf %634, %635 : vector<8x32xf32>
    %cst_354 = arith.constant 5.000000e-01 : f32
    %637 = vector.broadcast %cst_354 : f32 to vector<8x32xf32>
    %638 = arith.mulf %637, %636 : vector<8x32xf32>
    %c0_355 = arith.constant 0 : index
    %c0_356 = arith.constant 0 : index
    %639 = vector.load %arg21[%c0_355, %c0_356] : memref<8x32xf32, #tpu.memory_space<vmem>>, vector<8x32xf32>
    %640 = arith.mulf %628, %639 : vector<8x32xf32>
    %641 = arith.mulf %620, %630 : vector<8x32xf32>
    %642 = arith.addf %640, %641 : vector<8x32xf32>
    %643 = math.tanh %642 : vector<8x32xf32>
    %644 = arith.mulf %638, %643 : vector<8x32xf32>
    %c0_357 = arith.constant 0 : index
    %c0_358 = arith.constant 0 : index
    %645 = vector.load %arg21[%c0_357, %c0_358] : memref<8x32xf32, #tpu.memory_space<vmem>>, vector<8x32xf32>
    tpu.vector_store %arg21[%c0_357, %c0_358], %642 {strides = array<i32>} : memref<8x32xf32, #tpu.memory_space<vmem>>, vector<8x32xf32>,
    %c0_359 = arith.constant 0 : index
    %c0_360 = arith.constant 0 : index
    %646 = vector.load %arg20[%c0_359, %c0_360] : memref<8x32xf32, #tpu.memory_space<vmem>>, vector<8x32xf32>
    tpu.vector_store %arg20[%c0_359, %c0_360], %644 {strides = array<i32>} : memref<8x32xf32, #tpu.memory_space<vmem>>, vector<8x32xf32>,
    %647 = arith.index_cast %c5_i32_340 : i32 to index
    %c0_361 = arith.constant 0 : index
    %c0_362 = arith.constant 0 : index
    %648 = vector.load %arg19[%647, %c0_361, %c0_362] : memref<8x8x32xf32, #tpu.memory_space<vmem>>, vector<1x8x32xf32>
    %649 = vector.shape_cast %648 : vector<1x8x32xf32> to vector<8x32xf32>
    %650 = vector.shape_cast %644 : vector<8x32xf32> to vector<1x8x32xf32>
    tpu.vector_store %arg19[%647, %c0_361, %c0_362], %650 {strides = array<i32>} : memref<8x8x32xf32, #tpu.memory_space<vmem>>, vector<1x8x32xf32>,
    %c6_i32_363 = arith.constant 6 : i32
    %651 = arith.index_cast %c6_i32_363 : i32 to index
    %c0_364 = arith.constant 0 : index
    %c0_365 = arith.constant 0 : index
    %652 = vector.load %arg17[%651, %c0_364, %c0_365] : memref<8x8x128xf32, #tpu.memory_space<vmem>>, vector<1x8x128xf32>
    %653 = vector.shape_cast %652 : vector<1x8x128xf32> to vector<8x128xf32>
    %c0_366 = arith.constant 0 : index
    %c0_367 = arith.constant 0 : index
    %654 = vector.load %arg20[%c0_366, %c0_367] : memref<8x32xf32, #tpu.memory_space<vmem>>, vector<8x32xf32>
    %cst_368 = arith.constant dense<0.000000e+00> : vector<8x128xf32>
    %655 = tpu.matmul %654, %382, %cst_368 {dimension_numbers = #tpu.dot_dimension_numbers<[1], [0], [0], [1], [0, 0, 1, 1], [], []>} : vector<8x32xf32>, vector<32x128xf32>, vector<8x128xf32> -> vector<8x128xf32>
    %656 = arith.addf %653, %655 : vector<8x128xf32>
    %657 = vector.extract_strided_slice %656 {offsets = [0, 0], sizes = [8, 32], strides = [1, 1]} : vector<8x128xf32> to vector<8x32xf32>
    %cst_369 = arith.constant 5.000000e-01 : f32
    %658 = vector.broadcast %cst_369 : f32 to vector<8x32xf32>
    %659 = arith.mulf %658, %657 : vector<8x32xf32>
    %660 = math.tanh %659 : vector<8x32xf32>
    %cst_370 = arith.constant 1.000000e+00 : f32
    %661 = vector.broadcast %cst_370 : f32 to vector<8x32xf32>
    %662 = arith.addf %660, %661 : vector<8x32xf32>
    %cst_371 = arith.constant 5.000000e-01 : f32
    %663 = vector.broadcast %cst_371 : f32 to vector<8x32xf32>
    %664 = arith.mulf %663, %662 : vector<8x32xf32>
    %665 = vector.extract_strided_slice %656 {offsets = [0, 32], sizes = [8, 32], strides = [1, 1]} : vector<8x128xf32> to vector<8x32xf32>
    %cst_372 = arith.constant 5.000000e-01 : f32
    %666 = vector.broadcast %cst_372 : f32 to vector<8x32xf32>
    %667 = arith.mulf %666, %665 : vector<8x32xf32>
    %668 = math.tanh %667 : vector<8x32xf32>
    %cst_373 = arith.constant 1.000000e+00 : f32
    %669 = vector.broadcast %cst_373 : f32 to vector<8x32xf32>
    %670 = arith.addf %668, %669 : vector<8x32xf32>
    %cst_374 = arith.constant 5.000000e-01 : f32
    %671 = vector.broadcast %cst_374 : f32 to vector<8x32xf32>
    %672 = arith.mulf %671, %670 : vector<8x32xf32>
    %673 = vector.extract_strided_slice %656 {offsets = [0, 64], sizes = [8, 32], strides = [1, 1]} : vector<8x128xf32> to vector<8x32xf32>
    %674 = math.tanh %673 : vector<8x32xf32>
    %675 = vector.extract_strided_slice %656 {offsets = [0, 96], sizes = [8, 32], strides = [1, 1]} : vector<8x128xf32> to vector<8x32xf32>
    %cst_375 = arith.constant 5.000000e-01 : f32
    %676 = vector.broadcast %cst_375 : f32 to vector<8x32xf32>
    %677 = arith.mulf %676, %675 : vector<8x32xf32>
    %678 = math.tanh %677 : vector<8x32xf32>
    %cst_376 = arith.constant 1.000000e+00 : f32
    %679 = vector.broadcast %cst_376 : f32 to vector<8x32xf32>
    %680 = arith.addf %678, %679 : vector<8x32xf32>
    %cst_377 = arith.constant 5.000000e-01 : f32
    %681 = vector.broadcast %cst_377 : f32 to vector<8x32xf32>
    %682 = arith.mulf %681, %680 : vector<8x32xf32>
    %c0_378 = arith.constant 0 : index
    %c0_379 = arith.constant 0 : index
    %683 = vector.load %arg21[%c0_378, %c0_379] : memref<8x32xf32, #tpu.memory_space<vmem>>, vector<8x32xf32>
    %684 = arith.mulf %672, %683 : vector<8x32xf32>
    %685 = arith.mulf %664, %674 : vector<8x32xf32>
    %686 = arith.addf %684, %685 : vector<8x32xf32>
    %687 = math.tanh %686 : vector<8x32xf32>
    %688 = arith.mulf %682, %687 : vector<8x32xf32>
    %c0_380 = arith.constant 0 : index
    %c0_381 = arith.constant 0 : index
    %689 = vector.load %arg21[%c0_380, %c0_381] : memref<8x32xf32, #tpu.memory_space<vmem>>, vector<8x32xf32>
    tpu.vector_store %arg21[%c0_380, %c0_381], %686 {strides = array<i32>} : memref<8x32xf32, #tpu.memory_space<vmem>>, vector<8x32xf32>,
    %c0_382 = arith.constant 0 : index
    %c0_383 = arith.constant 0 : index
    %690 = vector.load %arg20[%c0_382, %c0_383] : memref<8x32xf32, #tpu.memory_space<vmem>>, vector<8x32xf32>
    tpu.vector_store %arg20[%c0_382, %c0_383], %688 {strides = array<i32>} : memref<8x32xf32, #tpu.memory_space<vmem>>, vector<8x32xf32>,
    %691 = arith.index_cast %c6_i32_363 : i32 to index
    %c0_384 = arith.constant 0 : index
    %c0_385 = arith.constant 0 : index
    %692 = vector.load %arg19[%691, %c0_384, %c0_385] : memref<8x8x32xf32, #tpu.memory_space<vmem>>, vector<1x8x32xf32>
    %693 = vector.shape_cast %692 : vector<1x8x32xf32> to vector<8x32xf32>
    %694 = vector.shape_cast %688 : vector<8x32xf32> to vector<1x8x32xf32>
    tpu.vector_store %arg19[%691, %c0_384, %c0_385], %694 {strides = array<i32>} : memref<8x8x32xf32, #tpu.memory_space<vmem>>, vector<1x8x32xf32>,
    %c7_i32_386 = arith.constant 7 : i32
    %695 = arith.index_cast %c7_i32_386 : i32 to index
    %c0_387 = arith.constant 0 : index
    %c0_388 = arith.constant 0 : index
    %696 = vector.load %arg17[%695, %c0_387, %c0_388] : memref<8x8x128xf32, #tpu.memory_space<vmem>>, vector<1x8x128xf32>
    %697 = vector.shape_cast %696 : vector<1x8x128xf32> to vector<8x128xf32>
    %c0_389 = arith.constant 0 : index
    %c0_390 = arith.constant 0 : index
    %698 = vector.load %arg20[%c0_389, %c0_390] : memref<8x32xf32, #tpu.memory_space<vmem>>, vector<8x32xf32>
    %cst_391 = arith.constant dense<0.000000e+00> : vector<8x128xf32>
    %699 = tpu.matmul %698, %382, %cst_391 {dimension_numbers = #tpu.dot_dimension_numbers<[1], [0], [0], [1], [0, 0, 1, 1], [], []>} : vector<8x32xf32>, vector<32x128xf32>, vector<8x128xf32> -> vector<8x128xf32>
    %700 = arith.addf %697, %699 : vector<8x128xf32>
    %701 = vector.extract_strided_slice %700 {offsets = [0, 0], sizes = [8, 32], strides = [1, 1]} : vector<8x128xf32> to vector<8x32xf32>
    %cst_392 = arith.constant 5.000000e-01 : f32
    %702 = vector.broadcast %cst_392 : f32 to vector<8x32xf32>
    %703 = arith.mulf %702, %701 : vector<8x32xf32>
    %704 = math.tanh %703 : vector<8x32xf32>
    %cst_393 = arith.constant 1.000000e+00 : f32
    %705 = vector.broadcast %cst_393 : f32 to vector<8x32xf32>
    %706 = arith.addf %704, %705 : vector<8x32xf32>
    %cst_394 = arith.constant 5.000000e-01 : f32
    %707 = vector.broadcast %cst_394 : f32 to vector<8x32xf32>
    %708 = arith.mulf %707, %706 : vector<8x32xf32>
    %709 = vector.extract_strided_slice %700 {offsets = [0, 32], sizes = [8, 32], strides = [1, 1]} : vector<8x128xf32> to vector<8x32xf32>
    %cst_395 = arith.constant 5.000000e-01 : f32
    %710 = vector.broadcast %cst_395 : f32 to vector<8x32xf32>
    %711 = arith.mulf %710, %709 : vector<8x32xf32>
    %712 = math.tanh %711 : vector<8x32xf32>
    %cst_396 = arith.constant 1.000000e+00 : f32
    %713 = vector.broadcast %cst_396 : f32 to vector<8x32xf32>
    %714 = arith.addf %712, %713 : vector<8x32xf32>
    %cst_397 = arith.constant 5.000000e-01 : f32
    %715 = vector.broadcast %cst_397 : f32 to vector<8x32xf32>
    %716 = arith.mulf %715, %714 : vector<8x32xf32>
    %717 = vector.extract_strided_slice %700 {offsets = [0, 64], sizes = [8, 32], strides = [1, 1]} : vector<8x128xf32> to vector<8x32xf32>
    %718 = math.tanh %717 : vector<8x32xf32>
    %719 = vector.extract_strided_slice %700 {offsets = [0, 96], sizes = [8, 32], strides = [1, 1]} : vector<8x128xf32> to vector<8x32xf32>
    %cst_398 = arith.constant 5.000000e-01 : f32
    %720 = vector.broadcast %cst_398 : f32 to vector<8x32xf32>
    %721 = arith.mulf %720, %719 : vector<8x32xf32>
    %722 = math.tanh %721 : vector<8x32xf32>
    %cst_399 = arith.constant 1.000000e+00 : f32
    %723 = vector.broadcast %cst_399 : f32 to vector<8x32xf32>
    %724 = arith.addf %722, %723 : vector<8x32xf32>
    %cst_400 = arith.constant 5.000000e-01 : f32
    %725 = vector.broadcast %cst_400 : f32 to vector<8x32xf32>
    %726 = arith.mulf %725, %724 : vector<8x32xf32>
    %c0_401 = arith.constant 0 : index
    %c0_402 = arith.constant 0 : index
    %727 = vector.load %arg21[%c0_401, %c0_402] : memref<8x32xf32, #tpu.memory_space<vmem>>, vector<8x32xf32>
    %728 = arith.mulf %716, %727 : vector<8x32xf32>
    %729 = arith.mulf %708, %718 : vector<8x32xf32>
    %730 = arith.addf %728, %729 : vector<8x32xf32>
    %731 = math.tanh %730 : vector<8x32xf32>
    %732 = arith.mulf %726, %731 : vector<8x32xf32>
    %c0_403 = arith.constant 0 : index
    %c0_404 = arith.constant 0 : index
    %733 = vector.load %arg21[%c0_403, %c0_404] : memref<8x32xf32, #tpu.memory_space<vmem>>, vector<8x32xf32>
    tpu.vector_store %arg21[%c0_403, %c0_404], %730 {strides = array<i32>} : memref<8x32xf32, #tpu.memory_space<vmem>>, vector<8x32xf32>,
    %c0_405 = arith.constant 0 : index
    %c0_406 = arith.constant 0 : index
    %734 = vector.load %arg20[%c0_405, %c0_406] : memref<8x32xf32, #tpu.memory_space<vmem>>, vector<8x32xf32>
    tpu.vector_store %arg20[%c0_405, %c0_406], %732 {strides = array<i32>} : memref<8x32xf32, #tpu.memory_space<vmem>>, vector<8x32xf32>,
    %735 = arith.index_cast %c7_i32_386 : i32 to index
    %c0_407 = arith.constant 0 : index
    %c0_408 = arith.constant 0 : index
    %736 = vector.load %arg19[%735, %c0_407, %c0_408] : memref<8x8x32xf32, #tpu.memory_space<vmem>>, vector<1x8x32xf32>
    %737 = vector.shape_cast %736 : vector<1x8x32xf32> to vector<8x32xf32>
    %738 = vector.shape_cast %732 : vector<8x32xf32> to vector<1x8x32xf32>
    tpu.vector_store %arg19[%735, %c0_407, %c0_408], %738 {strides = array<i32>} : memref<8x8x32xf32, #tpu.memory_space<vmem>>, vector<1x8x32xf32>,
    %c8_i32_409 = arith.constant 8 : i32
    %c0_410 = arith.constant 0 : index
    %c0_411 = arith.constant 0 : index
    %c0_412 = arith.constant 0 : index
    %739 = vector.load %arg19[%c0_410, %c0_411, %c0_412] : memref<8x8x32xf32, #tpu.memory_space<vmem>>, vector<8x8x32xf32>
    %740 = vector.shape_cast %739 : vector<8x8x32xf32> to vector<64x32xf32>
    %c0_413 = arith.constant 0 : index
    %c0_414 = arith.constant 0 : index
    %c0_415 = arith.constant 0 : index
    %741 = vector.load %arg8[%c0_413, %c0_414, %c0_415] : memref<1x32x32xf32, #tpu.memory_space<vmem>>, vector<1x32x32xf32>
    %742 = vector.shape_cast %741 : vector<1x32x32xf32> to vector<32x32xf32>
    %cst_416 = arith.constant dense<0.000000e+00> : vector<64x32xf32>
    %743 = tpu.matmul %740, %742, %cst_416 {dimension_numbers = #tpu.dot_dimension_numbers<[1], [0], [0], [1], [0, 0, 1, 1], [], []>} : vector<64x32xf32>, vector<32x32xf32>, vector<64x32xf32> -> vector<64x32xf32>
    %c0_417 = arith.constant 0 : index
    %c0_418 = arith.constant 0 : index
    %c0_419 = arith.constant 0 : index
    %744 = vector.load %arg9[%c0_417, %c0_418, %c0_419] : memref<1x1x32xf32, #tpu.memory_space<vmem>>, vector<1x1x32xf32>
    %745 = vector.shape_cast %744 : vector<1x1x32xf32> to vector<1x32xf32>
    %746 = vector.broadcast %745 : vector<1x32xf32> to vector<64x32xf32>
    %747 = arith.addf %743, %746 : vector<64x32xf32>
    %c0_420 = arith.constant 0 : index
    %c0_421 = arith.constant 0 : index
    %c0_422 = arith.constant 0 : index
    %748 = vector.load %arg10[%c0_420, %c0_421, %c0_422] : memref<1x32x32xf32, #tpu.memory_space<vmem>>, vector<1x32x32xf32>
    %749 = vector.shape_cast %748 : vector<1x32x32xf32> to vector<32x32xf32>
    %cst_423 = arith.constant dense<0.000000e+00> : vector<64x32xf32>
    %750 = tpu.matmul %740, %749, %cst_423 {dimension_numbers = #tpu.dot_dimension_numbers<[1], [0], [0], [1], [0, 0, 1, 1], [], []>} : vector<64x32xf32>, vector<32x32xf32>, vector<64x32xf32> -> vector<64x32xf32>
    %c0_424 = arith.constant 0 : index
    %c0_425 = arith.constant 0 : index
    %c0_426 = arith.constant 0 : index
    %751 = vector.load %arg11[%c0_424, %c0_425, %c0_426] : memref<1x1x32xf32, #tpu.memory_space<vmem>>, vector<1x1x32xf32>
    %752 = vector.shape_cast %751 : vector<1x1x32xf32> to vector<1x32xf32>
    %753 = vector.broadcast %752 : vector<1x32xf32> to vector<64x32xf32>
    %754 = arith.addf %750, %753 : vector<64x32xf32>
    %c0_427 = arith.constant 0 : index
    %c0_428 = arith.constant 0 : index
    %c0_429 = arith.constant 0 : index
    %755 = vector.load %arg12[%c0_427, %c0_428, %c0_429] : memref<1x32x32xf32, #tpu.memory_space<vmem>>, vector<1x32x32xf32>
    %756 = vector.shape_cast %755 : vector<1x32x32xf32> to vector<32x32xf32>
    %cst_430 = arith.constant dense<0.000000e+00> : vector<64x32xf32>
    %757 = tpu.matmul %740, %756, %cst_430 {dimension_numbers = #tpu.dot_dimension_numbers<[1], [0], [0], [1], [0, 0, 1, 1], [], []>} : vector<64x32xf32>, vector<32x32xf32>, vector<64x32xf32> -> vector<64x32xf32>
    %c0_431 = arith.constant 0 : index
    %c0_432 = arith.constant 0 : index
    %c0_433 = arith.constant 0 : index
    %758 = vector.load %arg13[%c0_431, %c0_432, %c0_433] : memref<1x1x32xf32, #tpu.memory_space<vmem>>, vector<1x1x32xf32>
    %759 = vector.shape_cast %758 : vector<1x1x32xf32> to vector<1x32xf32>
    %760 = vector.broadcast %759 : vector<1x32xf32> to vector<64x32xf32>
    %761 = arith.addf %757, %760 : vector<64x32xf32>
    %c0_434 = arith.constant 0 : index
    %c0_435 = arith.constant 0 : index
    %c0_436 = arith.constant 0 : index
    %762 = vector.load %arg14[%c0_434, %c0_435, %c0_436] : memref<1x32x32xf32, #tpu.memory_space<vmem>>, vector<1x32x32xf32>
    %763 = vector.shape_cast %762 : vector<1x32x32xf32> to vector<32x32xf32>
    %cst_437 = arith.constant 0.000000e+00 : f32
    %764 = vector.broadcast %cst_437 : f32 to vector<8x32xf32>
    %765 = vector.extract_strided_slice %747 {offsets = [0, 0], sizes = [64, 16], strides = [1, 1]} : vector<64x32xf32> to vector<64x16xf32>
    %766 = vector.shape_cast %765 : vector<64x16xf32> to vector<8x8x16xf32>
    %cst_438 = arith.constant 2.500000e-01 : f32
    %767 = vector.broadcast %cst_438 : f32 to vector<8x8x16xf32>
    %768 = arith.mulf %766, %767 : vector<8x8x16xf32>
    %769 = vector.extract_strided_slice %754 {offsets = [0, 0], sizes = [64, 16], strides = [1, 1]} : vector<64x32xf32> to vector<64x16xf32>
    %770 = vector.shape_cast %769 : vector<64x16xf32> to vector<8x8x16xf32>
    %771 = vector.extract_strided_slice %761 {offsets = [0, 0], sizes = [64, 16], strides = [1, 1]} : vector<64x32xf32> to vector<64x16xf32>
    %772 = vector.shape_cast %771 : vector<64x16xf32> to vector<8x8x16xf32>
    "tpu.trace_start"() <{level = 10 : i32, message = "sqd,skd->sqk"}> : () -> ()
    %cst_439 = arith.constant dense<0.000000e+00> : vector<8x8x8xf32>
    %773 = tpu.matmul %768, %770, %cst_439 {dimension_numbers = #tpu.dot_dimension_numbers<[2], [2], [1], [1], [0, 0, 0, 1, 1, 1], [0], [0]>} : vector<8x8x16xf32>, vector<8x8x16xf32>, vector<8x8x8xf32> -> vector<8x8x8xf32>
    "tpu.trace_stop"() : () -> ()
    %cst_440 = arith.constant dense<0xFF800000> : vector<8x8xf32>
    %774 = vector.multi_reduction <maximumf>, %773, %cst_440 [2] : vector<8x8x8xf32> to vector<8x8xf32>
    %775 = vector.shape_cast %774 : vector<8x8xf32> to vector<8x8x1xf32>
    %776 = vector.broadcast %775 : vector<8x8x1xf32> to vector<8x8x8xf32>
    %777 = arith.subf %773, %776 : vector<8x8x8xf32>
    %778 = math.exp %777 : vector<8x8x8xf32>
    %cst_441 = arith.constant dense<0.000000e+00> : vector<8x8xf32>
    %779 = vector.multi_reduction <add>, %778, %cst_441 [2] : vector<8x8x8xf32> to vector<8x8xf32>
    %780 = vector.shape_cast %779 : vector<8x8xf32> to vector<8x8x1xf32>
    %781 = tpu.reciprocal %780 {approx = true} : vector<8x8x1xf32> -> vector<8x8x1xf32>
    %782 = vector.broadcast %781 : vector<8x8x1xf32> to vector<8x8x8xf32>
    %783 = arith.mulf %778, %782 : vector<8x8x8xf32>
    "tpu.trace_start"() <{level = 10 : i32, message = "sqk,skd->sqd"}> : () -> ()
    %cst_442 = arith.constant dense<0.000000e+00> : vector<8x8x16xf32>
    %784 = tpu.matmul %783, %772, %cst_442 {dimension_numbers = #tpu.dot_dimension_numbers<[2], [1], [1], [2], [0, 0, 0, 1, 1, 2], [0], [0]>} : vector<8x8x8xf32>, vector<8x8x16xf32>, vector<8x8x16xf32> -> vector<8x8x16xf32>
    "tpu.trace_stop"() : () -> ()
    %cst_443 = arith.constant dense<0.000000e+00> : vector<8x16xf32>
    %785 = vector.multi_reduction <add>, %784, %cst_443 [0] : vector<8x8x16xf32> to vector<8x16xf32>
    %786 = vector.extract_strided_slice %763 {offsets = [0, 0], sizes = [16, 32], strides = [1, 1]} : vector<32x32xf32> to vector<16x32xf32>
    %cst_444 = arith.constant dense<0.000000e+00> : vector<8x32xf32>
    %787 = tpu.matmul %785, %786, %cst_444 {dimension_numbers = #tpu.dot_dimension_numbers<[1], [0], [0], [1], [0, 0, 1, 1], [], []>} : vector<8x16xf32>, vector<16x32xf32>, vector<8x32xf32> -> vector<8x32xf32>
    %788 = arith.addf %764, %787 : vector<8x32xf32>
    %789 = vector.extract_strided_slice %747 {offsets = [0, 16], sizes = [64, 16], strides = [1, 1]} : vector<64x32xf32> to vector<64x16xf32>
    %790 = vector.shape_cast %789 : vector<64x16xf32> to vector<8x8x16xf32>
    %cst_445 = arith.constant 2.500000e-01 : f32
    %791 = vector.broadcast %cst_445 : f32 to vector<8x8x16xf32>
    %792 = arith.mulf %790, %791 : vector<8x8x16xf32>
    %793 = vector.extract_strided_slice %754 {offsets = [0, 16], sizes = [64, 16], strides = [1, 1]} : vector<64x32xf32> to vector<64x16xf32>
    %794 = vector.shape_cast %793 : vector<64x16xf32> to vector<8x8x16xf32>
    %795 = vector.extract_strided_slice %761 {offsets = [0, 16], sizes = [64, 16], strides = [1, 1]} : vector<64x32xf32> to vector<64x16xf32>
    %796 = vector.shape_cast %795 : vector<64x16xf32> to vector<8x8x16xf32>
    "tpu.trace_start"() <{level = 10 : i32, message = "sqd,skd->sqk"}> : () -> ()
    %cst_446 = arith.constant dense<0.000000e+00> : vector<8x8x8xf32>
    %797 = tpu.matmul %792, %794, %cst_446 {dimension_numbers = #tpu.dot_dimension_numbers<[2], [2], [1], [1], [0, 0, 0, 1, 1, 1], [0], [0]>} : vector<8x8x16xf32>, vector<8x8x16xf32>, vector<8x8x8xf32> -> vector<8x8x8xf32>
    "tpu.trace_stop"() : () -> ()
    %cst_447 = arith.constant dense<0xFF800000> : vector<8x8xf32>
    %798 = vector.multi_reduction <maximumf>, %797, %cst_447 [2] : vector<8x8x8xf32> to vector<8x8xf32>
    %799 = vector.shape_cast %798 : vector<8x8xf32> to vector<8x8x1xf32>
    %800 = vector.broadcast %799 : vector<8x8x1xf32> to vector<8x8x8xf32>
    %801 = arith.subf %797, %800 : vector<8x8x8xf32>
    %802 = math.exp %801 : vector<8x8x8xf32>
    %cst_448 = arith.constant dense<0.000000e+00> : vector<8x8xf32>
    %803 = vector.multi_reduction <add>, %802, %cst_448 [2] : vector<8x8x8xf32> to vector<8x8xf32>
    %804 = vector.shape_cast %803 : vector<8x8xf32> to vector<8x8x1xf32>
    %805 = tpu.reciprocal %804 {approx = true} : vector<8x8x1xf32> -> vector<8x8x1xf32>
    %806 = vector.broadcast %805 : vector<8x8x1xf32> to vector<8x8x8xf32>
    %807 = arith.mulf %802, %806 : vector<8x8x8xf32>
    "tpu.trace_start"() <{level = 10 : i32, message = "sqk,skd->sqd"}> : () -> ()
    %cst_449 = arith.constant dense<0.000000e+00> : vector<8x8x16xf32>
    %808 = tpu.matmul %807, %796, %cst_449 {dimension_numbers = #tpu.dot_dimension_numbers<[2], [1], [1], [2], [0, 0, 0, 1, 1, 2], [0], [0]>} : vector<8x8x8xf32>, vector<8x8x16xf32>, vector<8x8x16xf32> -> vector<8x8x16xf32>
    "tpu.trace_stop"() : () -> ()
    %cst_450 = arith.constant dense<0.000000e+00> : vector<8x16xf32>
    %809 = vector.multi_reduction <add>, %808, %cst_450 [0] : vector<8x8x16xf32> to vector<8x16xf32>
    %810 = vector.extract_strided_slice %763 {offsets = [16, 0], sizes = [16, 32], strides = [1, 1]} : vector<32x32xf32> to vector<16x32xf32>
    %cst_451 = arith.constant dense<0.000000e+00> : vector<8x32xf32>
    %811 = tpu.matmul %809, %810, %cst_451 {dimension_numbers = #tpu.dot_dimension_numbers<[1], [0], [0], [1], [0, 0, 1, 1], [], []>} : vector<8x16xf32>, vector<16x32xf32>, vector<8x32xf32> -> vector<8x32xf32>
    %812 = arith.addf %788, %811 : vector<8x32xf32>
    %cst_452 = arith.constant 1.250000e-01 : f32
    %813 = vector.broadcast %cst_452 : f32 to vector<8x32xf32>
    %814 = arith.mulf %812, %813 : vector<8x32xf32>
    %c0_453 = arith.constant 0 : index
    %c0_454 = arith.constant 0 : index
    %c0_455 = arith.constant 0 : index
    %815 = vector.load %arg15[%c0_453, %c0_454, %c0_455] : memref<1x1x32xf32, #tpu.memory_space<vmem>>, vector<1x1x32xf32>
    %816 = vector.shape_cast %815 : vector<1x1x32xf32> to vector<1x32xf32>
    %817 = vector.broadcast %816 : vector<1x32xf32> to vector<8x32xf32>
    %818 = arith.addf %814, %817 : vector<8x32xf32>
    %c0_456 = arith.constant 0 : index
    %c0_457 = arith.constant 0 : index
    %c0_458 = arith.constant 0 : index
    %819 = vector.load %arg16[%c0_456, %c0_457, %c0_458] : memref<1x8x32xf32, #tpu.memory_space<vmem>>, vector<1x8x32xf32>
    %820 = vector.shape_cast %819 : vector<1x8x32xf32> to vector<8x32xf32>
    %821 = vector.shape_cast %818 : vector<8x32xf32> to vector<1x8x32xf32>
    tpu.vector_store %arg16[%c0_456, %c0_457, %c0_458], %821 {strides = array<i32>} : memref<1x8x32xf32, #tpu.memory_space<vmem>>, vector<1x8x32xf32>,
    return
  }
  func.func @transform_0(%arg0: i32) -> (i32, i32, i32, i32) {
    %c0_i32 = arith.constant 0 : i32
    %c0_i32_0 = arith.constant 0 : i32
    %c0_i32_1 = arith.constant 0 : i32
    %c0_i32_2 = arith.constant 0 : i32
    return %arg0, %c0_i32, %c0_i32_0, %c0_i32_1 : i32, i32, i32, i32
  }
  func.func @transform_1(%arg0: i32) -> (i32, i32, i32, i32) {
    %c0_i32 = arith.constant 0 : i32
    %c0_i32_0 = arith.constant 0 : i32
    %c0_i32_1 = arith.constant 0 : i32
    %c0_i32_2 = arith.constant 0 : i32
    return %arg0, %c0_i32, %c0_i32_0, %c0_i32_1 : i32, i32, i32, i32
  }
  func.func @transform_2(%arg0: i32) -> (i32, i32, i32, i32) {
    %c0_i32 = arith.constant 0 : i32
    %c0_i32_0 = arith.constant 0 : i32
    %c0_i32_1 = arith.constant 0 : i32
    %c0_i32_2 = arith.constant 0 : i32
    return %arg0, %c0_i32, %c0_i32_0, %c0_i32_1 : i32, i32, i32, i32
  }
  func.func @transform_3(%arg0: i32) -> (i32, i32, i32, i32) {
    %c0_i32 = arith.constant 0 : i32
    %c0_i32_0 = arith.constant 0 : i32
    %c0_i32_1 = arith.constant 0 : i32
    %c0_i32_2 = arith.constant 0 : i32
    return %arg0, %c0_i32, %c0_i32_0, %c0_i32_1 : i32, i32, i32, i32
  }
  func.func @transform_4(%arg0: i32) -> (i32, i32, i32, i32) {
    %c0_i32 = arith.constant 0 : i32
    %c0_i32_0 = arith.constant 0 : i32
    %c0_i32_1 = arith.constant 0 : i32
    %c0_i32_2 = arith.constant 0 : i32
    return %arg0, %c0_i32, %c0_i32_0, %c0_i32_1 : i32, i32, i32, i32
  }
  func.func @transform_5(%arg0: i32) -> (i32, i32, i32, i32) {
    %c0_i32 = arith.constant 0 : i32
    %c0_i32_0 = arith.constant 0 : i32
    %c0_i32_1 = arith.constant 0 : i32
    %c0_i32_2 = arith.constant 0 : i32
    return %arg0, %c0_i32, %c0_i32_0, %c0_i32_1 : i32, i32, i32, i32
  }
  func.func @transform_6(%arg0: i32) -> (i32, i32, i32, i32) {
    %c0_i32 = arith.constant 0 : i32
    %c0_i32_0 = arith.constant 0 : i32
    %c0_i32_1 = arith.constant 0 : i32
    %c0_i32_2 = arith.constant 0 : i32
    return %arg0, %c0_i32, %c0_i32_0, %c0_i32_1 : i32, i32, i32, i32
  }
  func.func @transform_7(%arg0: i32) -> (i32, i32, i32) {
    %c0_i32 = arith.constant 0 : i32
    %c0_i32_0 = arith.constant 0 : i32
    %c0_i32_1 = arith.constant 0 : i32
    return %arg0, %c0_i32, %c0_i32_0 : i32, i32, i32
  }
  func.func @transform_8(%arg0: i32) -> (i32, i32, i32) {
    %c0_i32 = arith.constant 0 : i32
    %c0_i32_0 = arith.constant 0 : i32
    %c0_i32_1 = arith.constant 0 : i32
    return %arg0, %c0_i32, %c0_i32_0 : i32, i32, i32
  }
  func.func @transform_9(%arg0: i32) -> (i32, i32, i32) {
    %c0_i32 = arith.constant 0 : i32
    %c0_i32_0 = arith.constant 0 : i32
    %c0_i32_1 = arith.constant 0 : i32
    return %arg0, %c0_i32, %c0_i32_0 : i32, i32, i32
  }
  func.func @transform_10(%arg0: i32) -> (i32, i32, i32) {
    %c0_i32 = arith.constant 0 : i32
    %c0_i32_0 = arith.constant 0 : i32
    %c0_i32_1 = arith.constant 0 : i32
    return %arg0, %c0_i32, %c0_i32_0 : i32, i32, i32
  }
  func.func @transform_11(%arg0: i32) -> (i32, i32, i32) {
    %c0_i32 = arith.constant 0 : i32
    %c0_i32_0 = arith.constant 0 : i32
    %c0_i32_1 = arith.constant 0 : i32
    return %arg0, %c0_i32, %c0_i32_0 : i32, i32, i32
  }
  func.func @transform_12(%arg0: i32) -> (i32, i32, i32) {
    %c0_i32 = arith.constant 0 : i32
    %c0_i32_0 = arith.constant 0 : i32
    %c0_i32_1 = arith.constant 0 : i32
    return %arg0, %c0_i32, %c0_i32_0 : i32, i32, i32
  }
  func.func @transform_13(%arg0: i32) -> (i32, i32, i32) {
    %c0_i32 = arith.constant 0 : i32
    %c0_i32_0 = arith.constant 0 : i32
    %c0_i32_1 = arith.constant 0 : i32
    return %arg0, %c0_i32, %c0_i32_0 : i32, i32, i32
  }
  func.func @transform_14(%arg0: i32) -> (i32, i32, i32) {
    %c0_i32 = arith.constant 0 : i32
    %c0_i32_0 = arith.constant 0 : i32
    %c0_i32_1 = arith.constant 0 : i32
    return %arg0, %c0_i32, %c0_i32_0 : i32, i32, i32
  }
  func.func @transform_15(%arg0: i32) -> (i32, i32, i32) {
    %c0_i32 = arith.constant 0 : i32
    %c0_i32_0 = arith.constant 0 : i32
    %c0_i32_1 = arith.constant 0 : i32
    return %arg0, %c0_i32, %c0_i32_0 : i32, i32, i32
  }
}

</mosaic_0001>

<bundles_post_ra>
// kernel: triple_ngram_lstm_forward.3
= control target key start
LH: loop header
LB: loop body
LE: loop exit
PB: predicated region body
PF: predicated region fallthrough
CT: control target
= control target key end

     0   :  { %vm41_vm0 = vcmask 261120   ;;  %s560_s0 = inlined_call_operand.vmem [shape: f32[3,8,32], index: 0, kind: input, shape index: {}]   ;;  %s561_s1 = inlined_call_operand.vmem [shape: f32[3,32,200], index: 1, kind: input, shape index: {}]   ;;  %s562_s2 = inlined_call_operand.vmem [shape: f32[1,200], index: 2, kind: input, shape index: {}]   ;;  %s563_s3 = inlined_call_operand.vmem [shape: f32[200,10], index: 3, kind: input, shape index: {}]   ;;  %s564_s4 = inlined_call_operand.vmem [shape: f32[1,10], index: 4, kind: input, shape index: {}]   ;;  %s565_s5 = inlined_call_operand.hbm [shape: f32[8,10], index: 5, kind: output, shape index: {}]  }
   0x1   :  { %v305_v0 = vld [vmem:[%s561_s1 + $0x70] sm:$0xff]  ;;  %v303_v1 = vld [vmem:[%s561_s1 + $0x60] sm:$0xff]  ;;  %v306_v2 = vld [vmem:[%s561_s1 + $0x78] sm:$0xff] }
   0x2   :  { %57 = vmatpush.msra.mxu0 %v305_v0  ;;  %v29_v3 = vld [vmem:[%s561_s1 + $0x38] sm:$0xff]  ;;  %v301_v4 = vld [vmem:[%s561_s1 + $0x50] sm:$0xff]  ;;  %77 = vmatpush.msra.mxu1 %v306_v2  ;;  %v304_v5 = vld [vmem:[%s561_s1 + $0x68] sm:$0xff] }
   0x3   :  { %120 = vmatpush.msra.mxu3 %v29_v3  ;;  %v27_v6 = vld [vmem:[%s561_s1 + $0x28] sm:$0xff]  ;;  %v302_v7 = vld [vmem:[%s561_s1 + $0x58] sm:$0xff]  ;;  %v299_v9 = vld [vmem:[%s561_s1 + $0x40] sm:$0xff] }
   0x4   :  { %58 = vmatpush.msra.mxu0 %v303_v1  ;;  %v25_v8 = vld [vmem:[%s561_s1 + $0x18] sm:$0xff]  ;;  %78 = vmatpush.msra.mxu1 %v304_v5  ;;  %v298_v10 = vld [vmem:[%s560_s0 + $0x8] sm:$0xff]  ;;  %v28_v12 = vld [vmem:[%s561_s1 + $0x30] sm:$0xff] }
   0x5   :  { %121 = vmatpush.msra.mxu3 %v27_v6  ;;  %v300_v11 = vld [vmem:[%s561_s1 + $0x48] sm:$0xff]  ;;  %v21_v14 = vld [vmem:[%s560_s0] sm:$0xff]  ;;  %v319_v16 = vld [vmem:[%s561_s1 + $0xb8] sm:$0xff] }
   0x6   :  { %59 = vmatpush.msra.mxu0 %v301_v4  ;;  %79 = vmatpush.msra.mxu1 %v302_v7  ;;  %v23_v13 = vld [vmem:[%s561_s1 + $0x8] sm:$0xff]  ;;  %v26_v15 = vld [vmem:[%s561_s1 + $0x20] sm:$0xff]  ;;  %v24_v17 = vld [vmem:[%s561_s1 + $0x10] sm:$0xff] }
   0x7   :  { %122 = vmatpush.msra.mxu3 %v25_v8  ;;  %v209_v18 = vld [vmem:[%s563_s3 + $0x78] sm:$0xff]  ;;  %v317_v19 = vld [vmem:[%s561_s1 + $0xa8] sm:$0xff] }
   0x8   :  { %60 = vmatpush.msra.mxu0 %v299_v9  ;;  %80 = vmatpush.msra.mxu1 %v300_v11 }
   0x9   :  { %307 = vmatmul.msk.f32.vlgmr.msra.gmra.mxu0 %vm41_vm0, %v298_v10  ;;  %123 = vmatpush.msra.mxu3 %v23_v13 }
   0xa   :  { %100 = vmatpush.msrb.mxu0 %v28_v12  ;;  %308 = vmatmul.msk.f32.vlgmr.msra.gmra.mxu1 %vm41_vm0, %v298_v10 }
   0xb   :  { %310 = vmatmul.msk.f32.vlgmr.msra.gmra.mxu3 %vm41_vm0, %v21_v14 }
   0xc   :  { %10 = vsyncpa [#allocation3], 0  ;;  %101 = vmatpush.msrb.mxu0 %v26_v15  ;;  %174 = vmatpush.msrb.mxu1 %v319_v16  ;;  %v208_v20 = vld [vmem:[%s563_s3 + $0x70] sm:$0xff]  ;;  %v22_v21 = vld [vmem:[%s561_s1] sm:$0xff]  ;;  %vm223_vm1 = vcmask 588800   ;;  %vm267_vm2 = vcmask 80896  }
   0xd   :  { %v315_v22 = vld [vmem:[%s561_s1 + $0x98] sm:$0xff]  ;;  %227 = vmatpush.msra.mxu2 %v209_v18  ;;  %v207_v23 = vld [vmem:[%s563_s3 + $0x68] sm:$0xff]  ;;  %v318_v24 = vld [vmem:[%s561_s1 + $0xb0] sm:$0xff]  ;;  %s289_s23 = sshll.u32 %s565_s5, 4  ;;  %s290_s23 = int_to_ptr.hbm [resolvable:$true] %s289_s23 }
   0xe   :  { %102 = vmatpush.msrb.mxu0 %v24_v17  ;;  %175 = vmatpush.msrb.mxu1 %v317_v19  ;;  %v313_v25 = vld [vmem:[%s561_s1 + $0x88] sm:$0xff]  ;;  %v311_v26 = vld [vmem:[%s560_s0 + $0x10] sm:$0xff]  ;;  %v206_v27 = vld [vmem:[%s563_s3 + $0x60] sm:$0xff] }
   0xf   :  { %228 = vmatpush.msra.mxu2 %v208_v20  ;;  %v316_v28 = vld [vmem:[%s561_s1 + $0xa0] sm:$0xff]  ;;  %v314_v29 = vld [vmem:[%s561_s1 + $0x90] sm:$0xff]  ;;  %v205_v31 = vld [vmem:[%s563_s3 + $0x58] sm:$0xff] }
  0x10   :  { %103 = vmatpush.msrb.mxu0 %v22_v21  ;;  %176 = vmatpush.msrb.mxu1 %v315_v22  ;;  %v312_v30 = vld [vmem:[%s561_s1 + $0x80] sm:$0xff]  ;;  %v204_v32 = vld [vmem:[%s563_s3 + $0x50] sm:$0xff]  ;;  %v203_v34 = vld [vmem:[%s563_s3 + $0x48] sm:$0xff] }
  0x11   :  { %309 = vmatmul.msk.f32.vlgmr.msrb.gmra.mxu0 %vm41_vm0, %v21_v14  ;;  %229 = vmatpush.msra.mxu2 %v207_v23  ;;  %v218_v33 = vld [vmem:[%s563_s3 + $0xc0] sm:$0xff]  ;;  %v217_v35 = vld [vmem:[%s563_s3 + $0xb8] sm:$0xff]  ;;  %v216_v37 = vld [vmem:[%s563_s3 + $0xb0] sm:$0xff] }
  0x12   :  { %154 = vmatpush.msra.mxu0 %v318_v24  ;;  %177 = vmatpush.msrb.mxu1 %v313_v25  ;;  %v202_v36 = vld [vmem:[%s563_s3 + $0x40] sm:$0xff]  ;;  %v201_v38 = vld [vmem:[%s563_s3 + $0x38] sm:$0xff]  ;;  %v215_v39 = vld [vmem:[%s563_s3 + $0xa8] sm:$0xff] }
  0x13   :  { %321 = vmatmul.msk.f32.vlgmr.msrb.gmra.mxu1 %vm41_vm0, %v311_v26  ;;  %230 = vmatpush.msra.mxu2 %v206_v27  ;;  %v200_v40 = vld [vmem:[%s563_s3 + $0x30] sm:$0xff]  ;;  %v214_v41 = vld [vmem:[%s563_s3 + $0xa0] sm:$0xff]  ;;  %v199_v42 = vld [vmem:[%s563_s3 + $0x28] sm:$0xff] }
  0x14   :  { %155 = vmatpush.msra.mxu0 %v316_v28  ;;  %254 = vmatpush.msrb.mxu3 %v218_v33  ;;  %v213_v43 = vld [vmem:[%s563_s3 + $0x98] sm:$0xff]  ;;  %v198_v44 = vld [vmem:[%s563_s3 + $0x20] sm:$0xff]  ;;  %v212_v45 = vld [vmem:[%s563_s3 + $0x90] sm:$0xff] }
  0x15   :  { %231 = vmatpush.msra.mxu2 %v205_v31  ;;  %v197_v46 = vld [vmem:[%s563_s3 + $0x18] sm:$0xff]  ;;  %v211_v47 = vld [vmem:[%s563_s3 + $0x88] sm:$0xff]  ;;  %v196_v48 = vld [vmem:[%s563_s3 + $0x10] sm:$0xff] }
  0x16   :  { %156 = vmatpush.msra.mxu0 %v314_v29  ;;  %255 = vmatpush.msrb.mxu3 %v217_v35  ;;  %v210_v49 = vld [vmem:[%s563_s3 + $0x80] sm:$0xff]  ;;  %v195_v50 = vld [vmem:[%s563_s3 + $0x8] sm:$0xff] }
  0x17   :  { %232 = vmatpush.msra.mxu2 %v204_v32  ;;  %v194_v51 = vld [vmem:[%s563_s3] sm:$0xff] }
  0x18   :  { %157 = vmatpush.msra.mxu0 %v312_v30  ;;  %256 = vmatpush.msrb.mxu3 %v216_v37  ;;  %v184_v54 = vld [vmem:[%s562_s2] sm:$0x3]  ;;  %s355_s2 = smov [#allocation2]  }
  0x19   :  { %320 = vmatmul.msk.f32.vlgmr.msra.gmra.mxu0 %vm41_vm0, %v311_v26  ;;  %233 = vmatpush.msra.mxu2 %v203_v34  ;;  %v187_v58 = vperm.slane %v184_v54, 1  ;;  %v186_v0 = vperm.slane %v184_v54, 0  ;;  %v324_v5 = vld [vmem:[%s564_s4] ss:$0 sm:$0xff]  ;;  %s287_s4 = sshll.u32 %s355_s2, 4  ;;  %s288_s4 = int_to_ptr.vmem [resolvable:$true] %s287_s4 }
  0x1a   :  { %257 = vmatpush.msrb.mxu3 %v215_v39 }
  0x1b   :  { %234 = vmatpush.msra.mxu2 %v202_v36 }
  0x1c   :  { %258 = vmatpush.msrb.mxu3 %v214_v41 }
  0x1d   :  { %235 = vmatpush.msra.mxu2 %v201_v38 }
  0x1e   :  { %259 = vmatpush.msrb.mxu3 %v213_v43 }
  0x1f   :  { %236 = vmatpush.msra.mxu2 %v200_v40 }
  0x20   :  { %260 = vmatpush.msrb.mxu3 %v212_v45 }
  0x21   :  { %237 = vmatpush.msra.mxu2 %v199_v42 }
  0x22   :  { %261 = vmatpush.msrb.mxu3 %v211_v47 }
  0x23   :  { %238 = vmatpush.msra.mxu2 %v198_v44 }
  0x24   :  { %262 = vmatpush.msrb.mxu3 %v210_v49 }
  0x25   :  { %239 = vmatpush.msra.mxu2 %v197_v46 }
  0x27   :  { %240 = vmatpush.msra.mxu2 %v196_v48 }
  0x29   :  { %241 = vmatpush.msra.mxu2 %v195_v50 }
  0x2b   :  { %242 = vmatpush.msra.mxu2 %v194_v51 }
  0x86   :  { %v62_v52 = vpop.f32.mrf.mxu0 }
  0x87   :  { %v82_v53 = vpop.f32.mrf.mxu1 }
  0x8e   :  { %v105_v55 = vpop.f32.mrf.mxu0  ;;  %v125_v56 = vpop.f32.mrf.mxu3 }
  0x8f   :  { %v126_v57 = vadd.f32 %v125_v56, %v82_v53  ;;  %v106_v62 = vadd.f32 %v105_v55, %v62_v52 }
  0x90   :  { %v179_v59 = vpop.f32.mrf.mxu1 }
  0x91   :  { %v183_v60 = vadd.f32 %v179_v59, %v126_v57 }
  0x93   :  { %v191_v61 = vadd.f32 %v187_v58, %v183_v60 }
  0x95   :  { %v193_v63 = vmax.f32 %v191_v61, 0.0 }
  0x96   :  { %v159_v1 = vpop.f32.mrf.mxu0 }
  0x97   :  { %v182_v2 = vadd.f32 %v159_v1, %v106_v62  ;;  %322 = vmatmul.msk.f32.vlgmr.msrb.gmra.mxu3 %vm223_vm1, %v193_v63 }
  0x99   :  { %v190_v3 = vadd.f32 %v186_v0, %v182_v2 }
  0x9b   :  { %v192_v4 = vmax.f32 %v190_v3, 0.0 }
  0x9d   :  { %243 = vmatmul.f32.vlgmr.msra.gmra.mxu2 %v192_v4 }
 0x11a   :  { %v264_v8 = vpop.f32.mrf.mxu3 }
 0x120   :  { %v244_v6 = vpop.f32.mrf.mxu2 }
 0x121   :  { %v245_v7 = vadd.f32 %v324_v5, %v244_v6 }
 0x123   :  { %v265_v9 = vadd.f32 %v264_v8, %v245_v7 }
 0x125   :  { %v268_v10 = vsel %vm267_vm2, %v265_v9, -inf }
 0x126   :  { %269 = vmax.xlane.f32.xlu0 %v268_v10 }
 0x199   :  { %v270_v11 = vpop.xlane.xlu0 %269 }
 0x19a   :  { %v271_v12 = vsub.f32 %v265_v9, %v270_v11 }
 0x19c   :  { %v272_v13 = vmul.f32 1.442695, %v271_v12 }
 0x19e   :  { %325 = vpow2.f32 %v272_v13 }
 0x1a4   :  { %v326_v14 = vpop.eup %325 }
 0x1a5   :  { %v274_v15 = vsel %vm267_vm2, %v326_v14, 0.0 }
 0x1a6   :  { %275 = vadd.xlane.f32.xlu0 %v274_v15 }
 0x219   :  { %v276_v16 = vpop.xlane.xlu0 %275 }
 0x21a   :  { %327 = vlog2.f32 %v276_v16 }
 0x220   :  { %v328_v17 = vpop.eup %327 }
 0x221   :  { %v278_v18 = vmul.f32 0.6931472, %v328_v17 }
 0x223   :  { %v279_v19 = vadd.f32 %v278_v18, %v270_v11 }
 0x225   :  { %v280_v20 = vsub.f32 %v265_v9, %v279_v19 }
 0x227   :  { %281 = vst.msk [vmem:[#allocation2] sm:$0xff] %vm267_vm2, %v280_v20 }
 0x228   :  { %292 = dma.vmem_to_hbm [thread:$0]  %s288_s4, 128, %s290_s23, [#allocation3]  }
 0x229   :  { %353 = dma.done.wait [#allocation3], 128  }
 0x22a   :  { %354 = vsyncadd [#allocation3], 4294967168 }
 0x22b   :  { %297 = vsyncpa [#allocation3], 1 }

// kernel: triple_ngram_lstm_forward.2
= control target key start
LH: loop header
LB: loop body
LE: loop exit
PB: predicated region body
PF: predicated region fallthrough
CT: control target
= control target key end

     0   :  { %s3893_s18 = smov 0   ;;  %s4624_s0 = inlined_call_operand.vmem [shape: f32[3,8,8,64], index: 0, kind: input, shape index: {}]   ;;  %s4625_s1 = inlined_call_operand.vmem [shape: f32[3,1,64,128], index: 1, kind: input, shape index: {}]   ;;  %s4626_s2 = inlined_call_operand.vmem [shape: f32[3,1,32,128], index: 2, kind: input, shape index: {}]   ;;  %s4627_s3 = inlined_call_operand.vmem [shape: f32[3,1,1,128], index: 3, kind: input, shape index: {}]   ;;  %s4628_s4 = inlined_call_operand.vmem [shape: f32[3,1,32,128], index: 4, kind: input, shape index: {}]   ;;  %s4629_s5 = inlined_call_operand.vmem [shape: f32[3,1,32,128], index: 5, kind: input, shape index: {}]   ;;  %s4630_s6 = inlined_call_operand.vmem [shape: f32[3,1,1,128], index: 6, kind: input, shape index: {}]   ;;  %s4631_s7 = inlined_call_operand.vmem [shape: f32[3,32,32], index: 7, kind: input, shape index: {}]   ;;  %s4632_s8 = inlined_call_operand.vmem [shape: f32[3,1,32], index: 8, kind: input, shape index: {}]   ;;  %s4633_s9 = inlined_call_operand.vmem [shape: f32[3,32,32], index: 9, kind: input, shape index: {}]   ;;  %s4634_s10 = inlined_call_operand.vmem [shape: f32[3,1,32], index: 10, kind: input, shape index: {}]   ;;  %s4635_s11 = inlined_call_operand.vmem [shape: f32[3,32,32], index: 11, kind: input, shape index: {}]   ;;  %s4636_s12 = inlined_call_operand.vmem [shape: f32[3,1,32], index: 12, kind: input, shape index: {}]   ;;  %s4637_s13 = inlined_call_operand.vmem [shape: f32[3,32,32], index: 13, kind: input, shape index: {}]   ;;  %s4638_s14 = inlined_call_operand.vmem [shape: f32[3,1,32], index: 14, kind: input, shape index: {}]   ;;  %s4639_s15 = inlined_call_operand.vmem [shape: f32[3,8,32], index: 15, kind: output, shape index: {}]  }
   0x1 LB: > { %s3465_s19 = sadd.s32 4294967295, %s3806_s18   ;;  %p3469_p0 = scmp.ge.s32.totalorder %s3806_s18, 1  ;;  %s3806_s18 = sphi %s3893_s18, %s25_s18  }
   0x2   : > { %p565_p1 = scmp.lt.s32.totalorder %s3806_s18, 4 }
   0x4   : > { %p566_p2 = pnand %p3469_p0, %p565_p1 }
   0x5   : > { %p670_p3 = scmp.lt.s32.totalorder (!%p566_p2), %s3465_s19, 2  ;;  %s3810_s25 = smov (!%p566_p2), 32  }
   0x6   : > { %569 = sbr.rel (%p566_p2) target bundleno = 10892 (0x2a8c), region = 80  ;;  %s3811_s26 = smov (!%p566_p2), 96  }
   0xb   : > { %vm835_vm0 = vcmask 261120   ;;  %v3808_v0 = vmov 0.0   ;;  %s4641_s19 = smov (!%p670_p3, %s3465_s19), 2  ;;  %vm757_vm1 = vcmask 523264   ;;  %vm2169_vm2 = vcmask 130048  }
   0xc   : > { %836 = vst.msk [vmem:[#allocation5] sm:$0xff] %vm835_vm0, %v3808_v0  ;;  %s3597_s20 = sshll.u32 %s4641_s19, 6  ;;  %s3909_s21 = sshll.u32 %s4641_s19, 5  ;;  %vm2378_vm3 = vcmask 64512  }
   0xd   : > { %837 = vst.msk [vmem:[#allocation6] sm:$0xff] %vm835_vm0, %v3808_v0  ;;  %s3916_s24 = scalar_lea.vmem %s4625_s1, %s3597_s20  ;;  %s684_s27 = scalar_lea.vmem %s4626_s2, %s3909_s21 }
   0xe   : > { %v752_v1 = vld [vmem:[%s3916_s24 + $0x38] sm:$0xff]  ;;  %v751_v2 = vld [vmem:[%s3916_s24 + $0x30] sm:$0xff]  ;;  %v750_v3 = vld [vmem:[%s3916_s24 + $0x28] sm:$0xff]  ;;  %s687_s30 = scalar_lea.vmem %s4627_s3, %s4641_s19  ;;  %s3956_s22 = scalar_lea.vmem %s4624_s0, %s3597_s20 }
   0xf   : > { %790 = vmatpush.msra.mxu0 %v752_v1  ;;  %v3925_v4 = vld [vmem:[%s684_s27 + $0x18] sm:$0xff]  ;;  %v3927_v5 = vld [vmem:[%s684_s27 + $0x10] sm:$0xff]  ;;  %v749_v6 = vld [vmem:[%s3916_s24 + $0x20] sm:$0xff]  ;;  %s692_s29 = scalar_lea.vmem %s4628_s4, %s3909_s21  ;;  %s700_s17 = scalar_lea.vmem %s4630_s6, %s4641_s19 }
  0x10   : > { %855 = vmatpush.msra.mxu1 %v3925_v4  ;;  %v3935_v7 = vld [vmem:[%s684_s27 + $0x8] sm:$0xff]  ;;  %920 = vmatpush.msra.mxu2 %v3925_v4  ;;  %v748_v8 = vld [vmem:[%s3916_s24 + $0x18] sm:$0xff]  ;;  %v3941_v9 = vld [vmem:[%s684_s27] sm:$0xff]  ;;  %s697_s23 = scalar_lea.vmem %s4629_s5, %s3909_s21  ;;  %s724_s16 = scalar_lea.vmem %s4636_s12, %s4641_s19 }
  0x11   : > { %791 = vmatpush.msra.mxu0 %v751_v2  ;;  %986 = vmatpush.msra.mxu3 %v3925_v4  ;;  %v747_v11 = vld [vmem:[%s3916_s24 + $0x10] sm:$0xff]  ;;  %v746_v12 = vld [vmem:[%s3916_s24 + $0x8] sm:$0xff]  ;;  %v745_v13 = vld [vmem:[%s3916_s24] sm:$0xff]  ;;  %s3809_s24 = smov 64   ;;  %s721_s20 = scalar_lea.vmem %s4635_s11, %s3909_s21 }
  0x12   : > { %856 = vmatpush.msra.mxu1 %v3927_v5  ;;  %921 = vmatpush.msra.mxu2 %v3927_v5  ;;  %v737_v14 = vld [vmem:[%s3956_s22] sm:$0xff]  ;;  %v738_v35 = vld [vmem:[%s3956_s22 + $0x8] sm:$0xff]  ;;  %v739_v60 = vld [vmem:[%s3956_s22 + $0x10] sm:$0xff]  ;;  %s713_s27 = scalar_lea.vmem %s4633_s9, %s3909_s21 }
  0x13   : > { %792 = vmatpush.msra.mxu0 %v750_v3  ;;  %987 = vmatpush.msra.mxu3 %v3927_v5  ;;  %v839_v10 = vld [vmem:[#allocation5] sm:$0xff] }
  0x14   : > { %857 = vmatpush.msra.mxu1 %v3935_v7  ;;  %922 = vmatpush.msra.mxu2 %v3935_v7  ;;  %v3985_v15 = vld [vmem:[%s687_s30] ss:$0 sm:$0xff]  ;;  %v869_v21 = vld [vmem:[#allocation6] sm:$0xff]  ;;  %s705_s30 = scalar_lea.vmem %s4631_s7, %s3909_s21 }
  0x15   : > { %793 = vmatpush.msra.mxu0 %v749_v6  ;;  %988 = vmatpush.msra.mxu3 %v3935_v7 }
  0x16   : > { %858 = vmatpush.msra.mxu1 %v3941_v9  ;;  %923 = vmatpush.msra.mxu2 %v3941_v9 }
  0x17   : > { %794 = vmatpush.msra.mxu0 %v748_v8  ;;  %3497 = vmatmul.msk.f32.vlgmr.msra.gmra.mxu1 %vm835_vm0, %v839_v10 }
  0x18   : > { %989 = vmatpush.msra.mxu3 %v3941_v9  ;;  %1052 = vmatpush.msrb.mxu1 %v3925_v4 }
  0x19   : > { %795 = vmatpush.msra.mxu0 %v747_v11  ;;  %1118 = vmatpush.msrb.mxu2 %v3925_v4 }
  0x1a   : > { %1184 = vmatpush.msrb.mxu3 %v3925_v4  ;;  %1053 = vmatpush.msrb.mxu1 %v3927_v5 }
  0x1b   : > { %796 = vmatpush.msra.mxu0 %v746_v12  ;;  %1119 = vmatpush.msrb.mxu2 %v3927_v5 }
  0x1c   : > { %1185 = vmatpush.msrb.mxu3 %v3927_v5  ;;  %1054 = vmatpush.msrb.mxu1 %v3935_v7 }
  0x1d   : > { %797 = vmatpush.msra.mxu0 %v745_v13  ;;  %1120 = vmatpush.msrb.mxu2 %v3935_v7 }
  0x1e   : > { %3489 = vmatmul.msk.f32.vlgmr.msra.gmra.mxu0 %vm757_vm1, %v737_v14  ;;  %1186 = vmatpush.msrb.mxu3 %v3935_v7 }
  0x1f   : > { %1055 = vmatpush.msrb.mxu1 %v3941_v9  ;;  %1121 = vmatpush.msrb.mxu2 %v3941_v9 }
  0x20   : > { %1187 = vmatpush.msrb.mxu3 %v3941_v9 }
  0x21   : > { %1250 = vmatpush.msra.mxu1 %v3925_v4 }
  0x23   : > { %1251 = vmatpush.msra.mxu1 %v3927_v5 }
  0x25   : > { %1252 = vmatpush.msra.mxu1 %v3935_v7 }
  0x26   : > { %3490 = vmatmul.msk.f32.gmra.mxu0 %vm757_vm1, %v738_v35 }
  0x27   : > { %1253 = vmatpush.msra.mxu1 %v3941_v9 }
  0x2e   : > { %3491 = vmatmul.msk.f32.gmra.mxu0 %vm757_vm1, %v739_v60 }
  0x94   : > { %v860_v17 = vpop.f32.mrf.mxu1 }
  0x9b   : > { %v799_v16 = vpop.f32.mrf.mxu0 }
  0x9c   : > { %v800_v18 = vadd.f32 %v3985_v15, %v799_v16 }
  0x9e   : > { %v863_v19 = vadd.f32 %v860_v17, %v800_v18 }
  0xa0   : > { %3640 = vtanh.f32 %v863_v19  ;;  %v864_v22 = vmul.f32 0.5, %v863_v19 }
  0xa2   : > { %3642 = vtanh.f32 %v864_v22 }
  0xa3   : > { %v802_v40 = vpop.f32.mrf.mxu0 }
  0xa4   : > { %v803_v41 = vadd.f32 %v3985_v15, %v802_v40 }
  0xa6   : > { %v3641_v20 = vpop.eup %3640 }
  0xa7   : > { %876 = vrot.lane.b32.xlu0 %v3641_v20, %s3809_s24 }
  0xa8   : > { %v3643_v23 = vpop.eup %3642 }
  0xa9   : > { %v866_v24 = vadd.f32 1.0, %v3643_v23 }
  0xab   : > { %v867_v25 = vmul.f32 0.5, %v866_v24  ;;  %v805_v63 = vpop.f32.mrf.mxu0 }
  0xac   : > { %v806_v1 = vadd.f32 %v3985_v15, %v805_v63 }
  0xaf   : > { %871 = vrot.lane.b32.xlu0 %v869_v21, %s3810_s25  ;;  %v740_v21 = vld [vmem:[%s3956_s22 + $0x18] sm:$0xff] }
  0xb0   : > { %3492 = vmatmul.msk.f32.gmra.mxu0 %vm757_vm1, %v740_v21 }
 0x119   : > { %v877_v26 = vpop.permute.xlu0 %876 }
 0x11a   : > { %v879_v27 = vmul.f32 %v877_v26, %v867_v25 }
 0x11c   : > { %881 = vrot.lane.b32.xlu1 %v879_v27, %s3810_s25 }
 0x121   : > { %v872_v28 = vpop.permute.xlu0 %871 }
 0x122   : > { %v874_v29 = vmul.f32 %v872_v28, %v867_v25 }
 0x12d   : > { %v808_v24 = vpop.f32.mrf.mxu0 }
 0x18e   : > { %v882_v30 = vpop.permute.xlu1 %881 }
 0x18f   : > { %v884_v31 = vadd.f32 %v882_v30, %v874_v29 }
 0x191   : > { %3644 = vtanh.f32 %v884_v31 }
 0x197   : > { %v3645_v32 = vpop.eup %3644 }
 0x198   : > { %887 = vrot.lane.b32.xlu1 %v3645_v32, %s3809_s24 }
 0x20a   : > { %v888_v33 = vpop.permute.xlu1 %887 }
 0x20b   : > { %v890_v34 = vmul.f32 %v888_v33, %v867_v25  ;;  %v809_v25 = vadd.f32 %v3985_v15, %v808_v24 }
 0x20d   : > { %897 = vrot.lane.b32.xlu2 %v890_v34, %s3810_s25 }
 0x215   : > { %892 = vrot.lane.b32.xlu2 %v884_v31, %s3811_s26 }
 0x267   : > { %v898_v36 = vpop.permute.xlu2 %897 }
 0x268   : > { %900 = vst.msk [vmem:[#allocation5] sm:$0xff] %vm835_vm0, %v898_v36 }
 0x269   : > { %901 = vst.msk [vmem:[#allocation3] sm:$0xff] %vm835_vm0, %v898_v36 }
 0x26f   : > { %v893_v37 = vpop.permute.xlu2 %892  ;;  %v904_v38 = vld [vmem:[#allocation5] sm:$0xff] }
 0x270   : > { %895 = vst.msk [vmem:[#allocation6] sm:$0xff] %vm835_vm0, %v893_v37  ;;  %3498 = vmatmul.msk.f32.vlgmr.msra.gmra.mxu2 %vm835_vm0, %v904_v38 }
 0x271   : > { %1316 = vmatpush.msra.mxu2 %v3925_v4 }
 0x273   : > { %1317 = vmatpush.msra.mxu2 %v3927_v5 }
 0x275   : > { %1318 = vmatpush.msra.mxu2 %v3935_v7 }
 0x277   : > { %v934_v39 = vld [vmem:[#allocation6] sm:$0xff]  ;;  %1319 = vmatpush.msra.mxu2 %v3941_v9 }
 0x278   : > { %936 = vrot.lane.b32.xlu1 %v934_v39, %s3810_s25 }
 0x2ea   : > { %v937_v51 = vpop.permute.xlu1 %936 }
 0x2f3   : > { %v925_v42 = vpop.f32.mrf.mxu2 }
 0x2f4   : > { %v928_v43 = vadd.f32 %v925_v42, %v803_v41 }
 0x2f6   : > { %3646 = vtanh.f32 %v928_v43  ;;  %v929_v45 = vmul.f32 0.5, %v928_v43 }
 0x2f8   : > { %3648 = vtanh.f32 %v929_v45 }
 0x2fc   : > { %v3647_v44 = vpop.eup %3646 }
 0x2fd   : > { %941 = vrot.lane.b32.xlu0 %v3647_v44, %s3809_s24  ;;  %v741_v44 = vld [vmem:[%s3956_s22 + $0x20] sm:$0xff] }
 0x2fe   : > { %v3649_v46 = vpop.eup %3648  ;;  %3493 = vmatmul.msk.f32.gmra.mxu0 %vm757_vm1, %v741_v44 }
 0x2ff   : > { %v931_v47 = vadd.f32 1.0, %v3649_v46 }
 0x301   : > { %v932_v48 = vmul.f32 0.5, %v931_v47 }
 0x303   : > { %v939_v52 = vmul.f32 %v937_v51, %v932_v48 }
 0x36f   : > { %v942_v49 = vpop.permute.xlu0 %941 }
 0x370   : > { %v944_v50 = vmul.f32 %v942_v49, %v932_v48 }
 0x372   : > { %946 = vrot.lane.b32.xlu2 %v944_v50, %s3810_s25 }
 0x37b   : > { %v811_v47 = vpop.f32.mrf.mxu0 }
 0x3cc   : > { %v947_v53 = vpop.permute.xlu2 %946 }
 0x3cd   : > { %v949_v54 = vadd.f32 %v947_v53, %v939_v52 }
 0x3cf   : > { %3650 = vtanh.f32 %v949_v54  ;;  %957 = vrot.lane.b32.xlu2 %v949_v54, %s3811_s26 }
 0x3d5   : > { %v3651_v55 = vpop.eup %3650 }
 0x3d6   : > { %952 = vrot.lane.b32.xlu0 %v3651_v55, %s3809_s24 }
 0x429   : > { %v958_v56 = vpop.permute.xlu2 %957 }
 0x42a   : > { %960 = vst.msk [vmem:[#allocation6] sm:$0xff] %vm835_vm0, %v958_v56 }
 0x431   : > { %v1000_v59 = vld [vmem:[#allocation6] sm:$0xff] }
 0x448   : > { %v953_v57 = vpop.permute.xlu0 %952 }
 0x449   : > { %v955_v58 = vmul.f32 %v953_v57, %v932_v48  ;;  %v812_v48 = vadd.f32 %v3985_v15, %v811_v47 }
 0x44b   : > { %962 = vrot.lane.b32.xlu1 %v955_v58, %s3810_s25 }
 0x453   : > { %1002 = vrot.lane.b32.xlu1 %v1000_v59, %s3810_s25 }
 0x4bd   : > { %v963_v61 = vpop.permute.xlu1 %962 }
 0x4be   : > { %965 = vst.msk [vmem:[#allocation5] sm:$0xff] %vm835_vm0, %v963_v61 }
 0x4bf   : > { %967 = vst.msk [vmem:[#allocation3 + $0x8] sm:$0xff] %vm835_vm0, %v963_v61 }
 0x4c5   : > { %v970_v62 = vld [vmem:[#allocation5] sm:$0xff]  ;;  %v1003_v11 = vpop.permute.xlu1 %1002 }
 0x4c6   : > { %3499 = vmatmul.msk.f32.vlgmr.msra.gmra.mxu3 %vm835_vm0, %v970_v62 }
 0x549   : > { %v991_v2 = vpop.f32.mrf.mxu3 }
 0x54a   : > { %v994_v3 = vadd.f32 %v991_v2, %v806_v1 }
 0x54c   : > { %3652 = vtanh.f32 %v994_v3  ;;  %v995_v5 = vmul.f32 0.5, %v994_v3 }
 0x54e   : > { %3654 = vtanh.f32 %v995_v5  ;;  %v1374_v5 = vld [vmem:[%s692_s29 + $0x10] sm:$0xff] }
 0x552   : > { %v3653_v4 = vpop.eup %3652 }
 0x553   : > { %1007 = vrot.lane.b32.xlu0 %v3653_v4, %s3809_s24  ;;  %v1375_v4 = vld [vmem:[%s692_s29 + $0x18] sm:$0xff] }
 0x554   : > { %v3655_v6 = vpop.eup %3654  ;;  %1416 = vmatpush.msra.mxu3 %v1375_v4 }
 0x555   : > { %v997_v7 = vadd.f32 1.0, %v3655_v6  ;;  %v742_v6 = vld [vmem:[%s3956_s22 + $0x28] sm:$0xff] }
 0x556   : > { %3494 = vmatmul.msk.f32.gmra.mxu0 %vm757_vm1, %v742_v6  ;;  %1417 = vmatpush.msra.mxu3 %v1374_v5 }
 0x557   : > { %v998_v8 = vmul.f32 0.5, %v997_v7  ;;  %v1373_v7 = vld [vmem:[%s692_s29 + $0x8] sm:$0xff] }
 0x558   : > { %1418 = vmatpush.msra.mxu3 %v1373_v7 }
 0x559   : > { %v1005_v12 = vmul.f32 %v1003_v11, %v998_v8  ;;  %v1364_v11 = vld [vmem:[#allocation3] sm:$0xff] }
 0x5c5   : > { %v1008_v9 = vpop.permute.xlu0 %1007 }
 0x5c6   : > { %v1010_v10 = vmul.f32 %v1008_v9, %v998_v8 }
 0x5c8   : > { %1012 = vrot.lane.b32.xlu2 %v1010_v10, %s3810_s25 }
 0x622   : > { %v1013_v13 = vpop.permute.xlu2 %1012 }
 0x623   : > { %v1015_v14 = vadd.f32 %v1013_v13, %v1005_v12  ;;  %v1365_v12 = vld [vmem:[#allocation3 + $0x8] sm:$0xff] }
 0x625   : > { %3656 = vtanh.f32 %v1015_v14  ;;  %1023 = vrot.lane.b32.xlu2 %v1015_v14, %s3811_s26 }
 0x62b   : > { %v3657_v16 = vpop.eup %3656 }
 0x62c   : > { %1018 = vrot.lane.b32.xlu0 %v3657_v16, %s3809_s24 }
 0x67f   : > { %v1024_v17 = vpop.permute.xlu2 %1023 }
 0x680   : > { %1026 = vst.msk [vmem:[#allocation6] sm:$0xff] %vm835_vm0, %v1024_v17  ;;  %v814_v17 = vpop.f32.mrf.mxu0 }
 0x687   : > { %v1066_v20 = vld [vmem:[#allocation6] sm:$0xff] }
 0x69e   : > { %v1019_v18 = vpop.permute.xlu0 %1018 }
 0x69f   : > { %v1021_v19 = vmul.f32 %v1019_v18, %v998_v8  ;;  %v1372_v8 = vld [vmem:[%s692_s29] sm:$0xff]  ;;  %v815_v18 = vadd.f32 %v3985_v15, %v814_v17 }
 0x6a0   : > { %1419 = vmatpush.msra.mxu3 %v1372_v8 }
 0x6a1   : > { %1028 = vrot.lane.b32.xlu1 %v1021_v19, %s3810_s25 }
 0x6a9   : > { %1068 = vrot.lane.b32.xlu1 %v1066_v20, %s3810_s25 }
 0x713   : > { %v1029_v22 = vpop.permute.xlu1 %1028 }
 0x714   : > { %1031 = vst.msk [vmem:[#allocation5] sm:$0xff] %vm835_vm0, %v1029_v22 }
 0x715   : > { %1033 = vst.msk [vmem:[#allocation3 + $0x10] sm:$0xff] %vm835_vm0, %v1029_v22 }
 0x71b   : > { %v1036_v23 = vld [vmem:[#allocation5] sm:$0xff]  ;;  %v1069_v35 = vpop.permute.xlu1 %1068 }
 0x71c   : > { %3500 = vmatmul.msk.f32.vlgmr.msrb.gmra.mxu1 %vm835_vm0, %v1036_v23  ;;  %v1366_v13 = vld [vmem:[#allocation3 + $0x10] sm:$0xff] }
 0x799   : > { %v1057_v26 = vpop.f32.mrf.mxu1 }
 0x79a   : > { %v1060_v27 = vadd.f32 %v1057_v26, %v809_v25 }
 0x79c   : > { %3658 = vtanh.f32 %v1060_v27  ;;  %v1061_v29 = vmul.f32 0.5, %v1060_v27 }
 0x79e   : > { %3660 = vtanh.f32 %v1061_v29 }
 0x7a2   : > { %v3659_v28 = vpop.eup %3658 }
 0x7a3   : > { %1073 = vrot.lane.b32.xlu0 %v3659_v28, %s3809_s24 }
 0x7a4   : > { %v3661_v30 = vpop.eup %3660 }
 0x7a5   : > { %v1063_v31 = vadd.f32 1.0, %v3661_v30 }
 0x7a7   : > { %v1064_v32 = vmul.f32 0.5, %v1063_v31 }
 0x7a9   : > { %v1071_v36 = vmul.f32 %v1069_v35, %v1064_v32 }
 0x815   : > { %v1074_v33 = vpop.permute.xlu0 %1073 }
 0x816   : > { %v1076_v34 = vmul.f32 %v1074_v33, %v1064_v32 }
 0x818   : > { %1078 = vrot.lane.b32.xlu2 %v1076_v34, %s3810_s25 }
 0x872   : > { %v1079_v37 = vpop.permute.xlu2 %1078 }
 0x873   : > { %v1081_v38 = vadd.f32 %v1079_v37, %v1071_v36  ;;  %v743_v37 = vld [vmem:[%s3956_s22 + $0x30] sm:$0xff] }
 0x874   : > { %3495 = vmatmul.msk.f32.gmra.mxu0 %vm757_vm1, %v743_v37 }
 0x875   : > { %3662 = vtanh.f32 %v1081_v38  ;;  %1089 = vrot.lane.b32.xlu2 %v1081_v38, %s3811_s26 }
 0x87b   : > { %v3663_v39 = vpop.eup %3662 }
 0x87c   : > { %1084 = vrot.lane.b32.xlu0 %v3663_v39, %s3809_s24 }
 0x8cf   : > { %v1090_v40 = vpop.permute.xlu2 %1089 }
 0x8d0   : > { %1092 = vst.msk [vmem:[#allocation6] sm:$0xff] %vm835_vm0, %v1090_v40 }
 0x8d7   : > { %v1132_v43 = vld [vmem:[#allocation6] sm:$0xff] }
 0x8ee   : > { %v1085_v41 = vpop.permute.xlu0 %1084 }
 0x8ef   : > { %v1087_v42 = vmul.f32 %v1085_v41, %v1064_v32 }
 0x8f1   : > { %1094 = vrot.lane.b32.xlu1 %v1087_v42, %s3810_s25  ;;  %v817_v41 = vpop.f32.mrf.mxu0 }
 0x8f2   : > { %v818_v42 = vadd.f32 %v3985_v15, %v817_v41 }
 0x8f9   : > { %1134 = vrot.lane.b32.xlu1 %v1132_v43, %s3810_s25 }
 0x963   : > { %v1095_v45 = vpop.permute.xlu1 %1094 }
 0x964   : > { %1097 = vst.msk [vmem:[#allocation5] sm:$0xff] %vm835_vm0, %v1095_v45 }
 0x965   : > { %1099 = vst.msk [vmem:[#allocation3 + $0x18] sm:$0xff] %vm835_vm0, %v1095_v45 }
 0x96b   : > { %v1102_v46 = vld [vmem:[#allocation5] sm:$0xff]  ;;  %v1135_v58 = vpop.permute.xlu1 %1134 }
 0x96c   : > { %3501 = vmatmul.msk.f32.vlgmr.msrb.gmra.mxu2 %vm835_vm0, %v1102_v46  ;;  %v1367_v14 = vld [vmem:[#allocation3 + $0x18] sm:$0xff] }
 0x9ef   : > { %v1123_v49 = vpop.f32.mrf.mxu2 }
 0x9f0   : > { %v1126_v50 = vadd.f32 %v1123_v49, %v812_v48 }
 0x9f2   : > { %3664 = vtanh.f32 %v1126_v50  ;;  %v1127_v52 = vmul.f32 0.5, %v1126_v50 }
 0x9f4   : > { %3666 = vtanh.f32 %v1127_v52 }
 0x9f8   : > { %v3665_v51 = vpop.eup %3664 }
 0x9f9   : > { %1139 = vrot.lane.b32.xlu0 %v3665_v51, %s3809_s24 }
 0x9fa   : > { %v3667_v53 = vpop.eup %3666 }
 0x9fb   : > { %v1129_v54 = vadd.f32 1.0, %v3667_v53 }
 0x9fd   : > { %v1130_v55 = vmul.f32 0.5, %v1129_v54 }
 0x9ff   : > { %v1137_v59 = vmul.f32 %v1135_v58, %v1130_v55 }
 0xa6b   : > { %v1140_v56 = vpop.permute.xlu0 %1139 }
 0xa6c   : > { %v1142_v57 = vmul.f32 %v1140_v56, %v1130_v55 }
 0xa6e   : > { %1144 = vrot.lane.b32.xlu2 %v1142_v57, %s3810_s25 }
 0xac8   : > { %v1145_v60 = vpop.permute.xlu2 %1144 }
 0xac9   : > { %v1147_v61 = vadd.f32 %v1145_v60, %v1137_v59 }
 0xacb   : > { %3668 = vtanh.f32 %v1147_v61  ;;  %1155 = vrot.lane.b32.xlu2 %v1147_v61, %s3811_s26  ;;  %v744_v61 = vld [vmem:[%s3956_s22 + $0x38] sm:$0xff]  ;;  %s708_s22 = scalar_lea.vmem %s4632_s8, %s4641_s19 }
 0xacc   : > { %3496 = vmatmul.msk.f32.gmra.mxu0 %vm757_vm1, %v744_v61 }
 0xad1   : > { %v3669_v62 = vpop.eup %3668 }
 0xad2   : > { %1150 = vrot.lane.b32.xlu0 %v3669_v62, %s3809_s24 }
 0xb25   : > { %v1156_v63 = vpop.permute.xlu2 %1155 }
 0xb26   : > { %1158 = vst.msk [vmem:[#allocation6] sm:$0xff] %vm835_vm0, %v1156_v63 }
 0xb2d   : > { %v1198_v3 = vld [vmem:[#allocation6] sm:$0xff] }
 0xb44   : > { %v1151_v1 = vpop.permute.xlu0 %1150 }
 0xb45   : > { %v1153_v2 = vmul.f32 %v1151_v1, %v1130_v55 }
 0xb47   : > { %1160 = vrot.lane.b32.xlu1 %v1153_v2, %s3810_s25 }
 0xb49   : > { %v820_v2 = vpop.f32.mrf.mxu0 }
 0xb4f   : > { %1200 = vrot.lane.b32.xlu1 %v1198_v3, %s3810_s25  ;;  %v821_v3 = vadd.f32 %v3985_v15, %v820_v2 }
 0xbb9   : > { %v1161_v9 = vpop.permute.xlu1 %1160 }
 0xbba   : > { %1163 = vst.msk [vmem:[#allocation5] sm:$0xff] %vm835_vm0, %v1161_v9 }
 0xbbb   : > { %1165 = vst.msk [vmem:[#allocation3 + $0x20] sm:$0xff] %vm835_vm0, %v1161_v9 }
 0xbc1   : > { %v1168_v10 = vld [vmem:[#allocation5] sm:$0xff]  ;;  %v1201_v28 = vpop.permute.xlu1 %1200 }
 0xbc2   : > { %3502 = vmatmul.msk.f32.vlgmr.msrb.gmra.mxu3 %vm835_vm0, %v1168_v10  ;;  %v1368_v16 = vld [vmem:[#allocation3 + $0x20] sm:$0xff] }
 0xbca   : > { %3505 = vmatmul.msk.f32.vlgmr.msra.gmra.mxu3 %vm835_vm0, %v1364_v11 }
 0xbd2   : > { %3506 = vmatmul.msk.f32.gmra.mxu3 %vm835_vm0, %v1365_v12 }
 0xbda   : > { %3507 = vmatmul.msk.f32.gmra.mxu3 %vm835_vm0, %v1366_v13 }
 0xbe2   : > { %3508 = vmatmul.msk.f32.gmra.mxu3 %vm835_vm0, %v1367_v14 }
 0xbea   : > { %3509 = vmatmul.msk.f32.gmra.mxu3 %vm835_vm0, %v1368_v16 }
 0xc45   : > { %v1189_v19 = vpop.f32.mrf.mxu3 }
 0xc46   : > { %v1192_v20 = vadd.f32 %v1189_v19, %v815_v18 }
 0xc48   : > { %3670 = vtanh.f32 %v1192_v20  ;;  %v1193_v22 = vmul.f32 0.5, %v1192_v20 }
 0xc4a   : > { %3672 = vtanh.f32 %v1193_v22  ;;  %v4113_v22 = vld [vmem:[%s697_s23 + $0x10] sm:$0xff] }
 0xc4e   : > { %v3671_v21 = vpop.eup %3670 }
 0xc4f   : > { %1205 = vrot.lane.b32.xlu0 %v3671_v21, %s3809_s24  ;;  %v4111_v21 = vld [vmem:[%s697_s23 + $0x18] sm:$0xff] }
 0xc50   : > { %v3673_v23 = vpop.eup %3672  ;;  %1476 = vmatpush.msrb.mxu1 %v4111_v21  ;;  %1540 = vmatpush.msrb.mxu2 %v4111_v21 }
 0xc51   : > { %v1195_v24 = vadd.f32 1.0, %v3673_v23  ;;  %v4117_v23 = vld [vmem:[%s697_s23 + $0x8] sm:$0xff] }
 0xc52   : > { %1477 = vmatpush.msrb.mxu1 %v4113_v22  ;;  %1541 = vmatpush.msrb.mxu2 %v4113_v22 }
 0xc53   : > { %v1196_v25 = vmul.f32 0.5, %v1195_v24  ;;  %v4123_v24 = vld [vmem:[%s697_s23] sm:$0xff]  ;;  %s732_s23 = scalar_lea.vmem %s4638_s14, %s4641_s19 }
 0xc54   : > { %1478 = vmatpush.msrb.mxu1 %v4117_v23  ;;  %1542 = vmatpush.msrb.mxu2 %v4117_v23 }
 0xc55   : > { %v1203_v29 = vmul.f32 %v1201_v28, %v1196_v25 }
 0xc56   : > { %1479 = vmatpush.msrb.mxu1 %v4123_v24  ;;  %1543 = vmatpush.msrb.mxu2 %v4123_v24 }
 0xcc1   : > { %v1206_v26 = vpop.permute.xlu0 %1205 }
 0xcc2   : > { %v1208_v27 = vmul.f32 %v1206_v26, %v1196_v25 }
 0xcc4   : > { %1210 = vrot.lane.b32.xlu2 %v1208_v27, %s3810_s25 }
 0xd1e   : > { %v1211_v30 = vpop.permute.xlu2 %1210 }
 0xd1f   : > { %v1213_v31 = vadd.f32 %v1211_v30, %v1203_v29  ;;  %v4151_v29 = vld [vmem:[%s700_s17] ss:$0 sm:$0xff] }
 0xd21   : > { %3674 = vtanh.f32 %v1213_v31  ;;  %1221 = vrot.lane.b32.xlu2 %v1213_v31, %s3811_s26 }
 0xd27   : > { %v3675_v32 = vpop.eup %3674 }
 0xd28   : > { %1216 = vrot.lane.b32.xlu0 %v3675_v32, %s3809_s24 }
 0xd7b   : > { %v1222_v33 = vpop.permute.xlu2 %1221 }
 0xd7c   : > { %1224 = vst.msk [vmem:[#allocation6] sm:$0xff] %vm835_vm0, %v1222_v33 }
 0xd83   : > { %v1264_v36 = vld [vmem:[#allocation6] sm:$0xff] }
 0xd9a   : > { %v1217_v34 = vpop.permute.xlu0 %1216 }
 0xd9b   : > { %v1219_v35 = vmul.f32 %v1217_v34, %v1196_v25 }
 0xd9d   : > { %1226 = vrot.lane.b32.xlu1 %v1219_v35, %s3810_s25 }
 0xda5   : > { %1266 = vrot.lane.b32.xlu1 %v1264_v36, %s3810_s25 }
 0xe0f   : > { %v1227_v38 = vpop.permute.xlu1 %1226 }
 0xe10   : > { %1229 = vst.msk [vmem:[#allocation5] sm:$0xff] %vm835_vm0, %v1227_v38 }
 0xe11   : > { %1231 = vst.msk [vmem:[#allocation3 + $0x28] sm:$0xff] %vm835_vm0, %v1227_v38 }
 0xe17   : > { %v1234_v39 = vld [vmem:[#allocation5] sm:$0xff]  ;;  %v1267_v52 = vpop.permute.xlu1 %1266 }
 0xe18   : > { %3503 = vmatmul.msk.f32.vlgmr.msra.gmra.mxu1 %vm835_vm0, %v1234_v39  ;;  %v1369_v40 = vld [vmem:[#allocation3 + $0x28] sm:$0xff] }
 0xe19   : > { %3510 = vmatmul.msk.f32.gmra.mxu3 %vm835_vm0, %v1369_v40  ;;  %1605 = vmatpush.msra.mxu1 %v4111_v21 }
 0xe1b   : > { %1606 = vmatpush.msra.mxu1 %v4113_v22 }
 0xe1d   : > { %1607 = vmatpush.msra.mxu1 %v4117_v23 }
 0xe1f   : > { %1608 = vmatpush.msra.mxu1 %v4123_v24 }
 0xe95   : > { %v1255_v43 = vpop.f32.mrf.mxu1 }
 0xe96   : > { %v1258_v44 = vadd.f32 %v1255_v43, %v818_v42 }
 0xe98   : > { %3676 = vtanh.f32 %v1258_v44  ;;  %v1259_v46 = vmul.f32 0.5, %v1258_v44 }
 0xe9a   : > { %3678 = vtanh.f32 %v1259_v46 }
 0xe9e   : > { %v3677_v45 = vpop.eup %3676 }
 0xe9f   : > { %1271 = vrot.lane.b32.xlu0 %v3677_v45, %s3809_s24 }
 0xea0   : > { %v3679_v47 = vpop.eup %3678 }
 0xea1   : > { %v1261_v48 = vadd.f32 1.0, %v3679_v47 }
 0xea3   : > { %v1262_v49 = vmul.f32 0.5, %v1261_v48 }
 0xea5   : > { %v1269_v53 = vmul.f32 %v1267_v52, %v1262_v49  ;;  %v2108_v52 = vld [vmem:[%s721_s20] sm:$0xff] }
 0xf11   : > { %v1272_v50 = vpop.permute.xlu0 %1271 }
 0xf12   : > { %v1274_v51 = vmul.f32 %v1272_v50, %v1262_v49  ;;  %v2110_v50 = vld [vmem:[%s721_s20 + $0x10] sm:$0xff] }
 0xf14   : > { %1276 = vrot.lane.b32.xlu2 %v1274_v51, %s3810_s25  ;;  %v2109_v51 = vld [vmem:[%s721_s20 + $0x8] sm:$0xff] }
 0xf6e   : > { %v1277_v54 = vpop.permute.xlu2 %1276 }
 0xf6f   : > { %v1279_v55 = vadd.f32 %v1277_v54, %v1269_v53 }
 0xf71   : > { %3680 = vtanh.f32 %v1279_v55  ;;  %1287 = vrot.lane.b32.xlu2 %v1279_v55, %s3811_s26 }
 0xf77   : > { %v3681_v56 = vpop.eup %3680 }
 0xf78   : > { %1282 = vrot.lane.b32.xlu0 %v3681_v56, %s3809_s24 }
 0xfcb   : > { %v1288_v57 = vpop.permute.xlu2 %1287 }
 0xfcc   : > { %1290 = vst.msk [vmem:[#allocation6] sm:$0xff] %vm835_vm0, %v1288_v57 }
 0xfd3   : > { %v1330_v60 = vld [vmem:[#allocation6] sm:$0xff] }
 0xfea   : > { %v1283_v58 = vpop.permute.xlu0 %1282 }
 0xfeb   : > { %v1285_v59 = vmul.f32 %v1283_v58, %v1262_v49  ;;  %v2111_v49 = vld [vmem:[%s721_s20 + $0x18] sm:$0xff] }
 0xfec   : > { %2128 = vmatpush.msrb.mxu0 %v2111_v49 }
 0xfed   : > { %1292 = vrot.lane.b32.xlu1 %v1285_v59, %s3810_s25 }
 0xfee   : > { %2129 = vmatpush.msrb.mxu0 %v2110_v50 }
 0xff0   : > { %2130 = vmatpush.msrb.mxu0 %v2109_v51 }
 0xff2   : > { %2131 = vmatpush.msrb.mxu0 %v2108_v52 }
 0xff5   : > { %1332 = vrot.lane.b32.xlu1 %v1330_v60, %s3810_s25 }
0x105f   : > { %v1293_v62 = vpop.permute.xlu1 %1292 }
0x1060   : > { %1295 = vst.msk [vmem:[#allocation5] sm:$0xff] %vm835_vm0, %v1293_v62 }
0x1061   : > { %1297 = vst.msk [vmem:[#allocation3 + $0x30] sm:$0xff] %vm835_vm0, %v1293_v62 }
0x1067   : > { %v1300_v63 = vld [vmem:[#allocation5] sm:$0xff]  ;;  %v1333_v13 = vpop.permute.xlu1 %1332 }
0x1068   : > { %3504 = vmatmul.msk.f32.vlgmr.msra.gmra.mxu2 %vm835_vm0, %v1300_v63  ;;  %v1370_v1 = vld [vmem:[#allocation3 + $0x30] sm:$0xff] }
0x1069   : > { %3511 = vmatmul.msk.f32.gmra.mxu3 %vm835_vm0, %v1370_v1  ;;  %1670 = vmatpush.msra.mxu2 %v4111_v21 }
0x106b   : > { %1671 = vmatpush.msra.mxu2 %v4113_v22 }
0x106d   : > { %1672 = vmatpush.msra.mxu2 %v4117_v23 }
0x106f   : > { %1673 = vmatpush.msra.mxu2 %v4123_v24 }
0x10eb   : > { %v1321_v4 = vpop.f32.mrf.mxu2 }
0x10ec   : > { %v1324_v5 = vadd.f32 %v1321_v4, %v821_v3 }
0x10ee   : > { %3682 = vtanh.f32 %v1324_v5  ;;  %v1325_v7 = vmul.f32 0.5, %v1324_v5 }
0x10f0   : > { %3684 = vtanh.f32 %v1325_v7 }
0x10f4   : > { %v3683_v6 = vpop.eup %3682 }
0x10f5   : > { %1337 = vrot.lane.b32.xlu0 %v3683_v6, %s3809_s24 }
0x10f6   : > { %v3685_v8 = vpop.eup %3684 }
0x10f7   : > { %v1327_v9 = vadd.f32 1.0, %v3685_v8 }
0x10f9   : > { %v1328_v10 = vmul.f32 0.5, %v1327_v9 }
0x10fb   : > { %v1335_v14 = vmul.f32 %v1333_v13, %v1328_v10 }
0x1167   : > { %v1338_v11 = vpop.permute.xlu0 %1337 }
0x1168   : > { %v1340_v12 = vmul.f32 %v1338_v11, %v1328_v10 }
0x116a   : > { %1342 = vrot.lane.b32.xlu2 %v1340_v12, %s3810_s25 }
0x11c4   : > { %v1343_v16 = vpop.permute.xlu2 %1342 }
0x11c5   : > { %v1345_v15 = vadd.f32 %v1343_v16, %v1335_v14 }
0x11c7   : > { %3686 = vtanh.f32 %v1345_v15  ;;  %1353 = vrot.lane.b32.xlu2 %v1345_v15, %s3811_s26 }
0x11cd   : > { %v3687_v17 = vpop.eup %3686 }
0x11ce   : > { %1348 = vrot.lane.b32.xlu0 %v3687_v17, %s3809_s24 }
0x1221   : > { %v1354_v18 = vpop.permute.xlu2 %1353 }
0x1222   : > { %1356 = vst.msk [vmem:[#allocation6] sm:$0xff] %vm835_vm0, %v1354_v18 }
0x1223   : > { %1458 = vst.msk [vmem:[#allocation6] sm:$0xff] %vm835_vm0, %v3808_v0 }
0x122a   : > { %v1490_v25 = vld [vmem:[#allocation6] sm:$0xff] }
0x1240   : > { %v1349_v19 = vpop.permute.xlu0 %1348 }
0x1241   : > { %v1351_v20 = vmul.f32 %v1349_v19, %v1328_v10 }
0x1243   : > { %1358 = vrot.lane.b32.xlu1 %v1351_v20, %s3810_s25 }
0x124b   : > { %1492 = vrot.lane.b32.xlu1 %v1490_v25, %s3810_s25 }
0x12b5   : > { %v1359_v26 = vpop.permute.xlu1 %1358 }
0x12b6   : > { %1361 = vst.msk [vmem:[#allocation5] sm:$0xff] %vm835_vm0, %v1359_v26 }
0x12b7   : > { %1363 = vst.msk [vmem:[#allocation3 + $0x38] sm:$0xff] %vm835_vm0, %v1359_v26 }
0x12b8   : > { %1457 = vst.msk [vmem:[#allocation5] sm:$0xff] %vm835_vm0, %v3808_v0  ;;  %v1421_v0 = vpop.f32.mrf.mxu3 }
0x12b9   : > { %v1422_v30 = vadd.f32 %v4151_v29, %v1421_v0 }
0x12bd   : > { %v1493_v40 = vpop.permute.xlu1 %1492 }
0x12be   : > { %v1371_v27 = vld [vmem:[#allocation3 + $0x38] sm:$0xff] }
0x12bf   : > { %3512 = vmatmul.msk.f32.gmra.mxu3 %vm835_vm0, %v1371_v27  ;;  %v1460_v28 = vld [vmem:[#allocation5] sm:$0xff] }
0x12c0   : > { %3513 = vmatmul.msk.f32.vlgmr.msrb.gmra.mxu1 %vm835_vm0, %v1460_v28  ;;  %v1424_v56 = vpop.f32.mrf.mxu3 }
0x12c1   : > { %1735 = vmatpush.msrb.mxu1 %v4111_v21  ;;  %v1425_v57 = vadd.f32 %v4151_v29, %v1424_v56 }
0x12c3   : > { %1736 = vmatpush.msrb.mxu1 %v4113_v22 }
0x12c5   : > { %1737 = vmatpush.msrb.mxu1 %v4117_v23 }
0x12c7   : > { %1738 = vmatpush.msrb.mxu1 %v4123_v24 }
0x12c8   : > { %v1427_v15 = vpop.f32.mrf.mxu3 }
0x12c9   : > { %v1428_v17 = vadd.f32 %v4151_v29, %v1427_v15 }
0x133d   : > { %v1481_v31 = vpop.f32.mrf.mxu1 }
0x133e   : > { %v1484_v32 = vadd.f32 %v1481_v31, %v1422_v30 }
0x1340   : > { %3688 = vtanh.f32 %v1484_v32  ;;  %v1485_v34 = vmul.f32 0.5, %v1484_v32 }
0x1342   : > { %3690 = vtanh.f32 %v1485_v34 }
0x1346   : > { %v3689_v33 = vpop.eup %3688 }
0x1347   : > { %1497 = vrot.lane.b32.xlu0 %v3689_v33, %s3809_s24 }
0x1348   : > { %v3691_v35 = vpop.eup %3690 }
0x1349   : > { %v1487_v36 = vadd.f32 1.0, %v3691_v35 }
0x134b   : > { %v1488_v37 = vmul.f32 0.5, %v1487_v36 }
0x134d   : > { %v1495_v41 = vmul.f32 %v1493_v40, %v1488_v37 }
0x13b9   : > { %v1498_v38 = vpop.permute.xlu0 %1497 }
0x13ba   : > { %v1500_v39 = vmul.f32 %v1498_v38, %v1488_v37 }
0x13bc   : > { %1502 = vrot.lane.b32.xlu2 %v1500_v39, %s3810_s25 }
0x1416   : > { %v1503_v42 = vpop.permute.xlu2 %1502 }
0x1417   : > { %v1505_v43 = vadd.f32 %v1503_v42, %v1495_v41 }
0x1419   : > { %3692 = vtanh.f32 %v1505_v43  ;;  %1513 = vrot.lane.b32.xlu2 %v1505_v43, %s3811_s26  ;;  %v1430_v43 = vpop.f32.mrf.mxu3 }
0x141f   : > { %v3693_v44 = vpop.eup %3692 }
0x1420   : > { %1508 = vrot.lane.b32.xlu0 %v3693_v44, %s3809_s24  ;;  %v1431_v44 = vadd.f32 %v4151_v29, %v1430_v43 }
0x1473   : > { %v1514_v45 = vpop.permute.xlu2 %1513 }
0x1474   : > { %1516 = vst.msk [vmem:[#allocation6] sm:$0xff] %vm835_vm0, %v1514_v45 }
0x147b   : > { %v1554_v48 = vld [vmem:[#allocation6] sm:$0xff] }
0x1492   : > { %v1509_v46 = vpop.permute.xlu0 %1508 }
0x1493   : > { %v1511_v47 = vmul.f32 %v1509_v46, %v1488_v37 }
0x1495   : > { %1518 = vrot.lane.b32.xlu1 %v1511_v47, %s3810_s25 }
0x149d   : > { %1556 = vrot.lane.b32.xlu1 %v1554_v48, %s3810_s25 }
0x1507   : > { %v1519_v53 = vpop.permute.xlu1 %1518 }
0x1508   : > { %1521 = vst.msk [vmem:[#allocation5] sm:$0xff] %vm835_vm0, %v1519_v53 }
0x1509   : > { %1522 = vst.msk [vmem:[#allocation4] sm:$0xff] %vm835_vm0, %v1519_v53 }
0x150f   : > { %v1524_v54 = vld [vmem:[#allocation5] sm:$0xff]  ;;  %v1557_v4 = vpop.permute.xlu1 %1556 }
0x1510   : > { %3514 = vmatmul.msk.f32.vlgmr.msrb.gmra.mxu2 %vm835_vm0, %v1524_v54  ;;  %v4172_v55 = vld [vmem:[#allocation4] sm:$0xff] }
0x1511   : > { %3537 = vmatmul.msk.f32.vlgmr.msrb.gmra.mxu0 %vm835_vm0, %v4172_v55  ;;  %1800 = vmatpush.msrb.mxu2 %v4111_v21 }
0x1513   : > { %1801 = vmatpush.msrb.mxu2 %v4113_v22 }
0x1515   : > { %1802 = vmatpush.msrb.mxu2 %v4117_v23 }
0x1517   : > { %1803 = vmatpush.msrb.mxu2 %v4123_v24 }
0x1593   : > { %v1545_v58 = vpop.f32.mrf.mxu2 }
0x1594   : > { %v1548_v59 = vadd.f32 %v1545_v58, %v1425_v57 }
0x1596   : > { %3694 = vtanh.f32 %v1548_v59  ;;  %v1549_v61 = vmul.f32 0.5, %v1548_v59 }
0x1598   : > { %3696 = vtanh.f32 %v1549_v61 }
0x159c   : > { %v3695_v60 = vpop.eup %3694 }
0x159d   : > { %1561 = vrot.lane.b32.xlu0 %v3695_v60, %s3809_s24 }
0x159e   : > { %v3697_v62 = vpop.eup %3696 }
0x159f   : > { %v1551_v63 = vadd.f32 1.0, %v3697_v62 }
0x15a1   : > { %v1552_v1 = vmul.f32 0.5, %v1551_v63  ;;  %v4233_v63 = vpop.f32.mrf.mxu0 }
0x15a3   : > { %v1559_v5 = vmul.f32 %v1557_v4, %v1552_v1 }
0x160f   : > { %v1562_v2 = vpop.permute.xlu0 %1561 }
0x1610   : > { %v1564_v3 = vmul.f32 %v1562_v2, %v1552_v1 }
0x1612   : > { %1566 = vrot.lane.b32.xlu2 %v1564_v3, %s3810_s25  ;;  %v1433_v3 = vpop.f32.mrf.mxu3 }
0x1613   : > { %v1434_v4 = vadd.f32 %v4151_v29, %v1433_v3 }
0x166c   : > { %v1567_v6 = vpop.permute.xlu2 %1566 }
0x166d   : > { %v1569_v7 = vadd.f32 %v1567_v6, %v1559_v5  ;;  %v4245_v5 = vld [vmem:[%s724_s16] ss:$0 sm:$0xff] }
0x166f   : > { %3698 = vtanh.f32 %v1569_v7  ;;  %1577 = vrot.lane.b32.xlu2 %v1569_v7, %s3811_s26 }
0x1675   : > { %v3699_v8 = vpop.eup %3698 }
0x1676   : > { %1572 = vrot.lane.b32.xlu0 %v3699_v8, %s3809_s24 }
0x16c9   : > { %v1578_v9 = vpop.permute.xlu2 %1577 }
0x16ca   : > { %1580 = vst.msk [vmem:[#allocation6] sm:$0xff] %vm835_vm0, %v1578_v9 }
0x16d1   : > { %v1619_v12 = vld [vmem:[#allocation6] sm:$0xff] }
0x16e8   : > { %v1573_v10 = vpop.permute.xlu0 %1572 }
0x16e9   : > { %v1575_v11 = vmul.f32 %v1573_v10, %v1552_v1 }
0x16eb   : > { %1582 = vrot.lane.b32.xlu1 %v1575_v11, %s3810_s25 }
0x16f3   : > { %1621 = vrot.lane.b32.xlu1 %v1619_v12, %s3810_s25 }
0x175d   : > { %v1583_v13 = vpop.permute.xlu1 %1582 }
0x175e   : > { %1585 = vst.msk [vmem:[#allocation5] sm:$0xff] %vm835_vm0, %v1583_v13 }
0x175f   : > { %1587 = vst.msk [vmem:[#allocation4 + $0x8] sm:$0xff] %vm835_vm0, %v1583_v13 }
0x1765   : > { %v1589_v14 = vld [vmem:[#allocation5] sm:$0xff]  ;;  %v1622_v31 = vpop.permute.xlu1 %1621 }
0x1766   : > { %3515 = vmatmul.msk.f32.vlgmr.msra.gmra.mxu1 %vm835_vm0, %v1589_v14  ;;  %v4191_v16 = vld [vmem:[#allocation4 + $0x8] sm:$0xff] }
0x1767   : > { %3538 = vmatmul.msk.f32.gmra.mxu0 %vm835_vm0, %v4191_v16  ;;  %1865 = vmatpush.msra.mxu1 %v4111_v21 }
0x1769   : > { %1866 = vmatpush.msra.mxu1 %v4113_v22 }
0x176b   : > { %1867 = vmatpush.msra.mxu1 %v4117_v23 }
0x176d   : > { %1868 = vmatpush.msra.mxu1 %v4123_v24 }
0x17e3   : > { %v1610_v18 = vpop.f32.mrf.mxu1 }
0x17e4   : > { %v1613_v19 = vadd.f32 %v1610_v18, %v1428_v17  ;;  %v4235_v1 = vpop.f32.mrf.mxu0 }
0x17e6   : > { %3700 = vtanh.f32 %v1613_v19  ;;  %v1614_v25 = vmul.f32 0.5, %v1613_v19 }
0x17e8   : > { %3702 = vtanh.f32 %v1614_v25 }
0x17ec   : > { %v3701_v20 = vpop.eup %3700 }
0x17ed   : > { %1626 = vrot.lane.b32.xlu0 %v3701_v20, %s3809_s24 }
0x17ee   : > { %v3703_v26 = vpop.eup %3702 }
0x17ef   : > { %v1616_v27 = vadd.f32 1.0, %v3703_v26 }
0x17f1   : > { %v1617_v28 = vmul.f32 0.5, %v1616_v27 }
0x17f3   : > { %v1624_v32 = vmul.f32 %v1622_v31, %v1617_v28 }
0x185f   : > { %v1627_v0 = vpop.permute.xlu0 %1626 }
0x1860   : > { %v1629_v30 = vmul.f32 %v1627_v0, %v1617_v28 }
0x1862   : > { %1631 = vrot.lane.b32.xlu2 %v1629_v30, %s3810_s25 }
0x18bc   : > { %v1632_v33 = vpop.permute.xlu2 %1631 }
0x18bd   : > { %v1634_v34 = vadd.f32 %v1632_v33, %v1624_v32 }
0x18bf   : > { %3704 = vtanh.f32 %v1634_v34  ;;  %1642 = vrot.lane.b32.xlu2 %v1634_v34, %s3811_s26  ;;  %v1436_v34 = vpop.f32.mrf.mxu3 }
0x18c5   : > { %v3705_v35 = vpop.eup %3704 }
0x18c6   : > { %1637 = vrot.lane.b32.xlu0 %v3705_v35, %s3809_s24  ;;  %v1437_v35 = vadd.f32 %v4151_v29, %v1436_v34 }
0x1919   : > { %v1643_v36 = vpop.permute.xlu2 %1642 }
0x191a   : > { %1645 = vst.msk [vmem:[#allocation6] sm:$0xff] %vm835_vm0, %v1643_v36 }
0x1921   : > { %v1684_v39 = vld [vmem:[#allocation6] sm:$0xff] }
0x1938   : > { %v1638_v37 = vpop.permute.xlu0 %1637 }
0x1939   : > { %v1640_v38 = vmul.f32 %v1638_v37, %v1617_v28 }
0x193b   : > { %1647 = vrot.lane.b32.xlu1 %v1640_v38, %s3810_s25 }
0x1943   : > { %1686 = vrot.lane.b32.xlu1 %v1684_v39, %s3810_s25 }
0x19ad   : > { %v1648_v40 = vpop.permute.xlu1 %1647 }
0x19ae   : > { %1650 = vst.msk [vmem:[#allocation5] sm:$0xff] %vm835_vm0, %v1648_v40 }
0x19af   : > { %1652 = vst.msk [vmem:[#allocation4 + $0x10] sm:$0xff] %vm835_vm0, %v1648_v40 }
0x19b5   : > { %v1654_v41 = vld [vmem:[#allocation5] sm:$0xff] }
0x19b6   : > { %3516 = vmatmul.msk.f32.vlgmr.msra.gmra.mxu2 %vm835_vm0, %v1654_v41  ;;  %v4210_v42 = vld [vmem:[#allocation4 + $0x10] sm:$0xff] }
0x19b7   : > { %3539 = vmatmul.msk.f32.gmra.mxu0 %vm835_vm0, %v4210_v42  ;;  %1930 = vmatpush.msra.mxu2 %v4111_v21 }
0x19b9   : > { %1931 = vmatpush.msra.mxu2 %v4113_v22 }
0x19bb   : > { %1932 = vmatpush.msra.mxu2 %v4117_v23  ;;  %v1687_v23 = vpop.permute.xlu1 %1686 }
0x19bd   : > { %1933 = vmatpush.msra.mxu2 %v4123_v24 }
0x1a34   : > { %v4237_v2 = vpop.f32.mrf.mxu0 }
0x1a39   : > { %v1675_v45 = vpop.f32.mrf.mxu2 }
0x1a3a   : > { %v1678_v46 = vadd.f32 %v1675_v45, %v1431_v44 }
0x1a3c   : > { %3706 = vtanh.f32 %v1678_v46  ;;  %v1679_v48 = vmul.f32 0.5, %v1678_v46 }
0x1a3e   : > { %3708 = vtanh.f32 %v1679_v48 }
0x1a42   : > { %v3707_v47 = vpop.eup %3706 }
0x1a43   : > { %1691 = vrot.lane.b32.xlu0 %v3707_v47, %s3809_s24 }
0x1a44   : > { %v3709_v49 = vpop.eup %3708 }
0x1a45   : > { %v1681_v50 = vadd.f32 1.0, %v3709_v49 }
0x1a47   : > { %v1682_v21 = vmul.f32 0.5, %v1681_v50 }
0x1a49   : > { %v1689_v24 = vmul.f32 %v1687_v23, %v1682_v21 }
0x1ab5   : > { %v1692_v51 = vpop.permute.xlu0 %1691 }
0x1ab6   : > { %v1694_v22 = vmul.f32 %v1692_v51, %v1682_v21 }
0x1ab8   : > { %1696 = vrot.lane.b32.xlu2 %v1694_v22, %s3810_s25 }
0x1b12   : > { %v1697_v52 = vpop.permute.xlu2 %1696 }
0x1b13   : > { %v1699_v53 = vadd.f32 %v1697_v52, %v1689_v24  ;;  %v1989_v24 = vld [vmem:[%s705_s30 + $0x18] sm:$0xff]  ;;  %v1988_v52 = vld [vmem:[%s705_s30 + $0x10] sm:$0xff] }
0x1b15   : > { %3710 = vtanh.f32 %v1699_v53  ;;  %1707 = vrot.lane.b32.xlu2 %v1699_v53, %s3811_s26  ;;  %v1987_v53 = vld [vmem:[%s705_s30 + $0x8] sm:$0xff] }
0x1b1b   : > { %v3711_v54 = vpop.eup %3710 }
0x1b1c   : > { %1702 = vrot.lane.b32.xlu0 %v3711_v54, %s3809_s24  ;;  %v1986_v54 = vld [vmem:[%s705_s30] sm:$0xff]  ;;  %s716_s30 = scalar_lea.vmem %s4634_s10, %s4641_s19 }
0x1b6f   : > { %v1708_v56 = vpop.permute.xlu2 %1707 }
0x1b70   : > { %1710 = vst.msk [vmem:[#allocation6] sm:$0xff] %vm835_vm0, %v1708_v56 }
0x1b77   : > { %v1749_v59 = vld [vmem:[#allocation6] sm:$0xff] }
0x1b8e   : > { %v1703_v57 = vpop.permute.xlu0 %1702 }
0x1b8f   : > { %v1705_v58 = vmul.f32 %v1703_v57, %v1682_v21 }
0x1b91   : > { %1712 = vrot.lane.b32.xlu1 %v1705_v58, %s3810_s25 }
0x1b99   : > { %1751 = vrot.lane.b32.xlu1 %v1749_v59, %s3810_s25  ;;  %v1439_v59 = vpop.f32.mrf.mxu3 }
0x1c03   : > { %v1713_v60 = vpop.permute.xlu1 %1712 }
0x1c04   : > { %1715 = vst.msk [vmem:[#allocation5] sm:$0xff] %vm835_vm0, %v1713_v60 }
0x1c05   : > { %1717 = vst.msk [vmem:[#allocation4 + $0x18] sm:$0xff] %vm835_vm0, %v1713_v60  ;;  %v1440_v60 = vadd.f32 %v4151_v29, %v1439_v59 }
0x1c0b   : > { %v1719_v61 = vld [vmem:[#allocation5] sm:$0xff]  ;;  %v1752_v18 = vpop.permute.xlu1 %1751 }
0x1c0c   : > { %3517 = vmatmul.msk.f32.vlgmr.msrb.gmra.mxu1 %vm835_vm0, %v1719_v61  ;;  %v4229_v62 = vld [vmem:[#allocation4 + $0x18] sm:$0xff] }
0x1c0d   : > { %3540 = vmatmul.msk.f32.gmra.mxu0 %vm835_vm0, %v4229_v62  ;;  %2030 = vmatpush.msrb.mxu1 %v1989_v24 }
0x1c0f   : > { %2031 = vmatpush.msrb.mxu1 %v1988_v52 }
0x1c11   : > { %2032 = vmatpush.msrb.mxu1 %v1987_v53 }
0x1c13   : > { %2033 = vmatpush.msrb.mxu1 %v1986_v54 }
0x1c89   : > { %v1740_v6 = vpop.f32.mrf.mxu1 }
0x1c8a   : > { %v1743_v7 = vadd.f32 %v1740_v6, %v1434_v4  ;;  %v2142_v8 = vpop.f32.mrf.mxu0 }
0x1c8b   : > { %v4248_v9 = vadd.f32 %v4245_v5, %v2142_v8 }
0x1c8c   : > { %3712 = vtanh.f32 %v1743_v7  ;;  %v1744_v11 = vmul.f32 0.5, %v1743_v7 }
0x1c8d   : > { %2554 = vmatpush.msra.mxu0 %v4248_v9 }
0x1c8e   : > { %3714 = vtanh.f32 %v1744_v11 }
0x1c92   : > { %v3713_v10 = vpop.eup %3712 }
0x1c93   : > { %1756 = vrot.lane.b32.xlu0 %v3713_v10, %s3809_s24 }
0x1c94   : > { %v3715_v12 = vpop.eup %3714 }
0x1c95   : > { %v1746_v13 = vadd.f32 1.0, %v3715_v12 }
0x1c97   : > { %v1747_v14 = vmul.f32 0.5, %v1746_v13 }
0x1c99   : > { %v1754_v19 = vmul.f32 %v1752_v18, %v1747_v14 }
0x1d05   : > { %v1757_v15 = vpop.permute.xlu0 %1756 }
0x1d06   : > { %v1759_v17 = vmul.f32 %v1757_v15, %v1747_v14 }
0x1d08   : > { %1761 = vrot.lane.b32.xlu2 %v1759_v17, %s3810_s25 }
0x1d62   : > { %v1762_v20 = vpop.permute.xlu2 %1761 }
0x1d63   : > { %v1764_v25 = vadd.f32 %v1762_v20, %v1754_v19 }
0x1d65   : > { %3716 = vtanh.f32 %v1764_v25  ;;  %1772 = vrot.lane.b32.xlu2 %v1764_v25, %s3811_s26 }
0x1d6b   : > { %v3717_v26 = vpop.eup %3716 }
0x1d6c   : > { %1767 = vrot.lane.b32.xlu0 %v3717_v26, %s3809_s24 }
0x1dbf   : > { %v1773_v27 = vpop.permute.xlu2 %1772 }
0x1dc0   : > { %1775 = vst.msk [vmem:[#allocation6] sm:$0xff] %vm835_vm0, %v1773_v27  ;;  %v2062_v27 = vld [vmem:[%s713_s27 + $0x18] sm:$0xff] }
0x1dc7   : > { %v1814_v30 = vld [vmem:[#allocation6] sm:$0xff] }
0x1dde   : > { %v1768_v28 = vpop.permute.xlu0 %1767 }
0x1ddf   : > { %v1770_v0 = vmul.f32 %v1768_v28, %v1747_v14  ;;  %v2061_v28 = vld [vmem:[%s713_s27 + $0x10] sm:$0xff] }
0x1de1   : > { %1777 = vrot.lane.b32.xlu1 %v1770_v0, %s3810_s25  ;;  %v2060_v0 = vld [vmem:[%s713_s27 + $0x8] sm:$0xff] }
0x1de9   : > { %1816 = vrot.lane.b32.xlu1 %v1814_v30, %s3810_s25  ;;  %v2059_v30 = vld [vmem:[%s713_s27] sm:$0xff]  ;;  %s3488_s27 = sshll.u32 %s4641_s19, 3 }
0x1dea   : > { %s736_s17 = scalar_lea.vmem %s4639_s15, %s3488_s27 }
0x1e53   : > { %v1778_v31 = vpop.permute.xlu1 %1777 }
0x1e54   : > { %1780 = vst.msk [vmem:[#allocation5] sm:$0xff] %vm835_vm0, %v1778_v31 }
0x1e55   : > { %1782 = vst.msk [vmem:[#allocation4 + $0x20] sm:$0xff] %vm835_vm0, %v1778_v31 }
0x1e5b   : > { %v1784_v32 = vld [vmem:[#allocation5] sm:$0xff]  ;;  %v1817_v46 = vpop.permute.xlu1 %1816 }
0x1e5c   : > { %3518 = vmatmul.msk.f32.vlgmr.msrb.gmra.mxu2 %vm835_vm0, %v1784_v32  ;;  %v4261_v33 = vld [vmem:[#allocation4 + $0x20] sm:$0xff] }
0x1e5d   : > { %3541 = vmatmul.msk.f32.gmra.mxu0 %vm835_vm0, %v4261_v33  ;;  %2079 = vmatpush.msrb.mxu2 %v2062_v27 }
0x1e5f   : > { %2080 = vmatpush.msrb.mxu2 %v2061_v28 }
0x1e61   : > { %2081 = vmatpush.msrb.mxu2 %v2060_v0 }
0x1e63   : > { %2082 = vmatpush.msrb.mxu2 %v2059_v30 }
0x1edf   : > { %v1805_v36 = vpop.f32.mrf.mxu2 }
0x1ee0   : > { %v1808_v37 = vadd.f32 %v1805_v36, %v1437_v35 }
0x1ee2   : > { %3718 = vtanh.f32 %v1808_v37  ;;  %v1809_v39 = vmul.f32 0.5, %v1808_v37 }
0x1ee4   : > { %3720 = vtanh.f32 %v1809_v39 }
0x1ee8   : > { %v3719_v38 = vpop.eup %3718 }
0x1ee9   : > { %1821 = vrot.lane.b32.xlu0 %v3719_v38, %s3809_s24 }
0x1eea   : > { %v3721_v40 = vpop.eup %3720 }
0x1eeb   : > { %v1811_v41 = vadd.f32 1.0, %v3721_v40 }
0x1eed   : > { %v1812_v43 = vmul.f32 0.5, %v1811_v41 }
0x1eef   : > { %v1819_v47 = vmul.f32 %v1817_v46, %v1812_v43 }
0x1f5b   : > { %v1822_v44 = vpop.permute.xlu0 %1821 }
0x1f5c   : > { %v1824_v45 = vmul.f32 %v1822_v44, %v1812_v43 }
0x1f5e   : > { %1826 = vrot.lane.b32.xlu2 %v1824_v45, %s3810_s25 }
0x1fb8   : > { %v1827_v48 = vpop.permute.xlu2 %1826 }
0x1fb9   : > { %v1829_v49 = vadd.f32 %v1827_v48, %v1819_v47 }
0x1fbb   : > { %3722 = vtanh.f32 %v1829_v49  ;;  %1837 = vrot.lane.b32.xlu2 %v1829_v49, %s3811_s26 }
0x1fc1   : > { %v3723_v50 = vpop.eup %3722 }
0x1fc2   : > { %1832 = vrot.lane.b32.xlu0 %v3723_v50, %s3809_s24 }
0x2015   : > { %v1838_v21 = vpop.permute.xlu2 %1837 }
0x2016   : > { %1840 = vst.msk [vmem:[#allocation6] sm:$0xff] %vm835_vm0, %v1838_v21 }
0x201d   : > { %v1879_v23 = vld [vmem:[#allocation6] sm:$0xff] }
0x2034   : > { %v1833_v51 = vpop.permute.xlu0 %1832 }
0x2035   : > { %v1835_v22 = vmul.f32 %v1833_v51, %v1812_v43 }
0x2037   : > { %1842 = vrot.lane.b32.xlu1 %v1835_v22, %s3810_s25 }
0x203f   : > { %1881 = vrot.lane.b32.xlu1 %v1879_v23, %s3810_s25 }
0x20a9   : > { %v1843_v56 = vpop.permute.xlu1 %1842 }
0x20aa   : > { %1845 = vst.msk [vmem:[#allocation5] sm:$0xff] %vm835_vm0, %v1843_v56 }
0x20ab   : > { %1847 = vst.msk [vmem:[#allocation4 + $0x28] sm:$0xff] %vm835_vm0, %v1843_v56 }
0x20b1   : > { %v1849_v57 = vld [vmem:[#allocation5] sm:$0xff]  ;;  %v1882_v13 = vpop.permute.xlu1 %1881 }
0x20b2   : > { %3519 = vmatmul.msk.f32.vlgmr.msra.gmra.mxu1 %vm835_vm0, %v1849_v57  ;;  %v1983_v58 = vld [vmem:[#allocation4 + $0x28] sm:$0xff] }
0x20b3   : > { %3542 = vmatmul.msk.f32.gmra.mxu0 %vm835_vm0, %v1983_v58 }
0x20ba   : > { %3521 = vmatmul.msk.f32.vlgmr.msrb.gmra.mxu1 %vm835_vm0, %v4172_v55 }
0x20c2   : > { %3522 = vmatmul.msk.f32.gmra.mxu1 %vm835_vm0, %v4191_v16 }
0x20ca   : > { %3523 = vmatmul.msk.f32.gmra.mxu1 %vm835_vm0, %v4210_v42 }
0x20d2   : > { %3524 = vmatmul.msk.f32.gmra.mxu1 %vm835_vm0, %v4229_v62 }
0x20da   : > { %3525 = vmatmul.msk.f32.gmra.mxu1 %vm835_vm0, %v4261_v33 }
0x20e2   : > { %3526 = vmatmul.msk.f32.gmra.mxu1 %vm835_vm0, %v1983_v58 }
0x212f   : > { %v1870_v61 = vpop.f32.mrf.mxu1 }
0x2130   : > { %v1873_v3 = vadd.f32 %v1870_v61, %v1440_v60  ;;  %v4395_v61 = vadd.f32 %v4245_v5, %v4233_v63 }
0x2132   : > { %3724 = vtanh.f32 %v1873_v3  ;;  %v1874_v6 = vmul.f32 0.5, %v1873_v3 }
0x2134   : > { %3726 = vtanh.f32 %v1874_v6  ;;  %v4405_v6 = vadd.f32 %v4245_v5, %v4235_v1 }
0x2137   : > { %v2035_v35 = vpop.f32.mrf.mxu1 }
0x2138   : > { %v3725_v4 = vpop.eup %3724 }
0x2139   : > { %1886 = vrot.lane.b32.xlu0 %v3725_v4, %s3809_s24 }
0x213a   : > { %v3727_v7 = vpop.eup %3726 }
0x213b   : > { %v1876_v8 = vadd.f32 1.0, %v3727_v7 }
0x213d   : > { %v1877_v10 = vmul.f32 0.5, %v1876_v8 }
0x213f   : > { %v1884_v14 = vmul.f32 %v1882_v13, %v1877_v10 }
0x21ab   : > { %v1887_v11 = vpop.permute.xlu0 %1886 }
0x21ac   : > { %v1889_v12 = vmul.f32 %v1887_v11, %v1877_v10 }
0x21ae   : > { %1891 = vrot.lane.b32.xlu2 %v1889_v12, %s3810_s25 }
0x2208   : > { %v1892_v15 = vpop.permute.xlu2 %1891 }
0x2209   : > { %v1894_v17 = vadd.f32 %v1892_v15, %v1884_v14 }
0x220b   : > { %3728 = vtanh.f32 %v1894_v17  ;;  %1902 = vrot.lane.b32.xlu2 %v1894_v17, %s3811_s26 }
0x2211   : > { %v3729_v18 = vpop.eup %3728 }
0x2212   : > { %1897 = vrot.lane.b32.xlu0 %v3729_v18, %s3809_s24 }
0x2265   : > { %v1903_v19 = vpop.permute.xlu2 %1902 }
0x2266   : > { %1905 = vst.msk [vmem:[#allocation6] sm:$0xff] %vm835_vm0, %v1903_v19 }
0x226d   : > { %v1944_v26 = vld [vmem:[#allocation6] sm:$0xff] }
0x2284   : > { %v1898_v20 = vpop.permute.xlu0 %1897 }
0x2285   : > { %v1900_v25 = vmul.f32 %v1898_v20, %v1877_v10 }
0x2287   : > { %1907 = vrot.lane.b32.xlu1 %v1900_v25, %s3810_s25 }
0x228f   : > { %1946 = vrot.lane.b32.xlu1 %v1944_v26, %s3810_s25 }
0x22f9   : > { %v1908_v31 = vpop.permute.xlu1 %1907 }
0x22fa   : > { %1910 = vst.msk [vmem:[#allocation5] sm:$0xff] %vm835_vm0, %v1908_v31 }
0x22fb   : > { %1912 = vst.msk [vmem:[#allocation4 + $0x30] sm:$0xff] %vm835_vm0, %v1908_v31 }
0x2301   : > { %v1914_v32 = vld [vmem:[#allocation5] sm:$0xff]  ;;  %v1947_v17 = vpop.permute.xlu1 %1946 }
0x2302   : > { %3520 = vmatmul.msk.f32.vlgmr.msra.gmra.mxu2 %vm835_vm0, %v1914_v32  ;;  %v1984_v34 = vld [vmem:[#allocation4 + $0x30] sm:$0xff] }
0x2303   : > { %3527 = vmatmul.msk.f32.gmra.mxu1 %vm835_vm0, %v1984_v34  ;;  %3543 = vmatmul.msk.f32.gmra.mxu0 %vm835_vm0, %v1984_v34 }
0x230a   : > { %3529 = vmatmul.msk.f32.vlgmr.msrb.gmra.mxu2 %vm835_vm0, %v4172_v55  ;;  %v1442_v55 = vpop.f32.mrf.mxu3 }
0x230b   : > { %v1443_v36 = vadd.f32 %v4151_v29, %v1442_v55 }
0x2312   : > { %3530 = vmatmul.msk.f32.gmra.mxu2 %vm835_vm0, %v4191_v16  ;;  %v4335_v16 = vld [vmem:[%s708_s22] ss:$0 sm:$0xff]  ;;  %s4580_s22 = scalar_lea.vmem %s4637_s13, %s3909_s21 }
0x231a   : > { %3531 = vmatmul.msk.f32.gmra.mxu2 %vm835_vm0, %v4210_v42  ;;  %v4337_v42 = vld [vmem:[%s716_s30] ss:$0 sm:$0xff] }
0x2322   : > { %3532 = vmatmul.msk.f32.gmra.mxu2 %vm835_vm0, %v4229_v62  ;;  %v2038_v62 = vpop.f32.mrf.mxu1 }
0x2323   : > { %v2039_v43 = vadd.f32 %v4335_v16, %v2038_v62 }
0x2325   : > { %v4356_v47 = vmul.f32 0.25, %v2039_v43 }
0x232a   : > { %3533 = vmatmul.msk.f32.gmra.mxu2 %vm835_vm0, %v4261_v33  ;;  %v2036_v33 = vadd.f32 %v4335_v16, %v2035_v35  ;;  %v2041_v45 = vpop.f32.mrf.mxu1 }
0x232b   : > { %v2042_v48 = vadd.f32 %v4335_v16, %v2041_v45 }
0x232c   : > { %v4346_v29 = vmul.f32 0.25, %v2036_v33 }
0x232d   : > { %v4366_v51 = vmul.f32 0.25, %v2042_v48 }
0x2332   : > { %3534 = vmatmul.msk.f32.gmra.mxu2 %vm835_vm0, %v1983_v58  ;;  %v2044_v21 = vpop.f32.mrf.mxu1 }
0x2333   : > { %v2045_v22 = vadd.f32 %v4335_v16, %v2044_v21 }
0x2335   : > { %v4376_v52 = vmul.f32 0.25, %v2045_v22 }
0x233a   : > { %3535 = vmatmul.msk.f32.gmra.mxu2 %vm835_vm0, %v1984_v34  ;;  %v2047_v53 = vpop.f32.mrf.mxu1 }
0x233b   : > { %v2048_v54 = vadd.f32 %v4335_v16, %v2047_v53 }
0x233d   : > { %v4386_v58 = vmul.f32 0.25, %v2048_v54 }
0x2385   : > { %v1935_v37 = vpop.f32.mrf.mxu2 }
0x2386   : > { %v1938_v38 = vadd.f32 %v1935_v37, %v1443_v36 }
0x2388   : > { %3730 = vtanh.f32 %v1938_v38  ;;  %v1939_v63 = vmul.f32 0.5, %v1938_v38 }
0x238a   : > { %3732 = vtanh.f32 %v1939_v63 }
0x238d   : > { %v2084_v39 = vpop.f32.mrf.mxu2 }
0x238e   : > { %v3731_v40 = vpop.eup %3730  ;;  %v4341_v41 = vadd.f32 %v4337_v42, %v2084_v39 }
0x238f   : > { %1951 = vrot.lane.b32.xlu0 %v3731_v40, %s3809_s24 }
0x2390   : > { %3545 = vmatpush.xpose.msk.msrb.mxu3 %vm2169_vm2, %v4341_v41  ;;  %v3733_v7 = vpop.eup %3732 }
0x2391   : > { %v1941_v8 = vadd.f32 1.0, %v3733_v7 }
0x2393   : > { %3546 = vmatmul.msk.f32.vlgmr.msrb.gmra.mxu3 %vm2169_vm2, %v4346_v29  ;;  %v1942_v10 = vmul.f32 0.5, %v1941_v8 }
0x2395   : > { %v2087_v44 = vpop.f32.mrf.mxu2  ;;  %v1949_v18 = vmul.f32 %v1947_v17, %v1942_v10 }
0x2396   : > { %v4352_v46 = vadd.f32 %v4337_v42, %v2087_v44 }
0x2398   : > { %3547 = vmatpush.xpose.msk.msra.mxu3 %vm2169_vm2, %v4352_v46 }
0x239b   : > { %3548 = vmatmul.msk.f32.vlgmr.msra.gmra.mxu3 %vm2169_vm2, %v4356_v47 }
0x239d   : > { %v2090_v49 = vpop.f32.mrf.mxu2 }
0x239e   : > { %v4362_v50 = vadd.f32 %v4337_v42, %v2090_v49 }
0x23a0   : > { %3549 = vmatpush.xpose.msk.msrb.mxu3 %vm2169_vm2, %v4362_v50 }
0x23a3   : > { %3550 = vmatmul.msk.f32.vlgmr.msrb.gmra.mxu3 %vm2169_vm2, %v4366_v51 }
0x23a5   : > { %v2093_v23 = vpop.f32.mrf.mxu2 }
0x23a6   : > { %v4372_v24 = vadd.f32 %v4337_v42, %v2093_v23 }
0x23a8   : > { %3551 = vmatpush.xpose.msk.msra.mxu3 %vm2169_vm2, %v4372_v24 }
0x23ab   : > { %3552 = vmatmul.msk.f32.vlgmr.msra.gmra.mxu3 %vm2169_vm2, %v4376_v52 }
0x23ad   : > { %v2096_v56 = vpop.f32.mrf.mxu2 }
0x23ae   : > { %v4382_v57 = vadd.f32 %v4337_v42, %v2096_v56 }
0x23b0   : > { %3553 = vmatpush.xpose.msk.msrb.mxu3 %vm2169_vm2, %v4382_v57 }
0x23b3   : > { %3554 = vmatmul.msk.f32.vlgmr.msrb.gmra.mxu3 %vm2169_vm2, %v4386_v58 }
0x23b5   : > { %v2099_v59 = vpop.f32.mrf.mxu2 }
0x23b6   : > { %v4391_v60 = vadd.f32 %v4337_v42, %v2099_v59  ;;  %v2050_v59 = vpop.f32.mrf.mxu1 }
0x23b8   : > { %3555 = vmatpush.xpose.msk.msra.mxu1 %vm2169_vm2, %v4391_v60 }
0x23bc   : > { %2485 = vmatpush.msrb.mxu1 %v4395_v61 }
0x23bd   : > { %v2102_v3 = vpop.f32.mrf.mxu2 }
0x23be   : > { %v4401_v4 = vadd.f32 %v4337_v42, %v2102_v3  ;;  %v2051_v3 = vadd.f32 %v4335_v16, %v2050_v59 }
0x23c0   : > { %3557 = vmatpush.xpose.msk.msra.mxu2 %vm2169_vm2, %v4401_v4  ;;  %v2166_v63 = vmul.f32 0.25, %v2051_v3 }
0x23c4   : > { %2508 = vmatpush.msrb.mxu2 %v4405_v6 }
0x2401   : > { %v1952_v11 = vpop.permute.xlu0 %1951 }
0x2402   : > { %v1954_v12 = vmul.f32 %v1952_v11, %v1942_v10 }
0x2404   : > { %1956 = vrot.lane.b32.xlu2 %v1954_v12, %s3810_s25 }
0x2416   : > { %v2193_v13 = vpop.f32.mrf.mxu3 }
0x2417   : > { %v2379_v15 = vsel %vm2378_vm3, %v2193_v13, -inf }
0x241e   : > { %v2219_v14 = vpop.f32.mrf.mxu3 }
0x241f   : > { %v2382_v1 = vsel %vm2378_vm3, %v2219_v14, -inf }
0x2426   : > { %v2245_v26 = vpop.f32.mrf.mxu3 }
0x2427   : > { %v2385_v27 = vsel %vm2378_vm3, %v2245_v26, -inf }
0x242d   : > { %2383 = vmax.xlane.f32.xlu2 %v2382_v1 }
0x242e   : > { %v2271_v28 = vpop.f32.mrf.mxu3 }
0x242f   : > { %v2388_v0 = vsel %vm2378_vm3, %v2271_v28, -inf }
0x2435   : > { %2380 = vmax.xlane.f32.xlu2 %v2379_v15 }
0x2436   : > { %v2297_v40 = vpop.f32.mrf.mxu3 }
0x2437   : > { %v2391_v45 = vsel %vm2378_vm3, %v2297_v40, -inf }
0x245e   : > { %v1957_v19 = vpop.permute.xlu2 %1956 }
0x245f   : > { %v4413_v20 = vadd.f32 %v1957_v19, %v1949_v18 }
0x2461   : > { %3734 = vtanh.f32 %v4413_v20 }
0x2467   : > { %v3735_v25 = vpop.eup %3734 }
0x2468   : > { %1962 = vrot.lane.b32.xlu0 %v3735_v25, %s3809_s24  ;;  %s3812_s24 = smov 112  }
0x2492   : > { %2386 = vmax.xlane.f32.xlu0 %v2385_v27 }
0x249a   : > { %2389 = vmax.xlane.f32.xlu0 %v2388_v0 }
0x24a0   : > { %v2384_v30 = vpop.xlane.xlu2 %2383 }
0x24a1   : > { %v2404_v31 = vsub.f32 %v2219_v14, %v2384_v30 }
0x24a3   : > { %v2413_v32 = vmul.f32 1.442695, %v2404_v31 }
0x24a5   : > { %3736 = vpow2.f32 %v2413_v32 }
0x24a8   : > { %v2381_v34 = vpop.xlane.xlu2 %2380 }
0x24a9   : > { %v2403_v55 = vsub.f32 %v2193_v13, %v2381_v34 }
0x24ab   : > { %v3737_v35 = vpop.eup %3736  ;;  %v2411_v36 = vmul.f32 1.442695, %v2403_v55 }
0x24ac   : > { %v2430_v37 = vsel %vm2378_vm3, %v3737_v35, 0.0 }
0x24ad   : > { %3738 = vpow2.f32 %v2411_v36  ;;  %2431 = vadd.xlane.f32.xlu0 %v2430_v37 }
0x24b3   : > { %v3739_v38 = vpop.eup %3738 }
0x24b4   : > { %v2427_v62 = vsel %vm2378_vm3, %v3739_v38, 0.0 }
0x24b5   : > { %2428 = vadd.xlane.f32.xlu0 %v2427_v62 }
0x24da   : > { %v1963_v33 = vpop.permute.xlu0 %1962 }
0x24db   : > { %v1965_v39 = vmul.f32 %v1963_v33, %v1942_v10  ;;  %v2053_v10 = vpop.f32.mrf.mxu1 }
0x24dd   : > { %1972 = vrot.lane.b32.xlu1 %v1965_v39, %s3810_s25  ;;  %v4480_v39 = vadd.f32 %v4245_v5, %v4237_v2 }
0x2505   : > { %v2387_v43 = vpop.xlane.xlu0 %2386 }
0x2506   : > { %v2405_v44 = vsub.f32 %v2245_v26, %v2387_v43 }
0x2507   : > { %2392 = vmax.xlane.f32.xlu1 %v2391_v45 }
0x2508   : > { %v2415_v48 = vmul.f32 1.442695, %v2405_v44 }
0x250a   : > { %3740 = vpow2.f32 %v2415_v48 }
0x250d   : > { %v2390_v49 = vpop.xlane.xlu0 %2389 }
0x250e   : > { %v2406_v21 = vsub.f32 %v2271_v28, %v2390_v49 }
0x2510   : > { %v4423_v22 = vpop.eup %3740  ;;  %v2417_v23 = vmul.f32 1.442695, %v2406_v21 }
0x2511   : > { %v2433_v53 = vsel %vm2378_vm3, %v4423_v22, 0.0 }
0x2512   : > { %3742 = vpow2.f32 %v2417_v23  ;;  %2434 = vadd.xlane.f32.xlu1 %v2433_v53 }
0x2518   : > { %v3743_v54 = vpop.eup %3742 }
0x2519   : > { %v2436_v56 = vsel %vm2378_vm3, %v3743_v54, 0.0 }
0x251a   : > { %2437 = vadd.xlane.f32.xlu2 %v2436_v56 }
0x2520   : > { %v2432_v8 = vpop.xlane.xlu0 %2431 }
0x2521   : > { %3744 = vrcp.f32 %v2432_v8 }
0x2527   : > { %v3745_v1 = vpop.eup %3744 }
0x2528   : > { %v2429_v11 = vpop.xlane.xlu0 %2428  ;;  %v2460_v17 = vmul.f32 %v3745_v1, %v3737_v35 }
0x2529   : > { %3746 = vrcp.f32 %v2429_v11 }
0x252b   : > { %2696 = vrot.lane.b32.xlu1 %v4352_v46, %s3812_s24  ;;  %v2145_v46 = vpop.f32.mrf.mxu0 }
0x252c   : > { %v4445_v13 = vadd.f32 %v4245_v5, %v2145_v46 }
0x252f   : > { %v3747_v15 = vpop.eup %3746 }
0x2530   : > { %v2459_v18 = vmul.f32 %v3747_v15, %v3739_v38 }
0x2532   : > { %2694 = vrot.lane.b32.xlu2 %v4356_v47, %s3812_s24 }
0x2533   : > { %2722 = vrot.lane.b32.xlu1 %v4366_v51, %s3812_s24  ;;  %v2054_v51 = vadd.f32 %v4335_v16, %v2053_v10  ;;  %v2148_v12 = vpop.f32.mrf.mxu0 }
0x2534   : > { %v4448_v14 = vadd.f32 %v4245_v5, %v2148_v12 }
0x253a   : > { %2806 = vrot.lane.b32.xlu2 %v2166_v63, %s3812_s24 }
0x253b   : > { %2668 = vrot.lane.b32.xlu1 %v4341_v41, %s3812_s24  ;;  %v2167_v41 = vmul.f32 0.25, %v2054_v51 }
0x254f   : > { %v1973_v7 = vpop.permute.xlu1 %1972 }
0x2550   : > { %1975 = vst.msk [vmem:[#allocation5] sm:$0xff] %vm835_vm0, %v1973_v7 }
0x2551   : > { %1977 = vst.msk [vmem:[#allocation4 + $0x38] sm:$0xff] %vm835_vm0, %v1973_v7 }
0x2558   : > { %v1985_v47 = vld [vmem:[#allocation4 + $0x38] sm:$0xff] }
0x2559   : > { %3528 = vmatmul.msk.f32.gmra.mxu1 %vm835_vm0, %v1985_v47  ;;  %3536 = vmatmul.msk.f32.gmra.mxu2 %vm835_vm0, %v1985_v47 }
0x255a   : > { %3544 = vmatmul.msk.f32.gmra.mxu0 %vm835_vm0, %v1985_v47 }
0x2561   : > { %3556 = vmatmul.msk.f32.vlgmr.msra.gmra.mxu1 %vm2169_vm2, %v2166_v63  ;;  %3558 = vmatmul.msk.f32.vlgmr.msra.gmra.mxu2 %vm2169_vm2, %v2167_v41 }
0x2562   : > { %2577 = vmatpush.msra.mxu1 %v4445_v13  ;;  %2600 = vmatpush.msra.mxu2 %v4448_v14 }
0x2569   : > { %3561 = vmatmul.msk.f32.vlgmr.msrb.gmra.mxu1 %vm2378_vm3, %v2459_v18  ;;  %3562 = vmatmul.msk.f32.vlgmr.msrb.gmra.mxu2 %vm2378_vm3, %v2460_v17 }
0x257a   : > { %v2393_v19 = vpop.xlane.xlu1 %2392 }
0x257b   : > { %v2407_v25 = vsub.f32 %v2297_v40, %v2393_v19 }
0x257d   : > { %v2419_v26 = vmul.f32 1.442695, %v2407_v25 }
0x257f   : > { %3748 = vpow2.f32 %v2419_v26 }
0x2585   : > { %v3749_v27 = vpop.eup %3748  ;;  %v2435_v31 = vpop.xlane.xlu1 %2434 }
0x2586   : > { %v2439_v28 = vsel %vm2378_vm3, %v3749_v27, 0.0 }
0x2587   : > { %2440 = vadd.xlane.f32.xlu0 %v2439_v28 }
0x258d   : > { %v2438_v0 = vpop.xlane.xlu2 %2437 }
0x258e   : > { %3750 = vrcp.f32 %v2438_v0 }
0x258f   : > { %3752 = vrcp.f32 %v2435_v31 }
0x2594   : > { %v3751_v30 = vpop.eup %3750 }
0x2595   : > { %v2462_v32 = vmul.f32 %v3751_v30, %v3743_v54  ;;  %v3753_v43 = vpop.eup %3752  ;;  %v2695_v21 = vpop.permute.xlu2 %2694 }
0x2596   : > { %v2461_v44 = vmul.f32 %v3753_v43, %v4423_v22 }
0x2597   : > { %3564 = vmatmul.msk.f32.vlgmr.msra.gmra.mxu0 %vm2378_vm3, %v2462_v32 }
0x259b   : > { %2724 = vrot.lane.b32.xlu0 %v4362_v50, %s3812_s24  ;;  %v2151_v50 = vpop.f32.mrf.mxu0 }
0x259c   : > { %v4486_v40 = vadd.f32 %v4245_v5, %v2151_v50 }
0x259d   : > { %v2697_v34 = vpop.permute.xlu1 %2696  ;;  %v2807_v23 = vpop.permute.xlu2 %2806 }
0x259e   : > { %3571 = vmatpush.xpose.msk.msrb.mxu2 %vm2169_vm2, %v2697_v34 }
0x25a3   : > { %2808 = vrot.lane.b32.xlu0 %v4391_v60, %s3812_s24 }
0x25a5   : > { %v4463_v55 = vpop.permute.xlu1 %2722 }
0x25ab   : > { %2836 = vrot.lane.b32.xlu0 %v4401_v4, %s3812_s24 }
0x25ad   : > { %v2669_v35 = vpop.permute.xlu1 %2668 }
0x25ae   : > { %3569 = vmatpush.xpose.msk.msrb.mxu1 %vm2169_vm2, %v2669_v35 }
0x25b3   : > { %2834 = vrot.lane.b32.xlu0 %v2167_v41, %s3812_s24 }
0x25bb   : > { %2750 = vrot.lane.b32.xlu0 %v4376_v52, %s3812_s24 }
0x25d6   : > { %v2056_v36 = vpop.f32.mrf.mxu1 }
0x25d7   : > { %v2057_v37 = vadd.f32 %v4335_v16, %v2056_v36  ;;  %v2154_v38 = vpop.f32.mrf.mxu0 }
0x25d8   : > { %v4473_v60 = vadd.f32 %v4245_v5, %v2154_v38 }
0x25d9   : > { %v2168_v62 = vmul.f32 0.25, %v2057_v37 }
0x25da   : > { %2646 = vmatpush.msrb.mxu0 %v4473_v60 }
0x25db   : > { %2862 = vrot.lane.b32.xlu0 %v2168_v62, %s3812_s24 }
0x25dc   : > { %v2105_v4 = vpop.f32.mrf.mxu2 }
0x25dd   : > { %v2106_v33 = vadd.f32 %v4337_v42, %v2105_v4 }
0x25de   : > { %v2323_v52 = vpop.f32.mrf.mxu1 }
0x25df   : > { %3559 = vmatpush.xpose.msk.msra.mxu3 %vm2169_vm2, %v2106_v33  ;;  %v2394_v16 = vsel %vm2378_vm3, %v2323_v52, -inf }
0x25e0   : > { %2395 = vmax.xlane.f32.xlu1 %v2394_v16 }
0x25e2   : > { %3560 = vmatmul.msk.f32.vlgmr.msra.gmra.mxu3 %vm2169_vm2, %v2168_v62 }
0x25e3   : > { %2531 = vmatpush.msrb.mxu3 %v4480_v39 }
0x25e4   : > { %v2349_v42 = vpop.f32.mrf.mxu2 }
0x25e5   : > { %2623 = vmatpush.msra.mxu3 %v4486_v40  ;;  %v2397_v2 = vsel %vm2378_vm3, %v2349_v42, -inf }
0x25e6   : > { %2398 = vmax.xlane.f32.xlu2 %v2397_v2  ;;  %v2487_v11 = vpop.f32.mrf.mxu1 }
0x25e7   : > { %v2651_v62 = vsel %vm2169_vm2, %v2487_v11, 0.0 }
0x25ea   : > { %3563 = vmatmul.msk.f32.vlgmr.msrb.gmra.mxu3 %vm2378_vm3, %v2461_v44 }
0x25ec   : > { %v2510_v50 = vpop.f32.mrf.mxu2 }
0x25ed   : > { %v2652_v38 = vsel %vm2169_vm2, %v2510_v50, 0.0 }
0x25f9   : > { %2666 = vrot.lane.b32.xlu1 %v4346_v29, %s3812_s24 }
0x25fa   : > { %v2441_v45 = vpop.xlane.xlu0 %2440 }
0x25fb   : > { %3754 = vrcp.f32 %v2441_v45 }
0x2601   : > { %v3755_v5 = vpop.eup %3754 }
0x2602   : > { %v2463_v48 = vmul.f32 %v3755_v5, %v3749_v27 }
0x2604   : > { %3565 = vmatmul.msk.f32.vlgmr.msra.gmra.mxu1 %vm2378_vm3, %v2463_v48 }
0x260d   : > { %v2725_v49 = vpop.permute.xlu0 %2724 }
0x260e   : > { %3573 = vmatpush.xpose.msk.msrb.mxu3 %vm2169_vm2, %v2725_v49 }
0x2615   : > { %v2809_v12 = vpop.permute.xlu0 %2808 }
0x261d   : > { %v2837_v26 = vpop.permute.xlu0 %2836 }
0x2625   : > { %v2835_v34 = vpop.permute.xlu0 %2834 }
0x262d   : > { %v2751_v35 = vpop.permute.xlu0 %2750 }
0x264d   : > { %v2863_v36 = vpop.permute.xlu0 %2862 }
0x2653   : > { %v2396_v53 = vpop.xlane.xlu1 %2395 }
0x2654   : > { %v2408_v54 = vsub.f32 %v2323_v52, %v2396_v53  ;;  %v2556_v52 = vpop.f32.mrf.mxu0 }
0x2656   : > { %v2421_v56 = vmul.f32 1.442695, %v2408_v54 }
0x2658   : > { %3756 = vpow2.f32 %v2421_v56 }
0x2659   : > { %v2399_v22 = vpop.xlane.xlu2 %2398 }
0x265a   : > { %v2409_v59 = vsub.f32 %v2349_v42, %v2399_v22 }
0x265c   : > { %v2423_v3 = vmul.f32 1.442695, %v2409_v59 }
0x265e   : > { %v3757_v63 = vpop.eup %3756  ;;  %3758 = vpow2.f32 %v2423_v3 }
0x265f   : > { %v2442_v29 = vsel %vm2378_vm3, %v3757_v63, 0.0 }
0x2660   : > { %2443 = vadd.xlane.f32.xlu2 %v2442_v29 }
0x2664   : > { %v3759_v7 = vpop.eup %3758 }
0x2665   : > { %v2375_v8 = vpop.f32.mrf.mxu3  ;;  %v2445_v46 = vsel %vm2378_vm3, %v3759_v7, 0.0 }
0x2666   : > { %2446 = vadd.xlane.f32.xlu1 %v2445_v46  ;;  %v2400_v10 = vsel %vm2378_vm3, %v2375_v8, -inf }
0x2668   : > { %2401 = vmax.xlane.f32.xlu2 %v2400_v10 }
0x266b   : > { %v2667_v47 = vpop.permute.xlu1 %2666 }
0x266c   : > { %3570 = vmatmul.msk.f32.vlgmr.msrb.gmra.mxu1 %vm2169_vm2, %v2667_v47 }
0x266d   : > { %v2533_v37 = vpop.f32.mrf.mxu3 }
0x267f   : > { %2780 = vrot.lane.b32.xlu1 %v4382_v57, %s3812_s24 }
0x2680   : > { %2752 = vrot.lane.b32.xlu2 %v4372_v24, %s3812_s24 }
0x2681   : > { %v2579_v24 = vpop.f32.mrf.mxu1 }
0x2682   : > { %v2658_v44 = vsel %vm2169_vm2, %v2579_v24, 0.0 }
0x2687   : > { %2864 = vrot.lane.b32.xlu1 %v2106_v33, %s3812_s24  ;;  %v2653_v33 = vadd.f32 %v2652_v38, %v2651_v62 }
0x26d3   : > { %v2444_v51 = vpop.xlane.xlu2 %2443 }
0x26d4   : > { %3760 = vrcp.f32 %v2444_v51 }
0x26d9   : > { %v2447_v41 = vpop.xlane.xlu1 %2446 }
0x26da   : > { %v3761_v1 = vpop.eup %3760  ;;  %3762 = vrcp.f32 %v2447_v41 }
0x26db   : > { %v2464_v15 = vmul.f32 %v3761_v1, %v3757_v63  ;;  %v2402_v17 = vpop.xlane.xlu2 %2401 }
0x26dc   : > { %v2410_v18 = vsub.f32 %v2375_v8, %v2402_v17 }
0x26dd   : > { %3566 = vmatmul.msk.f32.vlgmr.msra.gmra.mxu2 %vm2378_vm3, %v2464_v15 }
0x26de   : > { %v2425_v19 = vmul.f32 1.442695, %v2410_v18  ;;  %3579 = vmatpush.xpose.msk.msra.mxu2 %vm2169_vm2, %v2809_v12 }
0x26e0   : > { %v3763_v57 = vpop.eup %3762  ;;  %3764 = vpow2.f32 %v2425_v19  ;;  %v3619_v19 = vpack.i.bf16 %v4480_v39, %v4405_v6 }
0x26e1   : > { %v2465_v25 = vmul.f32 %v3763_v57, %v3759_v7 }
0x26e3   : > { %3567 = vmatmul.msk.f32.vlgmr.msra.gmra.mxu3 %vm2378_vm3, %v2465_v25  ;;  %v2753_v27 = vpop.permute.xlu2 %2752 }
0x26e4   : > { %3581 = vmatpush.xpose.msk.msra.mxu3 %vm2169_vm2, %v2837_v26  ;;  %3575 = vmatpush.xpose.msk.msra.mxu0 %vm2169_vm2, %v2753_v27 }
0x26e5   : > { %3572 = vmatmul.msk.f32.vlgmr.msrb.gmra.mxu2 %vm2169_vm2, %v2695_v21 }
0x26e6   : > { %v3765_v28 = vpop.eup %3764 }
0x26e7   : > { %v2448_v0 = vsel %vm2378_vm3, %v3765_v28, 0.0 }
0x26e8   : > { %2449 = vadd.xlane.f32.xlu2 %v2448_v0  ;;  %v3629_v0 = vpack.i.bf16 %v4486_v40, %v4248_v9 }
0x26e9   : > { %v2691_v30 = vpop.f32.mrf.mxu1 }
0x26ea   : > { %v2890_v31 = vsel %vm2378_vm3, %v2691_v30, -inf }
0x26eb   : > { %2891 = vmax.xlane.f32.xlu0 %v2890_v31  ;;  %3574 = vmatmul.msk.f32.vlgmr.msrb.gmra.mxu3 %vm2169_vm2, %v4463_v55  ;;  %v2654_v55 = vsel %vm2169_vm2, %v2533_v37, 0.0 }
0x26ec   : > { %v2655_v16 = vadd.f32 %v2654_v55, %v2653_v33 }
0x26ed   : > { %3580 = vmatmul.msk.f32.vlgmr.msra.gmra.mxu2 %vm2169_vm2, %v2807_v23 }
0x26f1   : > { %v2781_v32 = vpop.permute.xlu1 %2780 }
0x26f2   : > { %3577 = vmatpush.xpose.msk.msra.mxu1 %vm2169_vm2, %v2781_v32 }
0x26f3   : > { %3582 = vmatmul.msk.f32.vlgmr.msra.gmra.mxu3 %vm2169_vm2, %v2835_v34 }
0x26f9   : > { %v2865_v54 = vpop.permute.xlu1 %2864 }
0x2700   : > { %2778 = vrot.lane.b32.xlu2 %v4386_v58, %s3812_s24  ;;  %v2656_v58 = vsel %vm2169_vm2, %v2556_v52, 0.0 }
0x2701   : > { %v2657_v48 = vadd.f32 %v2656_v58, %v2655_v16 }
0x2703   : > { %v2659_v53 = vadd.f32 %v2658_v44, %v2657_v48  ;;  %v3624_v48 = vpack.i.bf16 %v4448_v14, %v4395_v61 }
0x275b   : > { %v2450_v4 = vpop.xlane.xlu2 %2449 }
0x275c   : > { %3766 = vrcp.f32 %v2450_v4 }
0x275e   : > { %v2892_v42 = vpop.xlane.xlu0 %2891 }
0x275f   : > { %v2914_v43 = vsub.f32 %v2691_v30, %v2892_v42 }
0x2760   : > { %v2602_v2 = vpop.f32.mrf.mxu2 }
0x2761   : > { %v2922_v45 = vmul.f32 1.442695, %v2914_v43  ;;  %v2660_v21 = vsel %vm2169_vm2, %v2602_v2, 0.0 }
0x2762   : > { %v3767_v5 = vpop.eup %3766  ;;  %v2661_v56 = vadd.f32 %v2660_v21, %v2659_v53 }
0x2763   : > { %v2466_v49 = vmul.f32 %v3767_v5, %v3765_v28  ;;  %3768 = vpow2.f32 %v2922_v45  ;;  %v2779_v23 = vpop.permute.xlu2 %2778 }
0x2764   : > { %3578 = vmatmul.msk.f32.vlgmr.msra.gmra.mxu1 %vm2169_vm2, %v2779_v23 }
0x2765   : > { %3568 = vmatmul.msk.f32.vlgmr.msrb.gmra.mxu0 %vm2378_vm3, %v2466_v49 }
0x2766   : > { %3583 = vmatpush.xpose.msk.msrb.mxu0 %vm2169_vm2, %v2865_v54  ;;  %v2625_v22 = vpop.f32.mrf.mxu3 }
0x2767   : > { %v2662_v59 = vsel %vm2169_vm2, %v2625_v22, 0.0 }
0x2768   : > { %v2663_v3 = vadd.f32 %v2662_v59, %v2661_v56  ;;  %v2719_v1 = vpop.f32.mrf.mxu2 }
0x2769   : > { %v4531_v63 = vpop.eup %3768  ;;  %v2893_v15 = vsel %vm2378_vm3, %v2719_v1, -inf }
0x276a   : > { %v2938_v29 = vsel %vm2378_vm3, %v4531_v63, 0.0 }
0x276b   : > { %2939 = vadd.xlane.f32.xlu1 %v2938_v29 }
0x276d   : > { %3576 = vmatmul.msk.f32.vlgmr.msra.gmra.mxu0 %vm2169_vm2, %v2751_v35 }
0x276e   : > { %v2747_v7 = vpop.f32.mrf.mxu3 }
0x276f   : > { %v2896_v8 = vsel %vm2378_vm3, %v2747_v7, -inf }
0x2770   : > { %v2831_v17 = vpop.f32.mrf.mxu2 }
0x2771   : > { %v2905_v18 = vsel %vm2378_vm3, %v2831_v17, -inf }
0x2773   : > { %2897 = vmax.xlane.f32.xlu1 %v2896_v8 }
0x2775   : > { %3584 = vmatmul.msk.f32.vlgmr.msrb.gmra.mxu0 %vm2169_vm2, %v2863_v36 }
0x2776   : > { %v2859_v46 = vpop.f32.mrf.mxu3 }
0x2777   : > { %v2908_v10 = vsel %vm2378_vm3, %v2859_v46, -inf }
0x2778   : > { %2909 = vmax.xlane.f32.xlu0 %v2908_v10 }
0x27de   : > { %v4548_v57 = vpop.xlane.xlu1 %2939 }
0x27e1   : > { %v2803_v47 = vpop.f32.mrf.mxu1 }
0x27e2   : > { %v2648_v51 = vpop.f32.mrf.mxu0  ;;  %v2902_v11 = vsel %vm2378_vm3, %v2803_v47, -inf }
0x27e3   : > { %v2664_v12 = vsel %vm2169_vm2, %v2648_v51, 0.0  ;;  %2903 = vmax.xlane.f32.xlu2 %v2902_v11 }
0x27e4   : > { %v4541_v41 = vadd.f32 %v2664_v12, %v2663_v3 }
0x27e6   : > { %v2898_v24 = vpop.xlane.xlu1 %2897 }
0x27e7   : > { %v2916_v25 = vsub.f32 %v2747_v7, %v2898_v24 }
0x27e9   : > { %v2926_v26 = vmul.f32 1.442695, %v2916_v25 }
0x27ea   : > { %v2775_v9 = vpop.f32.mrf.mxu0 }
0x27eb   : > { %2894 = vmax.xlane.f32.xlu2 %v2893_v15  ;;  %3770 = vpow2.f32 %v2926_v26  ;;  %v2910_v40 = vpop.xlane.xlu0 %2909  ;;  %v2899_v4 = vsel %vm2378_vm3, %v2775_v9, -inf }
0x27f1   : > { %v3771_v27 = vpop.eup %3770 }
0x27f2   : > { %v2944_v28 = vsel %vm2378_vm3, %v3771_v27, 0.0  ;;  %v2887_v16 = vpop.f32.mrf.mxu0 }
0x27f3   : > { %2906 = vmax.xlane.f32.xlu2 %v2905_v18  ;;  %v2911_v44 = vsel %vm2378_vm3, %v2887_v16, -inf }
0x280b   : > { %3620 = vrot.lane.b32.xlu2 %v3619_v19, %s3812_s24 }
0x2834   : > { %2945 = vadd.xlane.f32.xlu2 %v2944_v28 }
0x284c   : > { %3630 = vrot.lane.b32.xlu2 %v3629_v0, %s3812_s24 }
0x2854   : > { %3168 = vrot.lane.b32.xlu2 %v4473_v60, %s3812_s24  ;;  %v2920_v60 = vsub.f32 %v2859_v46, %v2910_v40  ;;  %v2160_v40 = vld [vmem:[%s4580_s22 + $0x18] sm:$0xff] }
0x2856   : > { %v2904_v6 = vpop.xlane.xlu2 %2903  ;;  %v2934_v33 = vmul.f32 1.442695, %v2920_v60 }
0x2857   : > { %v2918_v39 = vsub.f32 %v2803_v47, %v2904_v6  ;;  %v2158_v6 = vld [vmem:[%s4580_s22 + $0x8] sm:$0xff] }
0x2859   : > { %v2930_v30 = vmul.f32 1.442695, %v2918_v39 }
0x285b   : > { %3772 = vpow2.f32 %v2930_v30 }
0x285e   : > { %v2895_v31 = vpop.xlane.xlu2 %2894 }
0x285f   : > { %v2915_v32 = vsub.f32 %v2719_v1, %v2895_v31 }
0x2861   : > { %v4556_v34 = vpop.eup %3772  ;;  %v2924_v35 = vmul.f32 1.442695, %v2915_v32 }
0x2862   : > { %v2950_v50 = vsel %vm2378_vm3, %v4556_v34, 0.0 }
0x2863   : > { %3774 = vpow2.f32 %v2924_v35  ;;  %2951 = vadd.xlane.f32.xlu1 %v2950_v50 }
0x2866   : > { %v2907_v36 = vpop.xlane.xlu2 %2906 }
0x2867   : > { %v2919_v37 = vsub.f32 %v2831_v17, %v2907_v36  ;;  %v2159_v36 = vld [vmem:[%s4580_s22 + $0x10] sm:$0xff] }
0x2869   : > { %v3775_v38 = vpop.eup %3774  ;;  %v2932_v62 = vmul.f32 1.442695, %v2919_v37 }
0x286a   : > { %v2941_v55 = vsel %vm2378_vm3, %v3775_v38, 0.0 }
0x286b   : > { %3776 = vpow2.f32 %v2932_v62  ;;  %2942 = vadd.xlane.f32.xlu0 %v2941_v55  ;;  %2900 = vmax.xlane.f32.xlu1 %v2899_v4 }
0x286c   : > { %3778 = vpow2.f32 %v2934_v33 }
0x286e   : > { %v3621_v52 = vpop.permute.xlu2 %3620 }
0x286f   : > { %v3623_v42 = vunpack.i.h.bf16 %v3621_v52  ;;  %v3622_v43 = vunpack.i.l.bf16 %v3621_v52 }
0x2871   : > { %v3777_v2 = vpop.eup %3776  ;;  %3027 = vmatpush.msrb.mxu2 %v3622_v43  ;;  %3054 = vmatpush.msrb.mxu3 %v3623_v42 }
0x2872   : > { %v2953_v58 = vsel %vm2378_vm3, %v3777_v2, 0.0  ;;  %v3779_v45 = vpop.eup %3778 }
0x2873   : > { %2954 = vadd.xlane.f32.xlu0 %v2953_v58  ;;  %2912 = vmax.xlane.f32.xlu1 %v2911_v44  ;;  %v2956_v5 = vsel %vm2378_vm3, %v3779_v45, 0.0 }
0x287b   : > { %2957 = vadd.xlane.f32.xlu0 %v2956_v5 }
0x288f   : > { %3625 = vrot.lane.b32.xlu0 %v3624_v48, %s3812_s24 }
0x2897   : > { %1967 = vrot.lane.b32.xlu0 %v4413_v20, %s3811_s26 }
0x28a7   : > { %v2946_v49 = vpop.xlane.xlu2 %2945 }
0x28a8   : > { %3780 = vrcp.f32 %v2946_v49 }
0x28ae   : > { %v3781_v21 = vpop.eup %3780 }
0x28af   : > { %v2972_v23 = vmul.f32 %v3781_v21, %v3771_v27  ;;  %v3631_v53 = vpop.permute.xlu2 %3630 }
0x28b0   : > { %v3633_v54 = vunpack.i.h.bf16 %v3631_v53  ;;  %v3632_v56 = vunpack.i.l.bf16 %v3631_v53 }
0x28b1   : > { %3587 = vmatmul.msk.f32.vlgmr.msrb.gmra.mxu3 %vm2378_vm3, %v2972_v23 }
0x28b2   : > { %3081 = vmatpush.msra.mxu0 %v3632_v56  ;;  %3162 = vmatpush.msra.mxu3 %v3633_v54 }
0x28b7   : > { %v3169_v22 = vpop.permute.xlu2 %3168 }
0x28b8   : > { %3189 = vmatpush.msrb.mxu0 %v3169_v22 }
0x28d6   : > { %v2952_v59 = vpop.xlane.xlu1 %2951 }
0x28de   : > { %v2901_v61 = vpop.xlane.xlu1 %2900  ;;  %v2943_v14 = vpop.xlane.xlu0 %2942 }
0x28df   : > { %v2917_v3 = vsub.f32 %v2775_v9, %v2901_v61  ;;  %3782 = vrcp.f32 %v2943_v14  ;;  %v3639_v61 = vld [vmem:[%s732_s23] ss:$0 sm:$0xff] }
0x28e1   : > { %v2928_v29 = vmul.f32 1.442695, %v2917_v3 }
0x28e3   : > { %3784 = vpow2.f32 %v2928_v29 }
0x28e5   : > { %v3783_v20 = vpop.eup %3782 }
0x28e6   : > { %v2971_v7 = vmul.f32 %v3783_v20, %v3775_v38  ;;  %v2913_v8 = vpop.xlane.xlu1 %2912  ;;  %v2955_v46 = vpop.xlane.xlu0 %2954 }
0x28e7   : > { %v2921_v10 = vsub.f32 %v2887_v16, %v2913_v8 }
0x28e8   : > { %3586 = vmatmul.msk.f32.vlgmr.msrb.gmra.mxu2 %vm2378_vm3, %v2971_v7 }
0x28e9   : > { %v3785_v47 = vpop.eup %3784  ;;  %v2936_v51 = vmul.f32 1.442695, %v2921_v10 }
0x28ea   : > { %v2947_v11 = vsel %vm2378_vm3, %v3785_v47, 0.0 }
0x28eb   : > { %3786 = vpow2.f32 %v2936_v51  ;;  %2948 = vadd.xlane.f32.xlu1 %v2947_v11 }
0x28ee   : > { %v2958_v12 = vpop.xlane.xlu0 %2957 }
0x28ef   : > { %3788 = vrcp.f32 %v2958_v12 }
0x28f0   : > { %3790 = vrcp.f32 %v4548_v57  ;;  %v2157_v57 = vld [vmem:[%s4580_s22] sm:$0xff] }
0x28f1   : > { %v3787_v1 = vpop.eup %3786  ;;  %3792 = vrcp.f32 %v2955_v46 }
0x28f2   : > { %v2959_v15 = vsel %vm2378_vm3, %v3787_v1, 0.0 }
0x28f3   : > { %2960 = vadd.xlane.f32.xlu1 %v2959_v15 }
0x28f5   : > { %v3789_v17 = vpop.eup %3788 }
0x28f6   : > { %v2976_v18 = vmul.f32 %v3789_v17, %v3779_v45  ;;  %v3791_v19 = vpop.eup %3790 }
0x28f7   : > { %v3793_v24 = vpop.eup %3792  ;;  %v2970_v28 = vmul.f32 %v3791_v19, %v4531_v63 }
0x28f8   : > { %3591 = vmatmul.msk.f32.vlgmr.msra.gmra.mxu3 %vm2378_vm3, %v2976_v18  ;;  %v2975_v0 = vmul.f32 %v3793_v24, %v3777_v2 }
0x2901   : > { %v3626_v25 = vpop.permute.xlu0 %3625 }
0x2902   : > { %v3628_v26 = vunpack.i.h.bf16 %v3626_v25  ;;  %v3627_v27 = vunpack.i.l.bf16 %v3626_v25 }
0x2904   : > { %3000 = vmatpush.msrb.mxu1 %v3627_v27  ;;  %3135 = vmatpush.msra.mxu2 %v3628_v26 }
0x2905   : > { %3585 = vmatmul.msk.f32.vlgmr.msrb.gmra.mxu1 %vm2378_vm3, %v2970_v28  ;;  %3590 = vmatmul.msk.f32.vlgmr.msra.gmra.mxu2 %vm2378_vm3, %v2975_v0 }
0x2906   : > { %3249 = vmatpush.msrb.mxu2 %v2158_v6 }
0x2908   : > { %3250 = vmatpush.msrb.mxu2 %v2157_v57 }
0x2909   : > { %v1968_v39 = vpop.permute.xlu0 %1967 }
0x290a   : > { %1970 = vst.msk [vmem:[#allocation6] sm:$0xff] %vm835_vm0, %v1968_v39 }
0x290c   : > { %3087 = vrot.lane.b32.xlu1 %v4445_v13, %s3812_s24 }
0x290d   : > { %3594 = vmatmul.msk.f32.vlgmr.msrb.gmra.mxu2 %vm2169_vm2, %v4541_v41 }
0x2934   : > { %v3056_v55 = vpop.f32.mrf.mxu3 }
0x2935   : > { %v3197_v33 = vsel %vm2169_vm2, %v3056_v55, 0.0 }
0x295e   : > { %v2949_v63 = vpop.xlane.xlu1 %2948 }
0x295f   : > { %3794 = vrcp.f32 %v2949_v63 }
0x2965   : > { %v3795_v30 = vpop.eup %3794 }
0x2966   : > { %v2973_v31 = vmul.f32 %v3795_v30, %v3785_v47  ;;  %v2961_v32 = vpop.xlane.xlu1 %2960 }
0x2967   : > { %3796 = vrcp.f32 %v2961_v32 }
0x2968   : > { %3588 = vmatmul.msk.f32.vlgmr.msra.gmra.mxu0 %vm2378_vm3, %v2973_v31  ;;  %3798 = vrcp.f32 %v2952_v59 }
0x296b   : > { %v3029_v38 = vpop.f32.mrf.mxu2 }
0x296c   : > { %v3195_v62 = vsel %vm2169_vm2, %v3029_v38, 0.0 }
0x296d   : > { %v3797_v35 = vpop.eup %3796 }
0x296e   : > { %v2977_v50 = vmul.f32 %v3797_v35, %v3787_v1  ;;  %v3799_v13 = vpop.eup %3798 }
0x296f   : > { %v2974_v9 = vmul.f32 %v3799_v13, %v4556_v34 }
0x2970   : > { %3592 = vmatmul.msk.f32.vlgmr.msrb.gmra.mxu0 %vm2378_vm3, %v2977_v50 }
0x297b   : > { %v3164_v44 = vpop.f32.mrf.mxu3 }
0x297c   : > { %v3205_v21 = vsel %vm2169_vm2, %v3164_v44, 0.0 }
0x297e   : > { %v3088_v41 = vpop.permute.xlu1 %3087 }
0x297f   : > { %3108 = vmatpush.msra.mxu1 %v3088_v41 }
0x2980   : > { %3589 = vmatmul.msk.f32.vlgmr.msra.gmra.mxu1 %vm2378_vm3, %v2974_v9 }
0x2981   : > { %3226 = vmatpush.msrb.mxu1 %v2160_v40 }
0x2982   : > { %v3002_v37 = vpop.f32.mrf.mxu1 }
0x2983   : > { %3227 = vmatpush.msrb.mxu1 %v2159_v36  ;;  %v3194_v60 = vsel %vm2169_vm2, %v3002_v37, 0.0 }
0x2984   : > { %v3196_v34 = vadd.f32 %v3195_v62, %v3194_v60 }
0x2986   : > { %v3198_v16 = vadd.f32 %v3197_v33, %v3196_v34 }
0x2988   : > { %v3137_v42 = vpop.f32.mrf.mxu2 }
0x2989   : > { %v3203_v5 = vsel %vm2169_vm2, %v3137_v42, 0.0 }
0x2990   : > { %v3252_v56 = vpop.f32.mrf.mxu2 }
0x29e5   : > { %v3083_v4 = vpop.f32.mrf.mxu0 }
0x29e6   : > { %v3199_v52 = vsel %vm2169_vm2, %v3083_v4, 0.0 }
0x29e7   : > { %v3200_v43 = vadd.f32 %v3199_v52, %v3198_v16 }
0x29ed   : > { %v3191_v48 = vpop.f32.mrf.mxu0 }
0x29ee   : > { %v3207_v53 = vsel %vm2169_vm2, %v3191_v48, 0.0 }
0x29fd   : > { %v3110_v2 = vpop.f32.mrf.mxu1 }
0x29fe   : > { %v3201_v58 = vsel %vm2169_vm2, %v3110_v2, 0.0 }
0x29ff   : > { %v3202_v45 = vadd.f32 %v3201_v58, %v3200_v43 }
0x2a01   : > { %v3204_v49 = vadd.f32 %v3203_v5, %v3202_v45 }
0x2a03   : > { %v3206_v23 = vadd.f32 %v3205_v21, %v3204_v49 }
0x2a05   : > { %v3208_v54 = vadd.f32 %v3207_v53, %v3206_v23 }
0x2a07   : > { %3593 = vmatmul.msk.f32.vlgmr.msrb.gmra.mxu1 %vm2169_vm2, %v3208_v54 }
0x2a84   : > { %v3229_v22 = vpop.f32.mrf.mxu1 }
0x2a85   : > { %v3253_v59 = vadd.f32 %v3252_v56, %v3229_v22 }
0x2a87   : > { %v3255_v14 = vmul.f32 0.125, %v3253_v59 }
0x2a89   : > { %v3260_v3 = vadd.f32 %v3639_v61, %v3255_v14 }
0x2a8b   : > { %3261 = vst.msk [vmem:[%s736_s17] sm:$0xff] %vm835_vm0, %v3260_v3 }
0x2a8c PF: > { %s25_s18 = sadd.s32 1, %s3806_s18  }
0x2a8d   : > { %p22_p4 = scmp.ge.s32.totalorder %s25_s18, 5  }
0x2a8f   :  { %24 = sbr.rel (!%p22_p4) target bundleno = 1 (0x1), region = 173 }

</bundles_post_ra>
